<compile_context>
chip_gen: v5e
topology: v5e:2x2
jax: 0.10.0
libtpu: 0.0.40
codegen_flags: <defaults>
</compile_context>

<pallas_src>
import jax
import jax.numpy as jnp
from jax.experimental import pallas as pl
from jax.experimental.pallas import tpu as pltpu

EPS = 1e-5
LANES = 128
COMPUTE_DTYPE = jnp.bfloat16      # MXU operand dtype (accumulation is always f32)
TILE_H = 8                        # H rows per inner conv step / per BN grid step
_VMEM_LIMIT = 32 * 1024 * 1024    # explicit scoped-VMEM budget (safe on v5e/v6e/v7x)


# ---------------- Pallas kernels ----------------

def _conv_bias_stats_kernel(x_ref, w_ref, b_ref, y_ref, st_ref, xpad_ref):
    """3x3 'SAME' conv + bias for one image; also emits per-image BN partial stats.

    x_ref  : (1, H, W, Cp)     bf16  channel-padded input image
    w_ref  : (9*Cp, Cp)        bf16  im2col-packed weights, rows ordered (ky, kx, cin)
    b_ref  : (1, Cp)           f32   bias
    y_ref  : (1, H, W, Cp)     f32   raw conv + bias output (pre-BN)
    st_ref : (1, 2, Cp)        f32   [sum, sum_of_squares] over this image
    xpad_ref: (H+2, W+2, Cp)   bf16  VMEM scratch with the zero halo
    """
    _, H, W, Cp = x_ref.shape
    th = TILE_H if H % TILE_H == 0 else H

    # Build the 1-pixel zero halo entirely in VMEM (no HBM-side jnp.pad round trip).
    xpad_ref[...] = jnp.zeros_like(xpad_ref)
    xpad_ref[1:H + 1, 1:W + 1, :] = x_ref[0]
    xp = xpad_ref[...]

    s = jnp.zeros((1, Cp), jnp.float32)
    ss = jnp.zeros((1, Cp), jnp.float32)
    for r0 in range(0, H, th):                     # static, unrolled row-block loop
        # im2col patch for this row block: (th*W, 9*Cp) -> one MXU contraction (K=9*Cp).
        parts = [xp[r0 + dy:r0 + dy + th, dx:dx + W, :]
                 for dy in range(3) for dx in range(3)]
        patch = jnp.concatenate(parts, axis=-1).reshape(th * W, 9 * Cp)
        acc = jnp.dot(patch, w_ref[...], preferred_element_type=jnp.float32)
        acc = acc + b_ref[...]
        y_ref[0, r0:r0 + th, :, :] = acc.reshape(th, W, Cp)
        # single-pass batch-norm statistics (var = E[x^2] - E[x]^2 downstream)
        s = s + jnp.sum(acc, axis=0, keepdims=True)
        ss = ss + jnp.sum(acc * acc, axis=0, keepdims=True)
    st_ref[0] = jnp.concatenate([s, ss], axis=0)


def _bn_relu_kernel(y_ref, sc_ref, sh_ref, h_ref):
    z = jnp.maximum(y_ref[...] * sc_ref[...] + sh_ref[...], 0.0)
    h_ref[...] = z.astype(h_ref.dtype)


def _bn_relu_pool_kernel(y_ref, sc_ref, sh_ref, h_ref, p_ref):
    z = jnp.maximum(y_ref[...] * sc_ref[...] + sh_ref[...], 0.0)
    h_ref[...] = z.astype(h_ref.dtype)
    _, th, W, Cp = z.shape
    zr = z.reshape(1, th // 2, 2, W, Cp)
    hm = jnp.maximum(zr[:, :, 0], zr[:, :, 1])              # pair rows
    hm = hm.reshape(1, th // 2, W // 2, 2, Cp)
    pv = jnp.maximum(hm[:, :, :, 0, :], hm[:, :, :, 1, :])  # pair columns
    p_ref[...] = pv.astype(p_ref.dtype)


# ---------------- pallas_call wrappers ----------------

def _conv_bias_stats(x_p, w_p, b_p):
    N, H, W, Cp = x_p.shape
    return pl.pallas_call(
        _conv_bias_stats_kernel,
        out_shape=(jax.ShapeDtypeStruct((N, H, W, Cp), jnp.float32),
                   jax.ShapeDtypeStruct((N, 2, Cp), jnp.float32)),
        grid_spec=pltpu.PrefetchScalarGridSpec(
            num_scalar_prefetch=0,
            grid=(N,),
            in_specs=[pl.BlockSpec((1, H, W, Cp), lambda n: (n, 0, 0, 0)),
                      pl.BlockSpec((9 * Cp, Cp), lambda n: (0, 0)),
                      pl.BlockSpec((1, Cp), lambda n: (0, 0))],
            out_specs=(pl.BlockSpec((1, H, W, Cp), lambda n: (n, 0, 0, 0)),
                       pl.BlockSpec((1, 2, Cp), lambda n: (n, 0, 0))),
            scratch_shapes=[pltpu.VMEM((H + 2, W + 2, Cp), x_p.dtype)]),
        compiler_params=pltpu.CompilerParams(
            dimension_semantics=("parallel",),
            vmem_limit_bytes=_VMEM_LIMIT),
    )(x_p, w_p, b_p)


def _bn_relu(y_raw, scale, shift, *, out_dtype, with_pool):
    N, H, W, Cp = y_raw.shape
    th = TILE_H if H % TILE_H == 0 else H
    grid = (N, H // th)
    y_spec = pl.BlockSpec((1, th, W, Cp), lambda n, i: (n, i, 0, 0))
    vec_spec = pl.BlockSpec((1, Cp), lambda n, i: (0, 0))
    h_spec = pl.BlockSpec((1, th, W, Cp), lambda n, i: (n, i, 0, 0))
    cparams = pltpu.CompilerParams(dimension_semantics=("parallel", "parallel"),
                                   vmem_limit_bytes=_VMEM_LIMIT)
    if with_pool:
        return pl.pallas_call(
            _bn_relu_pool_kernel,
            out_shape=(jax.ShapeDtypeStruct((N, H, W, Cp), out_dtype),
                       jax.ShapeDtypeStruct((N, H // 2, W // 2, Cp), out_dtype)),
            grid_spec=pltpu.PrefetchScalarGridSpec(
                num_scalar_prefetch=0, grid=grid,
                in_specs=[y_spec, vec_spec, vec_spec],
                out_specs=(h_spec,
                           pl.BlockSpec((1, th // 2, W // 2, Cp),
                                        lambda n, i: (n, i, 0, 0)))),
            compiler_params=cparams,
        )(y_raw, scale, shift)
    return pl.pallas_call(
        _bn_relu_kernel,
        out_shape=jax.ShapeDtypeStruct((N, H, W, Cp), out_dtype),
        grid_spec=pltpu.PrefetchScalarGridSpec(
            num_scalar_prefetch=0, grid=grid,
            in_specs=[y_spec, vec_spec, vec_spec],
            out_specs=h_spec),
        compiler_params=cparams,
    )(y_raw, scale, shift)


def _conv_bn_relu_layer(x_p, w_p, b_p, gamma_p, beta_p, *, out_dtype, with_pool):
    N, H, W, Cp = x_p.shape
    y_raw, stats = _conv_bias_stats(x_p, w_p, b_p)
    # Finish the two-phase BatchNorm: global (N, H, W) stats from per-image partials.
    count = N * H * W
    tot = jnp.sum(stats, axis=0)                     # (2, Cp)
    mean = tot[0] / count
    var = tot[1] / count - jnp.square(mean)          # biased variance (training mode)
    inv = jax.lax.rsqrt(var + EPS)
    scale = (gamma_p * inv).reshape(1, Cp).astype(jnp.float32)
    shift = (beta_p - mean * gamma_p * inv).reshape(1, Cp).astype(jnp.float32)
    return _bn_relu(y_raw, scale, shift, out_dtype=out_dtype, with_pool=with_pool)


# ---------------- parameter packing (wrapper-side, trace-time) ----------------

def _round_up(v, m):
    return (v + m - 1) // m * m


def _pack_weights(w, cp):
    """(3, 3, Cin, Cout) -> lane-padded im2col weights (9*cp, cp) in COMPUTE_DTYPE."""
    kh, kw, cin, cout = w.shape
    wp = jnp.zeros((kh, kw, cp, cp), jnp.float32).at[:, :, :cin, :cout].set(w)
    return wp.reshape(kh * kw * cp, cp).astype(COMPUTE_DTYPE)


def _pack_channel_vec(v, cp):
    return jnp.zeros((cp,), jnp.float32).at[:v.shape[0]].set(v.astype(jnp.float32))


def encoder_block(x, params):
    """Returns (h, p) like the PyTorch module: conv-block output and its 2x2 max-pool."""
    N, H, W, cin = x.shape
    cout = params['w1'].shape[-1]
    assert H % TILE_H == 0 and H % 2 == 0 and W % 2 == 0
    cp = _round_up(max(cin, cout, 1), LANES)

    # One-time lane padding + bf16 cast of the input; every later stage stays lane-dense.
    x_p = jnp.zeros((N, H, W, cp), COMPUTE_DTYPE).at[..., :cin].set(
        x.astype(COMPUTE_DTYPE))

    w1 = _pack_weights(params['w1'], cp)
    w2 = _pack_weights(params['w2'], cp)
    b1 = _pack_channel_vec(params['b1'], cp).reshape(1, cp)
    b2 = _pack_channel_vec(params['b2'], cp).reshape(1, cp)
    g1 = _pack_channel_vec(params['g1'], cp)
    g2 = _pack_channel_vec(params['g2'], cp)
    bt1 = _pack_channel_vec(params['beta1'], cp)
    bt2 = _pack_channel_vec(params['beta2'], cp)

    # Layer 1: conv -> BN -> ReLU ; intermediate kept channel-padded bf16 for layer 2.
    h1 = _conv_bn_relu_layer(x_p, w1, b1, g1, bt1,
                             out_dtype=COMPUTE_DTYPE, with_pool=False)
    # Layer 2: conv -> BN -> ReLU with the 2x2 max-pool fused into the epilogue.
    h2, p = _conv_bn_relu_layer(h1, w2, b2, g2, bt2,
                                out_dtype=x.dtype, with_pool=True)
    return h2[..., :cout], p[..., :cout]


# ---------------- pure-JAX references for validation ----------------

def _ref_conv_bn_act(x, w, b, gamma, beta, compute_dtype):
    y = jax.lax.conv_general_dilated(
        x.astype(compute_dtype), w.astype(compute_dtype),
        window_strides=(1, 1), padding='SAME',
        dimension_numbers=('NHWC', 'HWIO', 'NHWC'),
        preferred_element_type=jnp.float32)
    y = y + b
    mean = jnp.mean(y, axis=(0, 1, 2), keepdims=True)
    var = jnp.mean(jnp.square(y), axis=(0, 1, 2), keepdims=True) - jnp.square(mean)
    y = (y - mean) * jax.lax.rsqrt(var + EPS) * gamma + beta
    return jnp.maximum(y, 0.0)


def _ref_encoder(x, params, compute_dtype):
    h1 = _ref_conv_bn_act(x, params['w1'], params['b1'], params['g1'],
                          params['beta1'], compute_dtype)
    h1 = h1.astype(compute_dtype).astype(jnp.float32)   # kernel stores h1 in compute dtype
    h = _ref_conv_bn_act(h1, params['w2'], params['b2'], params['g2'],
                         params['beta2'], compute_dtype)
    N, H, W, C = h.shape
    p = h.reshape(N, H // 2, 2, W // 2, 2, C).max(axis=(2, 4))
    return h, p


if __name__ == "__main__":
    in_c, out_c = 4, 8
    N, H, W = 2, 16, 16

    key = jax.random.PRNGKey(0)
    ks = jax.random.split(key, 9)
    params = dict(
        w1=0.2 * jax.random.normal(ks[0], (3, 3, in_c, out_c), jnp.float32),
        b1=0.1 * jax.random.normal(ks[1], (out_c,), jnp.float32),
        g1=1.0 + 0.1 * jax.random.normal(ks[2], (out_c,), jnp.float32),
        beta1=0.1 * jax.random.normal(ks[3], (out_c,), jnp.float32),
        w2=0.2 * jax.random.normal(ks[4], (3, 3, out_c, out_c), jnp.float32),
        b2=0.1 * jax.random.normal(ks[5], (out_c,), jnp.float32),
        g2=1.0 + 0.1 * jax.random.normal(ks[6], (out_c,), jnp.float32),
        beta2=0.1 * jax.random.normal(ks[7], (out_c,), jnp.float32),
    )
    x = jax.random.normal(ks[8], (N, H, W, in_c), jnp.float32)

    h, p = jax.jit(encoder_block)(x, params)
    jax.block_until_ready((h, p))

    assert h.shape == (N, H, W, out_c) and h.dtype == jnp.float32
    assert p.shape == (N, H // 2, W // 2, out_c) and p.dtype == jnp.float32

    # Tight check vs. a reference using the same bf16-operand / f32-accumulate math.
    hm, pm = _ref_encoder(x, params, COMPUTE_DTYPE)
    assert jnp.allclose(h, hm, atol=1e-2, rtol=1e-2)
    assert jnp.allclose(p, pm, atol=1e-2, rtol=1e-2)

    # Looser check vs. the pure-f32 reference (bf16 matmul operands are the only delta).
    hf, pf = _ref_encoder(x, params, jnp.float32)
    assert jnp.allclose(h, hf, atol=1e-1, rtol=1e-1)
    assert jnp.allclose(p, pf, atol=1e-1, rtol=1e-1)

    print("KERNEL_OK")
</pallas_src>

<mosaic_0001>
module attributes {stable_mosaic.version = 11 : i64} {
  func.func @_conv_bias_stats_kernel(%arg0: i32, %arg1: memref<1x16x16x128xbf16, #tpu.memory_space<vmem>>, %arg2: memref<1152x128xbf16, #tpu.memory_space<vmem>>, %arg3: memref<1x128xf32, #tpu.memory_space<vmem>>, %arg4: memref<1x16x16x128xf32, #tpu.memory_space<vmem>>, %arg5: memref<1x2x128xf32, #tpu.memory_space<vmem>>, %arg6: memref<18x18x128xbf16, #tpu.memory_space<vmem>>) attributes {dimension_semantics = [#tpu.dimension_semantics<parallel>], iteration_bounds = array<i64: 2>, scalar_prefetch = 0 : i64, scratch_operands = 1 : i64, tpu.core_type = #tpu.core_type<tc>, window_params = [{transform_indices = @transform_0, window_bounds = array<i64: 1, 16, 16, 128>}, {pipeline_mode = #tpu.pipeline_mode<synchronous>, transform_indices = @transform_1, window_bounds = array<i64: 1152, 128>}, {pipeline_mode = #tpu.pipeline_mode<synchronous>, transform_indices = @transform_2, window_bounds = array<i64: 1, 128>}, {transform_indices = @transform_3, window_bounds = array<i64: 1, 16, 16, 128>}, {transform_indices = @transform_4, window_bounds = array<i64: 1, 2, 128>}]} {
    %cst = arith.constant 0.000000e+00 : bf16
    %0 = vector.broadcast %cst : bf16 to vector<18x18x128xbf16>
    %c0 = arith.constant 0 : index
    %c0_0 = arith.constant 0 : index
    %c0_1 = arith.constant 0 : index
    %1 = vector.load %arg6[%c0, %c0_0, %c0_1] : memref<18x18x128xbf16, #tpu.memory_space<vmem>>, vector<18x18x128xbf16>
    tpu.vector_store %arg6[%c0, %c0_0, %c0_1], %0 {strides = array<i32>} : memref<18x18x128xbf16, #tpu.memory_space<vmem>>, vector<18x18x128xbf16>,
    %c0_2 = arith.constant 0 : index
    %c0_3 = arith.constant 0 : index
    %c0_4 = arith.constant 0 : index
    %c0_5 = arith.constant 0 : index
    %2 = vector.load %arg1[%c0_2, %c0_3, %c0_4, %c0_5] : memref<1x16x16x128xbf16, #tpu.memory_space<vmem>>, vector<1x16x16x128xbf16>
    %3 = vector.shape_cast %2 : vector<1x16x16x128xbf16> to vector<16x16x128xbf16>
    %c1 = arith.constant 1 : index
    %c1_6 = arith.constant 1 : index
    %c0_7 = arith.constant 0 : index
    %4 = vector.load %arg6[%c1, %c1_6, %c0_7] : memref<18x18x128xbf16, #tpu.memory_space<vmem>>, vector<16x16x128xbf16>
    tpu.vector_store %arg6[%c1, %c1_6, %c0_7], %3 {strides = array<i32>} : memref<18x18x128xbf16, #tpu.memory_space<vmem>>, vector<16x16x128xbf16>,
    %c0_8 = arith.constant 0 : index
    %c0_9 = arith.constant 0 : index
    %c0_10 = arith.constant 0 : index
    %5 = vector.load %arg6[%c0_8, %c0_9, %c0_10] : memref<18x18x128xbf16, #tpu.memory_space<vmem>>, vector<18x18x128xbf16>
    %cst_11 = arith.constant 0.000000e+00 : f32
    %6 = vector.broadcast %cst_11 : f32 to vector<1x128xf32>
    %cst_12 = arith.constant 0.000000e+00 : f32
    %7 = vector.broadcast %cst_12 : f32 to vector<1x128xf32>
    %8 = vector.extract_strided_slice %5 {offsets = [0, 0, 0], sizes = [8, 16, 128], strides = [1, 1, 1]} : vector<18x18x128xbf16> to vector<8x16x128xbf16>
    %9 = vector.extract_strided_slice %5 {offsets = [0, 1, 0], sizes = [8, 16, 128], strides = [1, 1, 1]} : vector<18x18x128xbf16> to vector<8x16x128xbf16>
    %10 = vector.extract_strided_slice %5 {offsets = [0, 2, 0], sizes = [8, 16, 128], strides = [1, 1, 1]} : vector<18x18x128xbf16> to vector<8x16x128xbf16>
    %11 = vector.extract_strided_slice %5 {offsets = [1, 0, 0], sizes = [8, 16, 128], strides = [1, 1, 1]} : vector<18x18x128xbf16> to vector<8x16x128xbf16>
    %12 = vector.extract_strided_slice %5 {offsets = [1, 1, 0], sizes = [8, 16, 128], strides = [1, 1, 1]} : vector<18x18x128xbf16> to vector<8x16x128xbf16>
    %13 = vector.extract_strided_slice %5 {offsets = [1, 2, 0], sizes = [8, 16, 128], strides = [1, 1, 1]} : vector<18x18x128xbf16> to vector<8x16x128xbf16>
    %14 = vector.extract_strided_slice %5 {offsets = [2, 0, 0], sizes = [8, 16, 128], strides = [1, 1, 1]} : vector<18x18x128xbf16> to vector<8x16x128xbf16>
    %15 = vector.extract_strided_slice %5 {offsets = [2, 1, 0], sizes = [8, 16, 128], strides = [1, 1, 1]} : vector<18x18x128xbf16> to vector<8x16x128xbf16>
    %16 = vector.extract_strided_slice %5 {offsets = [2, 2, 0], sizes = [8, 16, 128], strides = [1, 1, 1]} : vector<18x18x128xbf16> to vector<8x16x128xbf16>
    %17 = tpu.concatenate %8, %9, %10, %11, %12, %13, %14, %15, %16 in 2 : vector<8x16x128xbf16>, vector<8x16x128xbf16>, vector<8x16x128xbf16>, vector<8x16x128xbf16>, vector<8x16x128xbf16>, vector<8x16x128xbf16>, vector<8x16x128xbf16>, vector<8x16x128xbf16>, vector<8x16x128xbf16> -> vector<8x16x1152xbf16>
    %18 = vector.shape_cast %17 : vector<8x16x1152xbf16> to vector<128x1152xbf16>
    %c0_13 = arith.constant 0 : index
    %c0_14 = arith.constant 0 : index
    %19 = vector.load %arg2[%c0_13, %c0_14] : memref<1152x128xbf16, #tpu.memory_space<vmem>>, vector<1152x128xbf16>
    %cst_15 = arith.constant dense<0.000000e+00> : vector<128x128xf32>
    %20 = tpu.matmul %18, %19, %cst_15 {dimension_numbers = #tpu.dot_dimension_numbers<[1], [0], [0], [1], [0, 0, 1, 1], [], []>} : vector<128x1152xbf16>, vector<1152x128xbf16>, vector<128x128xf32> -> vector<128x128xf32>
    %c0_16 = arith.constant 0 : index
    %c0_17 = arith.constant 0 : index
    %21 = vector.load %arg3[%c0_16, %c0_17] : memref<1x128xf32, #tpu.memory_space<vmem>>, vector<1x128xf32>
    %22 = vector.broadcast %21 : vector<1x128xf32> to vector<128x128xf32>
    %23 = arith.addf %20, %22 : vector<128x128xf32>
    %24 = vector.shape_cast %23 : vector<128x128xf32> to vector<8x16x128xf32>
    %c0_18 = arith.constant 0 : index
    %c0_19 = arith.constant 0 : index
    %c0_20 = arith.constant 0 : index
    %c0_21 = arith.constant 0 : index
    %25 = vector.load %arg4[%c0_18, %c0_19, %c0_20, %c0_21] : memref<1x16x16x128xf32, #tpu.memory_space<vmem>>, vector<1x8x16x128xf32>
    %26 = vector.shape_cast %25 : vector<1x8x16x128xf32> to vector<8x16x128xf32>
    %27 = vector.shape_cast %24 : vector<8x16x128xf32> to vector<1x8x16x128xf32>
    tpu.vector_store %arg4[%c0_18, %c0_19, %c0_20, %c0_21], %27 {strides = array<i32>} : memref<1x16x16x128xf32, #tpu.memory_space<vmem>>, vector<1x8x16x128xf32>,
    %cst_22 = arith.constant dense<0.000000e+00> : vector<128xf32>
    %28 = vector.multi_reduction <add>, %23, %cst_22 [0] : vector<128x128xf32> to vector<128xf32>
    %29 = vector.shape_cast %28 : vector<128xf32> to vector<1x128xf32>
    %30 = arith.addf %6, %29 : vector<1x128xf32>
    %31 = arith.mulf %23, %23 : vector<128x128xf32>
    %cst_23 = arith.constant dense<0.000000e+00> : vector<128xf32>
    %32 = vector.multi_reduction <add>, %31, %cst_23 [0] : vector<128x128xf32> to vector<128xf32>
    %33 = vector.shape_cast %32 : vector<128xf32> to vector<1x128xf32>
    %34 = arith.addf %7, %33 : vector<1x128xf32>
    %35 = vector.extract_strided_slice %5 {offsets = [8, 0, 0], sizes = [8, 16, 128], strides = [1, 1, 1]} : vector<18x18x128xbf16> to vector<8x16x128xbf16>
    %36 = vector.extract_strided_slice %5 {offsets = [8, 1, 0], sizes = [8, 16, 128], strides = [1, 1, 1]} : vector<18x18x128xbf16> to vector<8x16x128xbf16>
    %37 = vector.extract_strided_slice %5 {offsets = [8, 2, 0], sizes = [8, 16, 128], strides = [1, 1, 1]} : vector<18x18x128xbf16> to vector<8x16x128xbf16>
    %38 = vector.extract_strided_slice %5 {offsets = [9, 0, 0], sizes = [8, 16, 128], strides = [1, 1, 1]} : vector<18x18x128xbf16> to vector<8x16x128xbf16>
    %39 = vector.extract_strided_slice %5 {offsets = [9, 1, 0], sizes = [8, 16, 128], strides = [1, 1, 1]} : vector<18x18x128xbf16> to vector<8x16x128xbf16>
    %40 = vector.extract_strided_slice %5 {offsets = [9, 2, 0], sizes = [8, 16, 128], strides = [1, 1, 1]} : vector<18x18x128xbf16> to vector<8x16x128xbf16>
    %41 = vector.extract_strided_slice %5 {offsets = [10, 0, 0], sizes = [8, 16, 128], strides = [1, 1, 1]} : vector<18x18x128xbf16> to vector<8x16x128xbf16>
    %42 = vector.extract_strided_slice %5 {offsets = [10, 1, 0], sizes = [8, 16, 128], strides = [1, 1, 1]} : vector<18x18x128xbf16> to vector<8x16x128xbf16>
    %43 = vector.extract_strided_slice %5 {offsets = [10, 2, 0], sizes = [8, 16, 128], strides = [1, 1, 1]} : vector<18x18x128xbf16> to vector<8x16x128xbf16>
    %44 = tpu.concatenate %35, %36, %37, %38, %39, %40, %41, %42, %43 in 2 : vector<8x16x128xbf16>, vector<8x16x128xbf16>, vector<8x16x128xbf16>, vector<8x16x128xbf16>, vector<8x16x128xbf16>, vector<8x16x128xbf16>, vector<8x16x128xbf16>, vector<8x16x128xbf16>, vector<8x16x128xbf16> -> vector<8x16x1152xbf16>
    %45 = vector.shape_cast %44 : vector<8x16x1152xbf16> to vector<128x1152xbf16>
    %c0_24 = arith.constant 0 : index
    %c0_25 = arith.constant 0 : index
    %46 = vector.load %arg2[%c0_24, %c0_25] : memref<1152x128xbf16, #tpu.memory_space<vmem>>, vector<1152x128xbf16>
    %cst_26 = arith.constant dense<0.000000e+00> : vector<128x128xf32>
    %47 = tpu.matmul %45, %46, %cst_26 {dimension_numbers = #tpu.dot_dimension_numbers<[1], [0], [0], [1], [0, 0, 1, 1], [], []>} : vector<128x1152xbf16>, vector<1152x128xbf16>, vector<128x128xf32> -> vector<128x128xf32>
    %c0_27 = arith.constant 0 : index
    %c0_28 = arith.constant 0 : index
    %48 = vector.load %arg3[%c0_27, %c0_28] : memref<1x128xf32, #tpu.memory_space<vmem>>, vector<1x128xf32>
    %49 = vector.broadcast %48 : vector<1x128xf32> to vector<128x128xf32>
    %50 = arith.addf %47, %49 : vector<128x128xf32>
    %51 = vector.shape_cast %50 : vector<128x128xf32> to vector<8x16x128xf32>
    %c0_29 = arith.constant 0 : index
    %c8 = arith.constant 8 : index
    %c0_30 = arith.constant 0 : index
    %c0_31 = arith.constant 0 : index
    %52 = vector.load %arg4[%c0_29, %c8, %c0_30, %c0_31] : memref<1x16x16x128xf32, #tpu.memory_space<vmem>>, vector<1x8x16x128xf32>
    %53 = vector.shape_cast %52 : vector<1x8x16x128xf32> to vector<8x16x128xf32>
    %54 = vector.shape_cast %51 : vector<8x16x128xf32> to vector<1x8x16x128xf32>
    tpu.vector_store %arg4[%c0_29, %c8, %c0_30, %c0_31], %54 {strides = array<i32>} : memref<1x16x16x128xf32, #tpu.memory_space<vmem>>, vector<1x8x16x128xf32>,
    %cst_32 = arith.constant dense<0.000000e+00> : vector<128xf32>
    %55 = vector.multi_reduction <add>, %50, %cst_32 [0] : vector<128x128xf32> to vector<128xf32>
    %56 = vector.shape_cast %55 : vector<128xf32> to vector<1x128xf32>
    %57 = arith.addf %30, %56 : vector<1x128xf32>
    %58 = arith.mulf %50, %50 : vector<128x128xf32>
    %cst_33 = arith.constant dense<0.000000e+00> : vector<128xf32>
    %59 = vector.multi_reduction <add>, %58, %cst_33 [0] : vector<128x128xf32> to vector<128xf32>
    %60 = vector.shape_cast %59 : vector<128xf32> to vector<1x128xf32>
    %61 = arith.addf %34, %60 : vector<1x128xf32>
    %62 = tpu.concatenate %57, %61 in 0 : vector<1x128xf32>, vector<1x128xf32> -> vector<2x128xf32>
    %c0_34 = arith.constant 0 : index
    %c0_35 = arith.constant 0 : index
    %c0_36 = arith.constant 0 : index
    %63 = vector.load %arg5[%c0_34, %c0_35, %c0_36] : memref<1x2x128xf32, #tpu.memory_space<vmem>>, vector<1x2x128xf32>
    %64 = vector.shape_cast %63 : vector<1x2x128xf32> to vector<2x128xf32>
    %65 = vector.shape_cast %62 : vector<2x128xf32> to vector<1x2x128xf32>
    tpu.vector_store %arg5[%c0_34, %c0_35, %c0_36], %65 {strides = array<i32>} : memref<1x2x128xf32, #tpu.memory_space<vmem>>, vector<1x2x128xf32>,
    return
  }
  func.func @transform_0(%arg0: i32) -> (i32, i32, i32, i32) {
    %c0_i32 = arith.constant 0 : i32
    %c0_i32_0 = arith.constant 0 : i32
    %c0_i32_1 = arith.constant 0 : i32
    %c0_i32_2 = arith.constant 0 : i32
    return %arg0, %c0_i32, %c0_i32_0, %c0_i32_1 : i32, i32, i32, i32
  }
  func.func @transform_1(%arg0: i32) -> (i32, i32) {
    %c0_i32 = arith.constant 0 : i32
    %c0_i32_0 = arith.constant 0 : i32
    %c0_i32_1 = arith.constant 0 : i32
    return %c0_i32, %c0_i32_0 : i32, i32
  }
  func.func @transform_2(%arg0: i32) -> (i32, i32) {
    %c0_i32 = arith.constant 0 : i32
    %c0_i32_0 = arith.constant 0 : i32
    %c0_i32_1 = arith.constant 0 : i32
    return %c0_i32, %c0_i32_0 : i32, i32
  }
  func.func @transform_3(%arg0: i32) -> (i32, i32, i32, i32) {
    %c0_i32 = arith.constant 0 : i32
    %c0_i32_0 = arith.constant 0 : i32
    %c0_i32_1 = arith.constant 0 : i32
    %c0_i32_2 = arith.constant 0 : i32
    return %arg0, %c0_i32, %c0_i32_0, %c0_i32_1 : i32, i32, i32, i32
  }
  func.func @transform_4(%arg0: i32) -> (i32, i32, i32) {
    %c0_i32 = arith.constant 0 : i32
    %c0_i32_0 = arith.constant 0 : i32
    %c0_i32_1 = arith.constant 0 : i32
    return %arg0, %c0_i32, %c0_i32_0 : i32, i32, i32
  }
}

module attributes {stable_mosaic.version = 11 : i64} {
  func.func @_bn_relu_kernel(%arg0: i32, %arg1: i32, %arg2: memref<1x8x16x128xf32, #tpu.memory_space<vmem>>, %arg3: memref<1x128xf32, #tpu.memory_space<vmem>>, %arg4: memref<1x128xf32, #tpu.memory_space<vmem>>, %arg5: memref<1x8x16x128xbf16, #tpu.memory_space<vmem>>) attributes {dimension_semantics = [#tpu.dimension_semantics<parallel>, #tpu.dimension_semantics<parallel>], iteration_bounds = array<i64: 2, 2>, scalar_prefetch = 0 : i64, scratch_operands = 0 : i64, tpu.core_type = #tpu.core_type<tc>, window_params = [{transform_indices = @transform_0, window_bounds = array<i64: 1, 8, 16, 128>}, {pipeline_mode = #tpu.pipeline_mode<synchronous>, transform_indices = @transform_1, window_bounds = array<i64: 1, 128>}, {pipeline_mode = #tpu.pipeline_mode<synchronous>, transform_indices = @transform_2, window_bounds = array<i64: 1, 128>}, {transform_indices = @transform_3, window_bounds = array<i64: 1, 8, 16, 128>}]} {
    %c0 = arith.constant 0 : index
    %c0_0 = arith.constant 0 : index
    %c0_1 = arith.constant 0 : index
    %c0_2 = arith.constant 0 : index
    %0 = vector.load %arg2[%c0, %c0_0, %c0_1, %c0_2] : memref<1x8x16x128xf32, #tpu.memory_space<vmem>>, vector<1x8x16x128xf32>
    %c0_3 = arith.constant 0 : index
    %c0_4 = arith.constant 0 : index
    %1 = vector.load %arg3[%c0_3, %c0_4] : memref<1x128xf32, #tpu.memory_space<vmem>>, vector<1x128xf32>
    %2 = vector.shape_cast %1 : vector<1x128xf32> to vector<1x1x1x128xf32>
    %3 = vector.broadcast %2 : vector<1x1x1x128xf32> to vector<1x8x16x128xf32>
    %4 = arith.mulf %0, %3 : vector<1x8x16x128xf32>
    %c0_5 = arith.constant 0 : index
    %c0_6 = arith.constant 0 : index
    %5 = vector.load %arg4[%c0_5, %c0_6] : memref<1x128xf32, #tpu.memory_space<vmem>>, vector<1x128xf32>
    %6 = vector.shape_cast %5 : vector<1x128xf32> to vector<1x1x1x128xf32>
    %7 = vector.broadcast %6 : vector<1x1x1x128xf32> to vector<1x8x16x128xf32>
    %8 = arith.addf %4, %7 : vector<1x8x16x128xf32>
    %cst = arith.constant 0.000000e+00 : f32
    %9 = vector.broadcast %cst : f32 to vector<1x8x16x128xf32>
    %10 = arith.maximumf %8, %9 : vector<1x8x16x128xf32>
    %11 = arith.truncf %10 : vector<1x8x16x128xf32> to vector<1x8x16x128xbf16>
    %c0_7 = arith.constant 0 : index
    %c0_8 = arith.constant 0 : index
    %c0_9 = arith.constant 0 : index
    %c0_10 = arith.constant 0 : index
    %12 = vector.load %arg5[%c0_7, %c0_8, %c0_9, %c0_10] : memref<1x8x16x128xbf16, #tpu.memory_space<vmem>>, vector<1x8x16x128xbf16>
    tpu.vector_store %arg5[%c0_7, %c0_8, %c0_9, %c0_10], %11 {strides = array<i32>} : memref<1x8x16x128xbf16, #tpu.memory_space<vmem>>, vector<1x8x16x128xbf16>,
    return
  }
  func.func @transform_0(%arg0: i32, %arg1: i32) -> (i32, i32, i32, i32) {
    %c0_i32 = arith.constant 0 : i32
    %c0_i32_0 = arith.constant 0 : i32
    %c0_i32_1 = arith.constant 0 : i32
    return %arg0, %arg1, %c0_i32, %c0_i32_0 : i32, i32, i32, i32
  }
  func.func @transform_1(%arg0: i32, %arg1: i32) -> (i32, i32) {
    %c0_i32 = arith.constant 0 : i32
    %c0_i32_0 = arith.constant 0 : i32
    %c0_i32_1 = arith.constant 0 : i32
    return %c0_i32, %c0_i32_0 : i32, i32
  }
  func.func @transform_2(%arg0: i32, %arg1: i32) -> (i32, i32) {
    %c0_i32 = arith.constant 0 : i32
    %c0_i32_0 = arith.constant 0 : i32
    %c0_i32_1 = arith.constant 0 : i32
    return %c0_i32, %c0_i32_0 : i32, i32
  }
  func.func @transform_3(%arg0: i32, %arg1: i32) -> (i32, i32, i32, i32) {
    %c0_i32 = arith.constant 0 : i32
    %c0_i32_0 = arith.constant 0 : i32
    %c0_i32_1 = arith.constant 0 : i32
    return %arg0, %arg1, %c0_i32, %c0_i32_0 : i32, i32, i32, i32
  }
}

module attributes {stable_mosaic.version = 11 : i64} {
  func.func @_bn_relu_pool_kernel(%arg0: i32, %arg1: i32, %arg2: memref<1x8x16x128xf32, #tpu.memory_space<vmem>>, %arg3: memref<1x128xf32, #tpu.memory_space<vmem>>, %arg4: memref<1x128xf32, #tpu.memory_space<vmem>>, %arg5: memref<1x8x16x128xf32, #tpu.memory_space<vmem>>, %arg6: memref<1x4x8x128xf32, #tpu.memory_space<vmem>>) attributes {dimension_semantics = [#tpu.dimension_semantics<parallel>, #tpu.dimension_semantics<parallel>], iteration_bounds = array<i64: 2, 2>, scalar_prefetch = 0 : i64, scratch_operands = 0 : i64, tpu.core_type = #tpu.core_type<tc>, window_params = [{transform_indices = @transform_0, window_bounds = array<i64: 1, 8, 16, 128>}, {pipeline_mode = #tpu.pipeline_mode<synchronous>, transform_indices = @transform_1, window_bounds = array<i64: 1, 128>}, {pipeline_mode = #tpu.pipeline_mode<synchronous>, transform_indices = @transform_2, window_bounds = array<i64: 1, 128>}, {transform_indices = @transform_3, window_bounds = array<i64: 1, 8, 16, 128>}, {transform_indices = @transform_4, window_bounds = array<i64: 1, 4, 8, 128>}]} {
    %c0 = arith.constant 0 : index
    %c0_0 = arith.constant 0 : index
    %c0_1 = arith.constant 0 : index
    %c0_2 = arith.constant 0 : index
    %0 = vector.load %arg2[%c0, %c0_0, %c0_1, %c0_2] : memref<1x8x16x128xf32, #tpu.memory_space<vmem>>, vector<1x8x16x128xf32>
    %c0_3 = arith.constant 0 : index
    %c0_4 = arith.constant 0 : index
    %1 = vector.load %arg3[%c0_3, %c0_4] : memref<1x128xf32, #tpu.memory_space<vmem>>, vector<1x128xf32>
    %2 = vector.shape_cast %1 : vector<1x128xf32> to vector<1x1x1x128xf32>
    %3 = vector.broadcast %2 : vector<1x1x1x128xf32> to vector<1x8x16x128xf32>
    %4 = arith.mulf %0, %3 : vector<1x8x16x128xf32>
    %c0_5 = arith.constant 0 : index
    %c0_6 = arith.constant 0 : index
    %5 = vector.load %arg4[%c0_5, %c0_6] : memref<1x128xf32, #tpu.memory_space<vmem>>, vector<1x128xf32>
    %6 = vector.shape_cast %5 : vector<1x128xf32> to vector<1x1x1x128xf32>
    %7 = vector.broadcast %6 : vector<1x1x1x128xf32> to vector<1x8x16x128xf32>
    %8 = arith.addf %4, %7 : vector<1x8x16x128xf32>
    %cst = arith.constant 0.000000e+00 : f32
    %9 = vector.broadcast %cst : f32 to vector<1x8x16x128xf32>
    %10 = arith.maximumf %8, %9 : vector<1x8x16x128xf32>
    %c0_7 = arith.constant 0 : index
    %c0_8 = arith.constant 0 : index
    %c0_9 = arith.constant 0 : index
    %c0_10 = arith.constant 0 : index
    %11 = vector.load %arg5[%c0_7, %c0_8, %c0_9, %c0_10] : memref<1x8x16x128xf32, #tpu.memory_space<vmem>>, vector<1x8x16x128xf32>
    tpu.vector_store %arg5[%c0_7, %c0_8, %c0_9, %c0_10], %10 {strides = array<i32>} : memref<1x8x16x128xf32, #tpu.memory_space<vmem>>, vector<1x8x16x128xf32>,
    %12 = vector.shape_cast %10 : vector<1x8x16x128xf32> to vector<1x4x2x16x128xf32>
    %13 = vector.extract_strided_slice %12 {offsets = [0, 0, 0, 0, 0], sizes = [1, 4, 1, 16, 128], strides = [1, 1, 1, 1, 1]} : vector<1x4x2x16x128xf32> to vector<1x4x1x16x128xf32>
    %14 = vector.shape_cast %13 : vector<1x4x1x16x128xf32> to vector<1x4x16x128xf32>
    %15 = vector.extract_strided_slice %12 {offsets = [0, 0, 1, 0, 0], sizes = [1, 4, 1, 16, 128], strides = [1, 1, 1, 1, 1]} : vector<1x4x2x16x128xf32> to vector<1x4x1x16x128xf32>
    %16 = vector.shape_cast %15 : vector<1x4x1x16x128xf32> to vector<1x4x16x128xf32>
    %17 = arith.maximumf %14, %16 : vector<1x4x16x128xf32>
    %18 = vector.shape_cast %17 : vector<1x4x16x128xf32> to vector<1x4x8x2x128xf32>
    %19 = vector.extract_strided_slice %18 {offsets = [0, 0, 0, 0, 0], sizes = [1, 4, 8, 1, 128], strides = [1, 1, 1, 1, 1]} : vector<1x4x8x2x128xf32> to vector<1x4x8x1x128xf32>
    %20 = vector.shape_cast %19 : vector<1x4x8x1x128xf32> to vector<1x4x8x128xf32>
    %21 = vector.extract_strided_slice %18 {offsets = [0, 0, 0, 1, 0], sizes = [1, 4, 8, 1, 128], strides = [1, 1, 1, 1, 1]} : vector<1x4x8x2x128xf32> to vector<1x4x8x1x128xf32>
    %22 = vector.shape_cast %21 : vector<1x4x8x1x128xf32> to vector<1x4x8x128xf32>
    %23 = arith.maximumf %20, %22 : vector<1x4x8x128xf32>
    %c0_11 = arith.constant 0 : index
    %c0_12 = arith.constant 0 : index
    %c0_13 = arith.constant 0 : index
    %c0_14 = arith.constant 0 : index
    %24 = vector.load %arg6[%c0_11, %c0_12, %c0_13, %c0_14] : memref<1x4x8x128xf32, #tpu.memory_space<vmem>>, vector<1x4x8x128xf32>
    tpu.vector_store %arg6[%c0_11, %c0_12, %c0_13, %c0_14], %23 {strides = array<i32>} : memref<1x4x8x128xf32, #tpu.memory_space<vmem>>, vector<1x4x8x128xf32>,
    return
  }
  func.func @transform_0(%arg0: i32, %arg1: i32) -> (i32, i32, i32, i32) {
    %c0_i32 = arith.constant 0 : i32
    %c0_i32_0 = arith.constant 0 : i32
    %c0_i32_1 = arith.constant 0 : i32
    return %arg0, %arg1, %c0_i32, %c0_i32_0 : i32, i32, i32, i32
  }
  func.func @transform_1(%arg0: i32, %arg1: i32) -> (i32, i32) {
    %c0_i32 = arith.constant 0 : i32
    %c0_i32_0 = arith.constant 0 : i32
    %c0_i32_1 = arith.constant 0 : i32
    return %c0_i32, %c0_i32_0 : i32, i32
  }
  func.func @transform_2(%arg0: i32, %arg1: i32) -> (i32, i32) {
    %c0_i32 = arith.constant 0 : i32
    %c0_i32_0 = arith.constant 0 : i32
    %c0_i32_1 = arith.constant 0 : i32
    return %c0_i32, %c0_i32_0 : i32, i32
  }
  func.func @transform_3(%arg0: i32, %arg1: i32) -> (i32, i32, i32, i32) {
    %c0_i32 = arith.constant 0 : i32
    %c0_i32_0 = arith.constant 0 : i32
    %c0_i32_1 = arith.constant 0 : i32
    return %arg0, %arg1, %c0_i32, %c0_i32_0 : i32, i32, i32, i32
  }
  func.func @transform_4(%arg0: i32, %arg1: i32) -> (i32, i32, i32, i32) {
    %c0_i32 = arith.constant 0 : i32
    %c0_i32_0 = arith.constant 0 : i32
    %c0_i32_1 = arith.constant 0 : i32
    return %arg0, %arg1, %c0_i32, %c0_i32_0 : i32, i32, i32, i32
  }
}

</mosaic_0001>

<bundles_post_ra>
// kernel: encoder_block.5
= control target key start
LH: loop header
LB: loop body
LE: loop exit
PB: predicated region body
PF: predicated region fallthrough
CT: control target
= control target key end

     0   :  { %s582_s12 = smov 0   ;;  %s584_s13 = smov 0   ;;  %s707_s0 = inlined_call_operand.vmem [shape: f32[2,16,16,128], index: 0, kind: input, shape index: {}]   ;;  %s708_s1 = inlined_call_operand.vmem [shape: f32[1,128], index: 1, kind: input, shape index: {}]   ;;  %s709_s2 = inlined_call_operand.vmem [shape: f32[1,128], index: 2, kind: input, shape index: {}]   ;;  %s710_s3 = inlined_call_operand.vmem [shape: bf16[2,16,16,128], index: 3, kind: output, shape index: {}]  }
   0x1   :  { %s586_s14 = smov 0   ;;  %s588_s15 = smov 0  }
   0x2   :  { %s590_s16 = smov 0  }
   0x3 LB: > { %s22_s17 = sadd.s32 1, %s552_s14  ;;  %s25_s18 = sadd.s32 1, %s556_s15  ;;  %s560_s16 = sphi %s590_s16, %s13_s16   ;;  %s556_s15 = sphi %s588_s15, %s714_s15   ;;  %s552_s14 = sphi %s586_s14, %s713_s14   ;;  %s548_s13 = sphi %s584_s13, %s712_s13   ;;  %s544_s12 = sphi %s582_s12, %s711_s12  }
   0x4   : > { %p23_p0 = scmp.ge.s32.totalorder %s22_s17, 2  ;;  %p422_p1 = scmp.ge.s32.totalorder %s560_s16, 1 }
   0x5   : > { %p159_p2 = scmp.lt.s32.totalorder %s560_s16, 5 }
   0x6   : > { %s716_s17 = smov (%p23_p0, %s22_s17), 0  ;;  %s718_s18 = smov (!%p23_p0, %s25_s18), %s556_s15 }
   0x7   : > { %p160_p3 = pnand %p422_p1, %p159_p2  ;;  %p27_p4 = scmp.ge.s32.totalorder %s718_s18, 2 }
   0x8   : > { %s423_s19 = sshll.u32 (!%p160_p3), %s544_s12, 3  ;;  %p194_p5 = scmp.lt.s32.totalorder (!%p160_p3), %s548_s13, 1 }
   0x9   : > { %s720_s18 = smov (%p27_p4, %s718_s18), 0  ;;  %163 = sbr.rel (%p160_p3) target bundleno = 40 (0x28), region = 32 }
   0xa   : > { %p196_p6 = scmp.lt.s32.totalorder (!%p160_p3), %s423_s19, 15 }
   0xe   : > { %s722_s13 = smov (!%p194_p5, %s548_s13), 1  ;;  %s724_s19 = smov (!%p196_p6, %s423_s19), 15  ;;  %v617_v0 = vld [vmem:[%s708_s1] ss:$0 sm:$0xff] }
   0xf   : > { %s425_s20 = sshll.u32 %s722_s13, 5  ;;  %s424_s21 = sshll.u32 %s724_s19, 1  ;;  %v628_v1 = vld [vmem:[%s709_s2] ss:$0 sm:$0xff] }
  0x10   : > { %s612_s22 = sadd.s32 %s425_s20, %s424_s21 }
  0x11   : > { %s426_s25 = sshll.u32 %s612_s22, 3  ;;  %s430_s4 = sshll.u32 %s612_s22, 2 }
  0x12   : > { %s623_s28 = scalar_lea.vmem %s707_s0, %s426_s25  ;;  %s660_s7 = scalar_lea.vmem %s710_s3, %s430_s4 }
  0x13   : > { %v215_v2 = vld [vmem:[%s623_s28] sm:$0xff]  ;;  %v216_v3 = vld [vmem:[%s623_s28 + $0x8] sm:$0xff]  ;;  %v217_v4 = vld [vmem:[%s623_s28 + $0x10] sm:$0xff] }
  0x14   : > { %v235_v5 = vmul.f32 %v617_v0, %v215_v2  ;;  %v236_v6 = vmul.f32 %v617_v0, %v216_v3  ;;  %v218_v7 = vld [vmem:[%s623_s28 + $0x18] sm:$0xff]  ;;  %v237_v8 = vmul.f32 %v617_v0, %v217_v4  ;;  %v219_v9 = vld [vmem:[%s623_s28 + $0x20] sm:$0xff]  ;;  %v220_v10 = vld [vmem:[%s623_s28 + $0x28] sm:$0xff] }
  0x15   : > { %v238_v11 = vmul.f32 %v617_v0, %v218_v7  ;;  %v239_v12 = vmul.f32 %v617_v0, %v219_v9  ;;  %v240_v13 = vmul.f32 %v617_v0, %v220_v10  ;;  %v221_v14 = vld [vmem:[%s623_s28 + $0x30] sm:$0xff]  ;;  %v222_v15 = vld [vmem:[%s623_s28 + $0x38] sm:$0xff]  ;;  %v223_v24 = vld [vmem:[%s623_s28 + $0x40] sm:$0xff] }
  0x16   : > { %v255_v16 = vadd.f32 %v628_v1, %v235_v5  ;;  %v256_v17 = vadd.f32 %v628_v1, %v236_v6  ;;  %v257_v18 = vadd.f32 %v628_v1, %v237_v8  ;;  %v241_v19 = vmul.f32 %v617_v0, %v221_v14  ;;  %v224_v25 = vld [vmem:[%s623_s28 + $0x48] sm:$0xff]  ;;  %v225_v30 = vld [vmem:[%s623_s28 + $0x50] sm:$0xff]  ;;  %v226_v35 = vld [vmem:[%s623_s28 + $0x58] sm:$0xff] }
  0x17   : > { %v258_v20 = vadd.f32 %v628_v1, %v238_v11  ;;  %v259_v21 = vadd.f32 %v628_v1, %v239_v12  ;;  %v260_v22 = vadd.f32 %v628_v1, %v240_v13  ;;  %v242_v23 = vmul.f32 %v617_v0, %v222_v15  ;;  %v227_v36 = vld [vmem:[%s623_s28 + $0x60] sm:$0xff]  ;;  %v228_v41 = vld [vmem:[%s623_s28 + $0x68] sm:$0xff]  ;;  %v229_v42 = vld [vmem:[%s623_s28 + $0x70] sm:$0xff] }
  0x18   : > { %v271_v26 = vmax.f32 %v255_v16, 0.0  ;;  %v272_v27 = vmax.f32 %v256_v17, 0.0  ;;  %v273_v28 = vmax.f32 %v257_v18, 0.0  ;;  %v261_v29 = vadd.f32 %v628_v1, %v241_v19  ;;  %v230_v51 = vld [vmem:[%s623_s28 + $0x78] sm:$0xff] }
  0x19   : > { %v274_v31 = vmax.f32 %v258_v20, 0.0  ;;  %v275_v32 = vmax.f32 %v259_v21, 0.0  ;;  %v276_v33 = vmax.f32 %v260_v22, 0.0  ;;  %v262_v34 = vadd.f32 %v628_v1, %v242_v23 }
  0x1a   : > { %v436_v37 = vpack.c.bf16 %v272_v27, %v271_v26  ;;  %v277_v38 = vmax.f32 %v261_v29, 0.0  ;;  %v243_v39 = vmul.f32 %v617_v0, %v223_v24  ;;  %v244_v40 = vmul.f32 %v617_v0, %v224_v25 }
  0x1b   : > { %v441_v43 = vpack.c.bf16 %v274_v31, %v273_v28  ;;  %v446_v44 = vpack.c.bf16 %v276_v33, %v275_v32  ;;  %v278_v45 = vmax.f32 %v262_v34, 0.0  ;;  %v245_v46 = vmul.f32 %v617_v0, %v225_v30 }
  0x1c   : > { %437 = vst [vmem:[%s660_s7] sm:$0xff] %v436_v37   ;;  %v263_v47 = vadd.f32 %v628_v1, %v243_v39  ;;  %v264_v48 = vadd.f32 %v628_v1, %v244_v40  ;;  %v246_v49 = vmul.f32 %v617_v0, %v226_v35  ;;  %v247_v50 = vmul.f32 %v617_v0, %v227_v36 }
  0x1d   : > { %473 = vst [vmem:[%s660_s7 + $0x8] sm:$0xff] %v441_v43   ;;  %v451_v52 = vpack.c.bf16 %v278_v45, %v277_v38  ;;  %v265_v53 = vadd.f32 %v628_v1, %v245_v46  ;;  %v248_v54 = vmul.f32 %v617_v0, %v228_v41  ;;  %v249_v55 = vmul.f32 %v617_v0, %v229_v42 }
  0x1e   : > { %474 = vst [vmem:[%s660_s7 + $0x10] sm:$0xff] %v446_v44   ;;  %v279_v56 = vmax.f32 %v263_v47, 0.0  ;;  %v280_v57 = vmax.f32 %v264_v48, 0.0  ;;  %v266_v58 = vadd.f32 %v628_v1, %v246_v49  ;;  %v267_v59 = vadd.f32 %v628_v1, %v247_v50 }
  0x1f   : > { %475 = vst [vmem:[%s660_s7 + $0x18] sm:$0xff] %v451_v52   ;;  %v281_v60 = vmax.f32 %v265_v53, 0.0  ;;  %v268_v61 = vadd.f32 %v628_v1, %v248_v54  ;;  %v250_v62 = vmul.f32 %v617_v0, %v230_v51  ;;  %v269_v63 = vadd.f32 %v628_v1, %v249_v55 }
  0x20   : > { %v456_v2 = vpack.c.bf16 %v280_v57, %v279_v56  ;;  %v282_v3 = vmax.f32 %v266_v58, 0.0  ;;  %v283_v4 = vmax.f32 %v267_v59, 0.0 }
  0x21   : > { %v284_v5 = vmax.f32 %v268_v61, 0.0  ;;  %v270_v6 = vadd.f32 %v628_v1, %v250_v62  ;;  %v285_v7 = vmax.f32 %v269_v63, 0.0 }
  0x22   : > { %476 = vst [vmem:[%s660_s7 + $0x20] sm:$0xff] %v456_v2   ;;  %v461_v8 = vpack.c.bf16 %v282_v3, %v281_v60 }
  0x23   : > { %v466_v9 = vpack.c.bf16 %v284_v5, %v283_v4  ;;  %v286_v10 = vmax.f32 %v270_v6, 0.0 }
  0x24   : > { %477 = vst [vmem:[%s660_s7 + $0x28] sm:$0xff] %v461_v8  }
  0x25   : > { %478 = vst [vmem:[%s660_s7 + $0x30] sm:$0xff] %v466_v9   ;;  %v471_v11 = vpack.c.bf16 %v286_v10, %v285_v7 }
  0x27   : > { %479 = vst [vmem:[%s660_s7 + $0x38] sm:$0xff] %v471_v11  }
  0x28 PF: > { %s13_s16 = sadd.s32 1, %s560_s16   ;;  %s711_s12 = smov %s552_s14 }
  0x29   : > { %p10_p7 = scmp.ge.s32.totalorder %s13_s16, 6   ;;  %s712_s13 = smov %s556_s15 }
  0x2a   : > { %s713_s14 = smov %s716_s17  ;;  %s714_s15 = smov %s720_s18 }
  0x2b   :  { %12 = sbr.rel (!%p10_p7) target bundleno = 3 (0x3), region = 62 }

// kernel: encoder_block.7
= control target key start
LH: loop header
LB: loop body
LE: loop exit
PB: predicated region body
PF: predicated region fallthrough
CT: control target
= control target key end

     0   :  { %10 = vsyncpa [#allocation3], 0  ;;  %s1314_s0 = inlined_call_operand.vmem [shape: f32[2,16,16,128], index: 0, kind: input, shape index: {}]   ;;  %s1315_s1 = inlined_call_operand.vmem [shape: f32[1,128], index: 1, kind: input, shape index: {}]   ;;  %s1316_s2 = inlined_call_operand.vmem [shape: f32[1,128], index: 2, kind: input, shape index: {}]   ;;  %s1317_s3 = inlined_call_operand.vmem [shape: f32[2,16,16,128], index: 3, kind: output, shape index: {0}]   ;;  %s1318_s4 = inlined_call_operand.hbm [shape: f32[2,8,8,128], index: 4, kind: output, shape index: {1}]  }
   0x1   :  { %12 = vsyncpa [#allocation3 + $0x1], 0  ;;  %s1052_s15 = smov 0   ;;  %s1054_s16 = smov 0  }
   0x2   :  { %s1056_s17 = smov 0   ;;  %s1058_s18 = smov 0  }
   0x3   :  { %s1060_s19 = smov 0   ;;  %s1062_s20 = smov 0  }
   0x4   :  { %s1064_s21 = smov 0   ;;  %s1066_s22 = smov 0  }
   0x5 LB: > { %s802_s23 = sadd.s32 4294967295, %s1023_s22   ;;  %s803_s24 = sadd.s32 4294967294, %s1023_s22   ;;  %s1023_s22 = sphi %s1066_s22, %s18_s22   ;;  %s1019_s21 = sphi %s1064_s21, %s1327_s21   ;;  %s1015_s20 = sphi %s1062_s20, %s1326_s20   ;;  %s1011_s19 = sphi %s1060_s19, %s1325_s19   ;;  %s1007_s18 = sphi %s1058_s18, %s1324_s18   ;;  %s1003_s17 = sphi %s1056_s17, %s1323_s17   ;;  %s999_s16 = sphi %s1054_s16, %s1322_s16   ;;  %s995_s15 = sphi %s1052_s15, %s1321_s15  }
   0x6   : > { %s27_s25 = sadd.s32 1, %s1015_s20  ;;  %s30_s26 = sadd.s32 1, %s1019_s21 }
   0x7   : > { %p28_p0 = scmp.ge.s32.totalorder %s27_s25, 2  ;;  %p147_p1 = scmp.ne.s32.totalorder %s1003_s17, %s999_s16 }
   0x8   : > { %p148_p2 = scmp.eq.s32.totalorder %s802_s23, 3  ;;  %p153_p5 = scmp.ne.s32.totalorder %s999_s16, %s995_s15 }
   0x9   : > { %s1329_s25 = smov (%p28_p0, %s27_s25), 0  ;;  %s1331_s26 = smov (!%p28_p0, %s30_s26), %s1019_s21 }
   0xa   : > { %s133_s27 = ssub.s32 %s1015_s20, %s1329_s25  ;;  %p1103_p3 = por %p148_p2, %p147_p1 }
   0xb   : > { %p32_p4 = scmp.ge.s32.totalorder %s1331_s26, 2  ;;  %p154_p6 = scmp.eq.s32.totalorder %s803_s24, 3 }
   0xc   : > { %p806_p7 = scmp.ge.s32.totalorder %s1023_s22, 1  ;;  %p192_p9 = scmp.lt.s32.totalorder %s1023_s22, 5 }
   0xd   : > { %s1333_s26 = smov (%p32_p4, %s1331_s26), 0  ;;  %p1112_p8 = por %p154_p6, %p153_p5 }
   0xe   : > { %s132_s30 = ssub.s32 %s1019_s21, %s1333_s26  ;;  %s137_s5 = sadd.s32 1, %s1003_s17 }
   0xf   : > { %s134_s6 = sor.u32 %s133_s27, %s132_s30  ;;  %p193_p10 = pnand %p806_p7, %p192_p9 }
  0x10   : > { %p135_p11 = scmp.eq.s32.totalorder %s134_s6, 0  ;;  %s808_s8 = sshll.u32 (!%p193_p10), %s1007_s18, 3 }
  0x11   : > { %196 = sbr.rel (%p193_p10) target bundleno = 91 (0x5b), region = 32  ;;  %p234_p12 = scmp.lt.s32.totalorder (!%p193_p10), %s1011_s19, 1 }
  0x12   : > { %s1121_s7 = scalar_select %p135_p11, %s1003_s17, %s137_s5  }
  0x13   : > { %p236_p13 = scmp.lt.s32.totalorder (!%p193_p10), %s808_s8, 15  ;;  %s849_s14 = sshll.u32 (!%p193_p10), %s1007_s18, 2 }
  0x16   : > { %s235_s9 = scalar_select %p234_p12, %s1011_s19, 1  ;;  %v1131_v0 = vld [vmem:[%s1315_s1] ss:$0 sm:$0xff]  ;;  %vm600_vm0 = vcmask 1041409   ;;  %vm602_vm1 = vcmask 1042434   ;;  %vm604_vm2 = vcmask 1043459  }
  0x17   : > { %s1335_s8 = smov (!%p236_p13, %s808_s8), 15  ;;  %v1142_v1 = vld [vmem:[%s1316_s2] ss:$0 sm:$0xff]  ;;  %vm606_vm3 = vcmask 1044484   ;;  %vm608_vm4 = vcmask 1045509   ;;  %vm610_vm5 = vcmask 1046534  }
  0x18   : > { %s810_s10 = sshll.u32 %s235_s9, 5  ;;  %s809_s11 = sshll.u32 %s1335_s8, 1  ;;  %vm612_vm6 = vcmask 1047559  }
  0x19   : > { %s1126_s12 = sadd.s32 %s810_s10, %s809_s11  ;;  %s230_s11 = sand.u32 1, %s999_s16  }
  0x1a   : > { %s811_s23 = sshll.u32 %s1126_s12, 3  ;;  %s807_s12 = sshll.u32 %s230_s11, 5 }
  0x1b   : > { %s1137_s30 = scalar_lea.vmem %s1314_s0, %s811_s23  ;;  %s1175_s10 = scalar_lea.vmem %s1317_s3, %s811_s23 }
  0x1c   : > { %v256_v2 = vld [vmem:[%s1137_s30] sm:$0xff]  ;;  %v257_v3 = vld [vmem:[%s1137_s30 + $0x8] sm:$0xff]  ;;  %v258_v4 = vld [vmem:[%s1137_s30 + $0x10] sm:$0xff]  ;;  %s1213_s13 = scalar_lea.vmem [#allocation2], %s807_s12  ;;  %s850_s23 = sshll.u32 %s1011_s19, 3 }
  0x1d   : > { %v259_v5 = vld [vmem:[%s1137_s30 + $0x18] sm:$0xff]  ;;  %v276_v6 = vmul.f32 %v1131_v0, %v256_v2  ;;  %v277_v7 = vmul.f32 %v1131_v0, %v257_v3  ;;  %v278_v8 = vmul.f32 %v1131_v0, %v258_v4  ;;  %v260_v9 = vld [vmem:[%s1137_s30 + $0x20] sm:$0xff]  ;;  %v261_v10 = vld [vmem:[%s1137_s30 + $0x28] sm:$0xff]  ;;  %s669_s24 = sadd.s32 %s850_s23, %s849_s14  ;;  %s672_s5 = sshll.u32 %s1213_s13, 4  ;;  %s673_s5 = int_to_ptr.vmem [resolvable:$true] %s672_s5 }
  0x1e   : > { %v279_v11 = vmul.f32 %v1131_v0, %v259_v5  ;;  %v262_v12 = vld [vmem:[%s1137_s30 + $0x30] sm:$0xff]  ;;  %v263_v13 = vld [vmem:[%s1137_s30 + $0x38] sm:$0xff]  ;;  %v280_v14 = vmul.f32 %v1131_v0, %v260_v9  ;;  %v281_v15 = vmul.f32 %v1131_v0, %v261_v10  ;;  %v264_v24 = vld [vmem:[%s1137_s30 + $0x40] sm:$0xff]  ;;  %s851_s18 = sshll.u32 %s669_s24, 3  ;;  %s654_s8 = scalar_lea.sflag [#allocation3], %s230_s11 }
  0x1f   : > { %v296_v16 = vadd.f32 %v1142_v1, %v276_v6  ;;  %v297_v17 = vadd.f32 %v1142_v1, %v277_v7  ;;  %v298_v18 = vadd.f32 %v1142_v1, %v278_v8  ;;  %v282_v19 = vmul.f32 %v1131_v0, %v262_v12  ;;  %v265_v25 = vld [vmem:[%s1137_s30 + $0x48] sm:$0xff]  ;;  %v266_v30 = vld [vmem:[%s1137_s30 + $0x50] sm:$0xff]  ;;  %v267_v31 = vld [vmem:[%s1137_s30 + $0x58] sm:$0xff]  ;;  %s949_s23 = scalar_lea.hbm %s1318_s4, 128 }
  0x20   : > { %v299_v20 = vadd.f32 %v1142_v1, %v279_v11  ;;  %v283_v21 = vmul.f32 %v1131_v0, %v263_v13  ;;  %v1165_v22 = vadd.f32 %v1142_v1, %v280_v14  ;;  %v1168_v23 = vadd.f32 %v1142_v1, %v281_v15 }
  0x21   : > { %v312_v26 = vmax.f32 %v296_v16, 0.0  ;;  %v313_v27 = vmax.f32 %v297_v17, 0.0  ;;  %v314_v28 = vmax.f32 %v298_v18, 0.0  ;;  %v302_v29 = vadd.f32 %v1142_v1, %v282_v19 }
  0x22   : > { %v315_v32 = vmax.f32 %v299_v20, 0.0  ;;  %v303_v33 = vadd.f32 %v1142_v1, %v283_v21  ;;  %v316_v34 = vmax.f32 %v1165_v22, 0.0  ;;  %v317_v35 = vmax.f32 %v1168_v23, 0.0 }
  0x23   : > { %v344_v36 = vmax.f32 %v312_v26, %v314_v28  ;;  %v318_v37 = vmax.f32 %v302_v29, 0.0  ;;  %v1184_v38 = vmul.f32 %v1131_v0, %v264_v24  ;;  %v1187_v39 = vmul.f32 %v1131_v0, %v265_v25  ;;  %328 = vst [vmem:[%s1175_s10] sm:$0xff] %v312_v26 }
  0x24   : > { %v345_v40 = vmax.f32 %v313_v27, %v315_v32  ;;  %v319_v41 = vmax.f32 %v303_v33, 0.0  ;;  %v1191_v42 = vmul.f32 %v1131_v0, %v266_v30  ;;  %v1194_v43 = vmul.f32 %v1131_v0, %v267_v31  ;;  %329 = vst [vmem:[%s1175_s10 + $0x8] sm:$0xff] %v313_v27 }
  0x25   : > { %v360_v44 = vrot.slane %v344_v36, 2  ;;  %v361_v45 = vrot.slane %v344_v36, 4  ;;  %v362_v46 = vrot.slane %v344_v36, 6  ;;  %v816_v47 = vrot.slane %v344_v36, 9  ;;  %330 = vst [vmem:[%s1175_s10 + $0x10] sm:$0xff] %v314_v28 }
  0x26   : > { %v363_v48 = vrot.slane %v345_v40, 2  ;;  %v364_v49 = vrot.slane %v345_v40, 4  ;;  %v365_v50 = vrot.slane %v345_v40, 6  ;;  %v820_v51 = vrot.slane %v345_v40, 9  ;;  %331 = vst [vmem:[%s1175_s10 + $0x18] sm:$0xff] %v315_v32 }
  0x27   : > { %v817_v52 = vrot.slane %v360_v44, 9  ;;  %v818_v53 = vrot.slane %v361_v45, 9  ;;  %v819_v54 = vrot.slane %v362_v46, 9  ;;  %v504_v55 = vmax.f32 %v344_v36, %v816_v47  ;;  %332 = vst [vmem:[%s1175_s10 + $0x20] sm:$0xff] %v316_v34 }
  0x28   : > { %v821_v56 = vrot.slane %v363_v48, 9  ;;  %v822_v57 = vrot.slane %v364_v49, 9  ;;  %v823_v58 = vrot.slane %v365_v50, 9  ;;  %v508_v59 = vmax.f32 %v345_v40, %v820_v51  ;;  %333 = vst [vmem:[%s1175_s10 + $0x28] sm:$0xff] %v317_v35 }
  0x29   : > { %v505_v60 = vmax.f32 %v360_v44, %v817_v52  ;;  %v506_v61 = vmax.f32 %v361_v45, %v818_v53  ;;  %v507_v62 = vmax.f32 %v362_v46, %v819_v54  ;;  %v568_v63 = vperm.slane %v504_v55, 0  ;;  %334 = vst [vmem:[%s1175_s10 + $0x30] sm:$0xff] %v318_v37  ;;  %v269_v55 = vld [vmem:[%s1137_s30 + $0x68] sm:$0xff] }
  0x2a   : > { %v509_v2 = vmax.f32 %v363_v48, %v821_v56  ;;  %v510_v3 = vmax.f32 %v364_v49, %v822_v57  ;;  %v511_v4 = vmax.f32 %v365_v50, %v823_v58  ;;  %v572_v5 = vperm.slane %v508_v59, 0  ;;  %335 = vst [vmem:[%s1175_s10 + $0x38] sm:$0xff] %v319_v41  ;;  %v268_v50 = vld [vmem:[%s1137_s30 + $0x60] sm:$0xff] }
  0x2b   : > { %v569_v6 = vperm.slane %v505_v60, 0  ;;  %v570_v7 = vperm.slane %v506_v61, 0  ;;  %v571_v8 = vperm.slane %v507_v62, 0  ;;  %v346_v9 = vmax.f32 %v316_v34, %v318_v37  ;;  %v270_v60 = vld [vmem:[%s1137_s30 + $0x70] sm:$0xff] }
  0x2c   : > { %v573_v10 = vperm.slane %v509_v2, 0  ;;  %v574_v11 = vperm.slane %v510_v3, 0  ;;  %v575_v12 = vperm.slane %v511_v4, 0  ;;  %v347_v13 = vmax.f32 %v317_v35, %v319_v41  ;;  %v271_v2 = vld [vmem:[%s1137_s30 + $0x78] sm:$0xff]  ;;  %s671_s30 = scalar_lea.hbm %s1318_s4, %s851_s18 }
  0x2d   : > { %v601_v14 = vsel %vm600_vm0, %v569_v6, %v568_v63  ;;  %v366_v15 = vrot.slane %v346_v9, 2  ;;  %v367_v16 = vrot.slane %v346_v9, 4  ;;  %v368_v17 = vrot.slane %v346_v9, 6  ;;  %s674_s6 = sshll.u32 %s671_s30, 4  ;;  %s675_s6 = int_to_ptr.hbm [resolvable:$true] %s674_s6 }
  0x2e   : > { %v603_v18 = vsel %vm602_vm1, %v570_v7, %v601_v14  ;;  %v369_v19 = vrot.slane %v347_v13, 2  ;;  %v370_v20 = vrot.slane %v347_v13, 4  ;;  %v371_v21 = vrot.slane %v347_v13, 6  ;;  %s943_s9 = sshra.s32 %s675_s6, 4  ;;  %s944_s9 = int_to_ptr.hbm [resolvable:$true] %s943_s9 }
  0x2f   : > { %v605_v22 = vsel %vm604_vm2, %v571_v8, %v603_v18  ;;  %v824_v23 = vrot.slane %v346_v9, 9  ;;  %v825_v24 = vrot.slane %v366_v15, 9  ;;  %v826_v25 = vrot.slane %v367_v16, 9  ;;  %p950_p4 = scmp.lt.s32.totalorder %s944_s9, %s1318_s4 }
  0x30   : > { %v607_v26 = vsel %vm606_vm3, %v572_v5, %v605_v22  ;;  %v827_v27 = vrot.slane %v368_v17, 9  ;;  %v828_v28 = vrot.slane %v347_v13, 9  ;;  %v829_v29 = vrot.slane %v369_v19, 9 }
  0x31   : > { %v609_v30 = vsel %vm608_vm4, %v573_v10, %v607_v26  ;;  %v830_v31 = vrot.slane %v370_v20, 9  ;;  %v831_v32 = vrot.slane %v371_v21, 9  ;;  %v512_v33 = vmax.f32 %v346_v9, %v824_v23 }
  0x32   : > { %v611_v34 = vsel %vm610_vm5, %v574_v11, %v609_v30  ;;  %v513_v35 = vmax.f32 %v366_v15, %v825_v24  ;;  %v514_v36 = vmax.f32 %v367_v16, %v826_v25  ;;  %v515_v37 = vmax.f32 %v368_v17, %v827_v27 }
  0x33   : > { %v613_v40 = vsel %vm612_vm6, %v575_v12, %v611_v34  ;;  %v516_v41 = vmax.f32 %v347_v13, %v828_v28  ;;  %v517_v44 = vmax.f32 %v369_v19, %v829_v29  ;;  %v518_v45 = vmax.f32 %v370_v20, %v830_v31 }
  0x34   : > { %639 = vst [vmem:[%s1213_s13] sm:$0xff] %v613_v40  ;;  %v519_v46 = vmax.f32 %v371_v21, %v831_v32  ;;  %v576_v47 = vperm.slane %v512_v33, 0  ;;  %v577_v48 = vperm.slane %v513_v35, 0  ;;  %v578_v49 = vperm.slane %v514_v36, 0 }
  0x35   : > { %v579_v51 = vperm.slane %v515_v37, 0  ;;  %v580_v52 = vperm.slane %v516_v41, 0  ;;  %v581_v53 = vperm.slane %v517_v44, 0  ;;  %v582_v54 = vperm.slane %v518_v45, 0 }
  0x36   : > { %v583_v56 = vperm.slane %v519_v46, 0  ;;  %v614_v57 = vsel %vm600_vm0, %v577_v48, %v576_v47  ;;  %v304_v58 = vadd.f32 %v1142_v1, %v1184_v38  ;;  %v305_v59 = vadd.f32 %v1142_v1, %v1187_v39 }
  0x37   : > { %v615_v61 = vsel %vm602_vm1, %v578_v49, %v614_v57  ;;  %v306_v62 = vadd.f32 %v1142_v1, %v1191_v42  ;;  %v307_v63 = vadd.f32 %v1142_v1, %v1194_v43  ;;  %v288_v3 = vmul.f32 %v1131_v0, %v268_v50 }
  0x38   : > { %v616_v4 = vsel %vm604_vm2, %v579_v51, %v615_v61  ;;  %v320_v5 = vmax.f32 %v304_v58, 0.0  ;;  %v321_v38 = vmax.f32 %v305_v59, 0.0  ;;  %v289_v39 = vmul.f32 %v1131_v0, %v269_v55 }
  0x39   : > { %v617_v6 = vsel %vm606_vm3, %v580_v52, %v616_v4  ;;  %v322_v7 = vmax.f32 %v306_v62, 0.0  ;;  %v323_v8 = vmax.f32 %v307_v63, 0.0  ;;  %v290_v42 = vmul.f32 %v1131_v0, %v270_v60 }
  0x3a   : > { %v618_v43 = vsel %vm608_vm4, %v581_v53, %v617_v6  ;;  %v291_v9 = vmul.f32 %v1131_v0, %v271_v2  ;;  %v308_v10 = vadd.f32 %v1142_v1, %v288_v3  ;;  %v309_v11 = vadd.f32 %v1142_v1, %v289_v39  ;;  %336 = vst [vmem:[%s1175_s10 + $0x40] sm:$0xff] %v320_v5 }
  0x3b   : > { %v619_v12 = vsel %vm610_vm5, %v582_v54, %v618_v43  ;;  %v348_v13 = vmax.f32 %v320_v5, %v322_v7  ;;  %v349_v14 = vmax.f32 %v321_v38, %v323_v8  ;;  %v310_v15 = vadd.f32 %v1142_v1, %v290_v42  ;;  %337 = vst [vmem:[%s1175_s10 + $0x48] sm:$0xff] %v321_v38 }
  0x3c   : > { %v620_v16 = vsel %vm612_vm6, %v583_v56, %v619_v12  ;;  %v311_v17 = vadd.f32 %v1142_v1, %v291_v9  ;;  %v324_v18 = vmax.f32 %v308_v10, 0.0  ;;  %v325_v19 = vmax.f32 %v309_v11, 0.0  ;;  %338 = vst [vmem:[%s1175_s10 + $0x50] sm:$0xff] %v322_v7 }
  0x3d   : > { %640 = vst [vmem:[%s1213_s13 + $0x8] sm:$0xff] %v620_v16  ;;  %v372_v0 = vrot.slane %v348_v13, 2  ;;  %v373_v20 = vrot.slane %v348_v13, 4  ;;  %v374_v21 = vrot.slane %v348_v13, 6  ;;  %v375_v22 = vrot.slane %v349_v14, 2 }
  0x3e   : > { %v376_v23 = vrot.slane %v349_v14, 4  ;;  %v377_v24 = vrot.slane %v349_v14, 6  ;;  %v832_v25 = vrot.slane %v348_v13, 9  ;;  %v836_v26 = vrot.slane %v349_v14, 9  ;;  %339 = vst [vmem:[%s1175_s10 + $0x58] sm:$0xff] %v323_v8 }
  0x3f   : > { %v833_v27 = vrot.slane %v372_v0, 9  ;;  %v834_v28 = vrot.slane %v373_v20, 9  ;;  %v835_v29 = vrot.slane %v374_v21, 9  ;;  %v837_v30 = vrot.slane %v375_v22, 9  ;;  %340 = vst [vmem:[%s1175_s10 + $0x60] sm:$0xff] %v324_v18 }
  0x40   : > { %v838_v1 = vrot.slane %v376_v23, 9  ;;  %v839_v31 = vrot.slane %v377_v24, 9  ;;  %v520_v32 = vmax.f32 %v348_v13, %v832_v25  ;;  %v524_v33 = vmax.f32 %v349_v14, %v836_v26  ;;  %341 = vst [vmem:[%s1175_s10 + $0x68] sm:$0xff] %v325_v19 }
  0x41   : > { %v521_v34 = vmax.f32 %v372_v0, %v833_v27  ;;  %v522_v35 = vmax.f32 %v373_v20, %v834_v28  ;;  %v523_v36 = vmax.f32 %v374_v21, %v835_v29  ;;  %v525_v37 = vmax.f32 %v375_v22, %v837_v30 }
  0x42   : > { %v526_v40 = vmax.f32 %v376_v23, %v838_v1  ;;  %v584_v41 = vperm.slane %v520_v32, 0  ;;  %v527_v44 = vmax.f32 %v377_v24, %v839_v31  ;;  %v588_v48 = vperm.slane %v524_v33, 0 }
  0x43   : > { %v585_v45 = vperm.slane %v521_v34, 0  ;;  %v586_v46 = vperm.slane %v522_v35, 0  ;;  %v587_v47 = vperm.slane %v523_v36, 0  ;;  %v326_v49 = vmax.f32 %v310_v15, 0.0 }
  0x44   : > { %v327_v50 = vmax.f32 %v311_v17, 0.0  ;;  %v589_v51 = vperm.slane %v525_v37, 0  ;;  %v590_v53 = vperm.slane %v526_v40, 0  ;;  %v591_v57 = vperm.slane %v527_v44, 0 }
  0x45   : > { %v621_v52 = vsel %vm600_vm0, %v585_v45, %v584_v41  ;;  %v350_v55 = vmax.f32 %v324_v18, %v326_v49  ;;  %342 = vst [vmem:[%s1175_s10 + $0x70] sm:$0xff] %v326_v49 }
  0x46   : > { %v622_v54 = vsel %vm602_vm1, %v586_v46, %v621_v52  ;;  %v351_v56 = vmax.f32 %v325_v19, %v327_v50  ;;  %343 = vst [vmem:[%s1175_s10 + $0x78] sm:$0xff] %v327_v50  ;;  %s945_s10 = scalar_lea.hbm %s944_s9, 32 }
  0x47   : > { %v623_v58 = vsel %vm604_vm2, %v587_v47, %v622_v54  ;;  %v378_v60 = vrot.slane %v350_v55, 2  ;;  %v379_v61 = vrot.slane %v350_v55, 4  ;;  %v380_v62 = vrot.slane %v350_v55, 6  ;;  %p946_p0 = scmp.ne.s32.totalorder %s944_s9, %s945_s10  ;;  %p951_p5 = scmp.lt.s32.totalorder %s949_s23, %s945_s10 }
  0x48   : > { %v624_v59 = vsel %vm606_vm3, %v588_v48, %v623_v58  ;;  %v381_v2 = vrot.slane %v351_v56, 2  ;;  %v382_v3 = vrot.slane %v351_v56, 4  ;;  %v383_v4 = vrot.slane %v351_v56, 6 }
  0x49   : > { %v625_v63 = vsel %vm608_vm4, %v589_v51, %v624_v59  ;;  %v840_v38 = vrot.slane %v350_v55, 9  ;;  %v841_v39 = vrot.slane %v378_v60, 9  ;;  %v842_v6 = vrot.slane %v379_v61, 9  ;;  %p947_p1 = pnand %p946_p0, %p1103_p3  ;;  %p952_p6 = por %p951_p5, %p950_p4 }
  0x4a   : > { %v626_v5 = vsel %vm610_vm5, %v590_v53, %v625_v63  ;;  %v843_v8 = vrot.slane %v380_v62, 9  ;;  %v844_v42 = vrot.slane %v351_v56, 9  ;;  %v845_v43 = vrot.slane %v381_v2, 9 }
  0x4b   : > { %v627_v7 = vsel %vm612_vm6, %v591_v57, %v626_v5  ;;  %v846_v9 = vrot.slane %v382_v3, 9  ;;  %v847_v10 = vrot.slane %v383_v4, 9  ;;  %v528_v11 = vmax.f32 %v350_v55, %v840_v38  ;;  %p948_p2 = pneg %p947_p1 }
  0x4c   : > { %641 = vst [vmem:[%s1213_s13 + $0x10] sm:$0xff] %v627_v7  ;;  %v529_v12 = vmax.f32 %v378_v60, %v841_v39  ;;  %v530_v13 = vmax.f32 %v379_v61, %v842_v6  ;;  %v531_v14 = vmax.f32 %v380_v62, %v843_v8  ;;  %v532_v15 = vmax.f32 %v351_v56, %v844_v42 }
  0x4d   : > { %v533_v16 = vmax.f32 %v381_v2, %v845_v43  ;;  %v534_v17 = vmax.f32 %v382_v3, %v846_v9  ;;  %v535_v18 = vmax.f32 %v383_v4, %v847_v10  ;;  %v592_v19 = vperm.slane %v528_v11, 0  ;;  %p953_p7 = pnand %p952_p6, %p948_p2 }
  0x4e   : > { %v593_v0 = vperm.slane %v529_v12, 0  ;;  %v594_v20 = vperm.slane %v530_v13, 0  ;;  %v595_v21 = vperm.slane %v531_v14, 0  ;;  %v596_v22 = vperm.slane %v532_v15, 0 }
  0x4f   : > { %v597_v23 = vperm.slane %v533_v16, 0  ;;  %v598_v25 = vperm.slane %v534_v17, 0  ;;  %v599_v27 = vperm.slane %v535_v18, 0 }
  0x50   : > { %v628_v24 = vsel %vm600_vm0, %v593_v0, %v592_v19 }
  0x51   : > { %v629_v26 = vsel %vm602_vm1, %v594_v20, %v628_v24 }
  0x52   : > { %v630_v28 = vsel %vm604_vm2, %v595_v21, %v629_v26 }
  0x53   : > { %v631_v29 = vsel %vm606_vm3, %v596_v22, %v630_v28 }
  0x54   : > { %v632_v30 = vsel %vm608_vm4, %v597_v23, %v631_v29 }
  0x55   : > { %v633_v1 = vsel %vm610_vm5, %v598_v25, %v632_v30 }
  0x56   : > { %v634_v31 = vsel %vm612_vm6, %v599_v27, %v633_v1 }
  0x57   : > { %642 = vst [vmem:[%s1213_s13 + $0x18] sm:$0xff] %v634_v31 }
  0x58   : > { %956 = shalt.err (!%p953_p7)
}
  0x59   : > { %s1025_s11 = smov 128   ;;  %s1026_s13 = smov 8  }
  0x5a   : > { %854 = dma.vmem_to_hbm [thread:$0]  (%p1103_p3), %s673_s5, 512, %s675_s6, %s654_s8, %s1025_s11, %s1025_s11, %s1026_s13  }
  0x5b PF: > { %p860_p9 = scmp.ge.s32.totalorder %s1023_s22, 2  ;;  %s702_s19 = sand.u32 1, %s995_s15  }
  0x5c   : > { %s703_s27 = scalar_lea.sflag [#allocation3], %s702_s19 }
  0x5d   : > { %p857_p10 = pnand %p860_p9, %p1112_p8 }
  0x5f   : > { %p858_p11 = pneg %p857_p10 }
  0x61   : > { %990 = dma.done.wait (%p858_p11), %s703_s27, 512  }
  0x62   : > { %992 = vsyncadd (%p858_p11), %s703_s27, 4294966784  ;;  %s18_s22 = sadd.s32 1, %s1023_s22   ;;  %s1321_s15 = smov %s999_s16 }
  0x63   : > { %p15_p12 = scmp.ge.s32.totalorder %s18_s22, 6   ;;  %s1322_s16 = smov %s1003_s17 }
  0x64   : > { %s1323_s17 = smov %s1121_s7  ;;  %s1324_s18 = smov %s1015_s20 }
  0x65   : > { %s1325_s19 = smov %s1019_s21  ;;  %s1326_s20 = smov %s1329_s25 }
  0x66   : > { %s1327_s21 = smov %s1333_s26  ;;  %17 = sbr.rel (!%p15_p12) target bundleno = 5 (0x5), region = 79 }
  0x6b   :  { %709 = vsyncpa [#allocation3], 1 }
  0x6c   :  { %711 = vsyncpa [#allocation3 + $0x1], 1 }

// kernel: encoder_block.4
= control target key start
LH: loop header
LB: loop body
LE: loop exit
PB: predicated region body
PF: predicated region fallthrough
CT: control target
= control target key end

     0   :  { %s4454_s15 = smov 0   ;;  %s5942_s0 = inlined_call_operand.vmem [shape: bf16[2,16,16,128], index: 0, kind: input, shape index: {}]   ;;  %s5943_s1 = inlined_call_operand.vmem [shape: bf16[1152,128], index: 1, kind: input, shape index: {}]   ;;  %s5944_s2 = inlined_call_operand.vmem [shape: f32[1,128], index: 2, kind: input, shape index: {}]   ;;  %s5945_s3 = inlined_call_operand.vmem [shape: f32[2,16,16,128], index: 3, kind: output, shape index: {0}]   ;;  %s5946_s4 = inlined_call_operand.vmem [shape: f32[2,2,128], index: 4, kind: output, shape index: {1}]  }
   0x1 LB: > { %s3545_s16 = sadd.s32 4294967295, %s4426_s15   ;;  %p3549_p0 = scmp.ge.s32.totalorder %s4426_s15, 1  ;;  %s4426_s15 = sphi %s4454_s15, %s15_s15  }
   0x2   : > { %p165_p1 = scmp.lt.s32.totalorder %s4426_s15, 3 }
   0x4   : > { %p166_p2 = pnand %p3549_p0, %p165_p1 }
   0x6   : > { %169 = sbr.rel (%p166_p2) target bundleno = 812 (0x32c), region = 32 }
   0xb   : > { %v4248_v0 = vld [vmem:[%s5943_s1 + $0x38] sm:$0xff]  ;;  %p195_p3 = scmp.lt.s32.totalorder %s3545_s16, 1  ;;  %v4428_v2 = vmov 0   ;;  %v4247_v3 = vld [vmem:[%s5943_s1 + $0x30] sm:$0xff]  ;;  %v4246_v5 = vld [vmem:[%s5943_s1 + $0x28] sm:$0xff]  ;;  %vm620_vm1 = vcmask 1043456  }
   0xc   : > { %v4256_v1 = vld [vmem:[%s5943_s1 + $0x78] sm:$0xff]  ;;  %222 = vst [vmem:[#allocation2 + $0x30] sm:$0xf] %v4428_v2  ;;  %4385 = vmatpush.bf16.msra.mxu2 %v4248_v0  ;;  %v4255_v4 = vld [vmem:[%s5943_s1 + $0x70] sm:$0xff]  ;;  %1633 = vmatpush.bf16.msra.mxu0 %v4248_v0  ;;  %v4254_v6 = vld [vmem:[%s5943_s1 + $0x68] sm:$0xff]  ;;  %vm627_vm7 = vcmask 1040384  }
   0xd   : > { %4393 = vmatpush.bf16.msra.mxu3 %v4256_v1  ;;  %s5958_s16 = smov (!%p195_p3, %s3545_s16), 1  ;;  %223 = vst [vmem:[#allocation2 + $0x34] sm:$0xf] %v4428_v2  ;;  %1682 = vmatpush.bf16.msra.mxu1 %v4256_v1  ;;  %vm296_vm0 = vsmask.f32 256  ;;  %v4245_v13 = vld [vmem:[%s5943_s1 + $0x20] sm:$0xff] }
   0xe   : > { %s4221_s29 = sshll.u32 %s5958_s16, 7  ;;  %vm297_vm2 = vsmask.f32 4368  ;;  %vm621_vm3 = vsmask.f32 7938  ;;  %v4253_v17 = vld [vmem:[%s5943_s1 + $0x60] sm:$0xff]  ;;  %vm4632_vm8 = vmand %vm627_vm7, %vm296_vm0 }
   0xf   : > { %s4488_s6 = scalar_lea.vmem %s5942_s0, %s4221_s29  ;;  %210 = vst [vmem:[#allocation2] sm:$0xf] %v4428_v2  ;;  %vm4501_vm4 = vmor %vm296_vm0, %vm297_vm2  ;;  %v4244_v25 = vld [vmem:[%s5943_s1 + $0x18] sm:$0xff]  ;;  %v4243_v27 = vld [vmem:[%s5943_s1 + $0x10] sm:$0xff]  ;;  %vm863_vm6 = vsmask.f32 7424 }
  0x10   : > { %4386 = vmatpush.bf16.msra.mxu2 %v4247_v3  ;;  %v270_v7 = vld [vmem:[%s4488_s6 + $0x18] sm:$0xf]  ;;  %v271_v8 = vld [vmem:[%s4488_s6 + $0x1c] sm:$0xf]  ;;  %211 = vst [vmem:[#allocation2 + $0x4] sm:$0xf] %v4428_v2  ;;  %1634 = vmatpush.bf16.msra.mxu0 %v4247_v3  ;;  %vm4513_vm5 = vmand %vm620_vm1, %vm621_vm3 }
  0x11   : > { %4394 = vmatpush.bf16.msra.mxu3 %v4255_v4  ;;  %1683 = vmatpush.bf16.msra.mxu1 %v4255_v4  ;;  %v351_v9 = vshrl.u32 %v270_v7, 16  ;;  %v354_v10 = vshll.u32 %v270_v7, 16  ;;  %v359_v11 = vshrl.u32 %v271_v8, 16  ;;  %v362_v12 = vshll.u32 %v271_v8, 16  ;;  %212 = vst [vmem:[#allocation2 + $0x8] sm:$0x1] %v4428_v2 }
  0x12   : > { %213 = vst [vmem:[#allocation2 + $0xc] sm:$0xf] %v4428_v2  ;;  %v4252_v26 = vld [vmem:[%s5943_s1 + $0x58] sm:$0xff]  ;;  %v4251_v28 = vld [vmem:[%s5943_s1 + $0x50] sm:$0xff]  ;;  %v4242_v29 = vld [vmem:[%s5943_s1 + $0x8] sm:$0xff]  ;;  %vm968_vm9 = vcmask 1046528  }
  0x13   : > { %v353_v15 = vrot.slane %v351_v9, 7  ;;  %v4505_v16 = vrot.slane %v359_v11, 7  ;;  %214 = vst [vmem:[#allocation2 + $0x10] sm:$0xf] %v4428_v2  ;;  %v646_v19 = vld [vmem:[#allocation2 + $0x30] sm:$0xf] }
  0x14   : > { %4387 = vmatpush.bf16.msra.mxu2 %v4246_v5  ;;  %215 = vst [vmem:[#allocation2 + $0x14] sm:$0x1] %v4428_v2  ;;  %1635 = vmatpush.bf16.msra.mxu0 %v4246_v5  ;;  %v4250_v30 = vld [vmem:[%s5943_s1 + $0x48] sm:$0xff]  ;;  %v4241_v31 = vld [vmem:[%s5943_s1] sm:$0xff]  ;;  %v4264_v45 = vld [vmem:[%s5943_s1 + $0xb8] sm:$0xff]  ;;  %s4222_s30 = sshll.u32 %s5958_s16, 8 }
  0x15   : > { %4395 = vmatpush.bf16.msra.mxu3 %v4254_v6  ;;  %1684 = vmatpush.bf16.msra.mxu1 %v4254_v6  ;;  %v356_v20 = vor.u32 %v354_v10, %v353_v15  ;;  %v357_v21 = vrot.slane %v353_v15, 4  ;;  %v364_v22 = vor.u32 %v362_v12, %v4505_v16  ;;  %216 = vst [vmem:[#allocation2 + $0x18] sm:$0xf] %v4428_v2  ;;  %v4249_v32 = vld [vmem:[%s5943_s1 + $0x40] sm:$0xff]  ;;  %v4272_v46 = vld [vmem:[%s5943_s1 + $0xf8] sm:$0xff]  ;;  %v4263_v53 = vld [vmem:[%s5943_s1 + $0xb0] sm:$0xff]  ;;  %s5502_s14 = scalar_lea.vmem %s5945_s3, %s4222_s30 }
  0x16   : > { %217 = vst [vmem:[#allocation2 + $0x1c] sm:$0xf] %v4428_v2  ;;  %v4581_v37 = vld [vmem:[%s4488_s6 + $0x24] sm:$0xf]  ;;  %v272_v40 = vld [vmem:[%s4488_s6 + $0x20] sm:$0xf] }
  0x17   : > { %v365_v23 = vsel %vm4501_vm4, %v357_v21, %v364_v22  ;;  %v647_v24 = vsel %vm4513_vm5, %v356_v20, %v646_v19  ;;  %218 = vst [vmem:[#allocation2 + $0x20] sm:$0x1] %v4428_v2  ;;  %v4577_v35 = vld [vmem:[#allocation2] sm:$0xff]  ;;  %v376_v44 = vshrl.u32 %v4581_v37, 16  ;;  %v4280_v50 = vld [vmem:[%s5943_s1 + $0x138] sm:$0xff]  ;;  %v368_v52 = vshrl.u32 %v272_v40, 16 }
  0x18   : > { %4388 = vmatpush.bf16.msra.mxu2 %v4245_v13  ;;  %648 = vst [vmem:[#allocation2 + $0x30] sm:$0xf] %v647_v24  ;;  %1636 = vmatpush.bf16.msra.mxu0 %v4245_v13  ;;  %v739_v34 = vld [vmem:[#allocation2 + $0x8] sm:$0x1]  ;;  %v867_v39 = vshll.u32 %v4577_v35, 16  ;;  %v865_v41 = vshrl.u32 %v4577_v35, 16 }
  0x19   : > { %4396 = vmatpush.bf16.msra.mxu3 %v4253_v17  ;;  %1685 = vmatpush.bf16.msra.mxu1 %v4253_v17  ;;  %649 = vst [vmem:[#allocation2 + $0x34] sm:$0xf] %v365_v23  ;;  %v847_v36 = vunpack.c.l.b16 %v739_v34  ;;  %v264_v47 = vld [vmem:[%s4488_s6] sm:$0xf]  ;;  %v4288_v51 = vld [vmem:[%s5943_s1 + $0x178] sm:$0xff]  ;;  %v4271_v54 = vld [vmem:[%s5943_s1 + $0xf0] sm:$0xff] }
  0x1a   : > { %219 = vst [vmem:[#allocation2 + $0x24] sm:$0xf] %v4428_v2  ;;  %v869_v42 = vrot.slane %v867_v39, 1  ;;  %v265_v55 = vld [vmem:[%s4488_s6 + $0x4] sm:$0xf]  ;;  %v378_v57 = vrot.slane %v376_v44, 7 }
  0x1b   : > { %220 = vst [vmem:[#allocation2 + $0x28] sm:$0xf] %v4428_v2  ;;  %v4585_v38 = vpack.c.b16 %v847_v36, %v847_v36  ;;  %v300_v58 = vshrl.u32 %v264_v47, 16  ;;  %v370_v59 = vrot.slane %v368_v52, 7  ;;  %v371_v60 = vshll.u32 %v272_v40, 16 }
  0x1c   : > { %4389 = vmatpush.bf16.msra.mxu2 %v4244_v25  ;;  %221 = vst [vmem:[#allocation2 + $0x2c] sm:$0x1] %v4428_v2  ;;  %1637 = vmatpush.bf16.msra.mxu0 %v4244_v25  ;;  %v870_v48 = vor.u32 %v869_v42, %v865_v41  ;;  %v308_v61 = vshrl.u32 %v265_v55, 16  ;;  %v366_v62 = vrot.slane %v4505_v16, 4  ;;  %v379_v0 = vshll.u32 %v4581_v37, 16 }
  0x1d   : > { %4397 = vmatpush.bf16.msra.mxu3 %v4252_v26  ;;  %1686 = vmatpush.bf16.msra.mxu1 %v4252_v26  ;;  %224 = vst [vmem:[#allocation2 + $0x38] sm:$0x1] %v4428_v2  ;;  %v872_v43 = vshll.u32 %v4585_v38, 16  ;;  %v383_v3 = vrot.slane %v378_v57, 4  ;;  %v303_v4 = vshll.u32 %v264_v47, 16  ;;  %v302_v6 = vrot.slane %v300_v58, 7 }
  0x1e   : > { %225 = vst [vmem:[#allocation2 + $0x3c] sm:$0xf] %v4428_v2  ;;  %v275_v5 = vld [vmem:[%s4488_s6 + $0x2c] sm:$0xf]  ;;  %v274_v7 = vld [vmem:[%s4488_s6 + $0x28] sm:$0xf]  ;;  %v373_v10 = vor.u32 %v371_v60, %v370_v59  ;;  %v381_v16 = vor.u32 %v379_v0, %v378_v57 }
  0x1f   : > { %226 = vst [vmem:[#allocation2 + $0x40] sm:$0xf] %v4428_v2  ;;  %v874_v49 = vrot.slane %v872_v43, 1  ;;  %v393_v8 = vshrl.u32 %v275_v5, 16  ;;  %v310_v11 = vrot.slane %v308_v61, 7  ;;  %v311_v12 = vshll.u32 %v265_v55, 16 }
  0x20   : > { %4390 = vmatpush.bf16.msra.mxu2 %v4243_v27  ;;  %227 = vst [vmem:[#allocation2 + $0x44] sm:$0x1] %v4428_v2  ;;  %1638 = vmatpush.bf16.msra.mxu0 %v4243_v27  ;;  %v4565_v33 = vld [vmem:[#allocation2 + $0x30] sm:$0xff]  ;;  %v385_v13 = vshrl.u32 %v274_v7, 16  ;;  %v374_v15 = vrot.slane %v370_v59, 4  ;;  %v388_v23 = vshll.u32 %v274_v7, 16  ;;  %v305_v25 = vor.u32 %v303_v4, %v302_v6 }
  0x21   : > { %4398 = vmatpush.bf16.msra.mxu3 %v4251_v28  ;;  %1687 = vmatpush.bf16.msra.mxu1 %v4251_v28  ;;  %228 = vst [vmem:[#allocation2 + $0x48] sm:$0xf] %v4428_v2  ;;  %v875_v56 = vsel %vm863_vm6, %v870_v48, %v874_v49  ;;  %v915_v63 = vshll.u32 %v4565_v33, 16  ;;  %v4637_v20 = vrot.slane %v393_v8, 7  ;;  %v623_v21 = vld [vmem:[#allocation2 + $0xc] sm:$0xf] }
  0x22   : > { %229 = vst [vmem:[#allocation2 + $0x4c] sm:$0xf] %v4428_v2  ;;  %v387_v22 = vrot.slane %v385_v13, 7  ;;  %v306_v26 = vrot.slane %v302_v6, 4  ;;  %v396_v27 = vshll.u32 %v275_v5, 16  ;;  %v382_v36 = vsel %vm4501_vm4, %v374_v15, %v381_v16  ;;  %v4270_v47 = vld [vmem:[%s5943_s1 + $0xe8] sm:$0xff] }
  0x23   : > { %230 = vst [vmem:[#allocation2 + $0x50] sm:$0x1] %v4428_v2  ;;  %v266_v28 = vld [vmem:[%s4488_s6 + $0x8] sm:$0xf]  ;;  %v400_v39 = vrot.slane %v4637_v20, 4  ;;  %v4279_v48 = vld [vmem:[%s5943_s1 + $0x130] sm:$0xff] }
  0x24   : > { %4391 = vmatpush.bf16.msra.mxu2 %v4242_v29  ;;  %231 = vst [vmem:[#allocation2 + $0x54] sm:$0xf] %v4428_v2  ;;  %1639 = vmatpush.bf16.msra.mxu0 %v4242_v29  ;;  %v650_v1 = vld [vmem:[#allocation2 + $0x38] sm:$0x1]  ;;  %v317_v34 = vshrl.u32 %v266_v28, 16  ;;  %v391_v37 = vrot.slane %v387_v22, 4  ;;  %v390_v42 = vor.u32 %v388_v23, %v387_v22  ;;  %v398_v49 = vor.u32 %v396_v27, %v4637_v20 }
  0x25   : > { %4399 = vmatpush.bf16.msra.mxu3 %v4250_v30  ;;  %1688 = vmatpush.bf16.msra.mxu1 %v4250_v30  ;;  %232 = vst [vmem:[#allocation2 + $0x58] sm:$0xf] %v4428_v2  ;;  %v653_v17 = vld [vmem:[#allocation2 + $0x3c] sm:$0xf]  ;;  %v651_v24 = vsel %vm4632_vm8, %v366_v62, %v650_v1  ;;  %v313_v30 = vor.u32 %v311_v12, %v310_v11  ;;  %v267_v40 = vld [vmem:[%s4488_s6 + $0xc] sm:$0xf] }
  0x26   : > { %233 = vst [vmem:[#allocation2 + $0x5c] sm:$0x1] %v4428_v2  ;;  %v654_v29 = vsel %vm4513_vm5, %v373_v10, %v653_v17  ;;  %v319_v44 = vrot.slane %v317_v34, 7  ;;  %v328_v60 = vshll.u32 %v267_v40, 16  ;;  %v4278_v61 = vld [vmem:[%s5943_s1 + $0x128] sm:$0xff]  ;;  %v913_v12 = vshrl.u32 %v4565_v33, 16 }
  0x27   : > { %234 = vst [vmem:[#allocation2 + $0x60] sm:$0xf] %v4428_v2  ;;  %v657_v19 = vld [vmem:[#allocation2 + $0x44] sm:$0x1]  ;;  %v4286_v62 = vld [vmem:[%s5943_s1 + $0x168] sm:$0xff]  ;;  %v917_v13 = vrot.slane %v915_v63, 1 }
  0x28   : > { %4392 = vmatpush.bf16.msra.mxu2 %v4241_v31  ;;  %235 = vst [vmem:[#allocation2 + $0x64] sm:$0xf] %v4428_v2  ;;  %1640 = vmatpush.bf16.msra.mxu0 %v4241_v31  ;;  %v315_v31 = vrot.slane %v310_v11, 4  ;;  %v658_v41 = vsel %vm4632_vm8, %v383_v3, %v657_v19  ;;  %v660_v43 = vld [vmem:[#allocation2 + $0x48] sm:$0xf]  ;;  %v323_v58 = vrot.slane %v319_v44, 4  ;;  %v399_v3 = vsel %vm4501_vm4, %v391_v37, %v398_v49 }
  0x29   : > { %4400 = vmatpush.bf16.msra.mxu3 %v4249_v32  ;;  %236 = vst [vmem:[#allocation2 + $0x68] sm:$0x1] %v4428_v2  ;;  %1689 = vmatpush.bf16.msra.mxu1 %v4249_v32  ;;  %v629_v32 = vld [vmem:[#allocation2 + $0x14] sm:$0x1]  ;;  %v661_v0 = vsel %vm4513_vm5, %v390_v42, %v660_v43  ;;  %v632_v1 = vld [vmem:[#allocation2 + $0x18] sm:$0xf] }
  0x2a   : > { %237 = vst [vmem:[#allocation2 + $0x6c] sm:$0xf] %v4428_v2  ;;  %v630_v52 = vsel %vm4632_vm8, %v315_v31, %v629_v32  ;;  %v664_v55 = vld [vmem:[#allocation2 + $0x50] sm:$0x1]  ;;  %v636_v7 = vld [vmem:[#allocation2 + $0x20] sm:$0x1] }
  0x2b   : > { %1661 = vmatmul.bf16.vlgmr.msra.gmra.mxu2 %v4565_v33  ;;  %238 = vst [vmem:[#allocation2 + $0x70] sm:$0xf] %v4428_v2  ;;  %1641 = vmatmul.bf16.vlgmr.msra.gmra.mxu0 %v4577_v35  ;;  %v665_v6 = vsel %vm4632_vm8, %v400_v39, %v664_v55  ;;  %v277_v16 = vld [vmem:[%s4488_s6 + $0x34] sm:$0xf]  ;;  %v276_v20 = vld [vmem:[%s4488_s6 + $0x30] sm:$0xf] }
  0x2c   : > { %239 = vst [vmem:[#allocation2 + $0x74] sm:$0x1] %v4428_v2  ;;  %1731 = vmatpush.bf16.msrb.mxu2 %v4264_v45  ;;  %1829 = vmatpush.bf16.msrb.mxu0 %v4280_v50  ;;  %v320_v45 = vshll.u32 %v266_v28, 16  ;;  %v325_v50 = vshrl.u32 %v267_v40, 16  ;;  %v402_v63 = vshrl.u32 %v276_v20, 16  ;;  %v413_v32 = vshll.u32 %v277_v16, 16 }
  0x2d   : > { %240 = vst [vmem:[#allocation2 + $0x78] sm:$0xf] %v4428_v2  ;;  %1780 = vmatpush.bf16.msrb.mxu3 %v4272_v46  ;;  %1878 = vmatpush.bf16.msrb.mxu1 %v4288_v51  ;;  %v624_v46 = vsel %vm4513_vm5, %v305_v25, %v623_v21  ;;  %v314_v51 = vsel %vm4501_vm4, %v306_v26, %v313_v30  ;;  %v410_v21 = vshrl.u32 %v277_v16, 16  ;;  %v667_v42 = vld [vmem:[#allocation2 + $0x54] sm:$0xf]  ;;  %v4285_v55 = vld [vmem:[%s5943_s1 + $0x160] sm:$0xff] }
  0x2e   : > { %241 = vst [vmem:[#allocation2 + $0x7c] sm:$0xf] %v4428_v2  ;;  %1690 = vmatmul.bf16.vlgmr.msra.gmra.mxu1 %v875_v56  ;;  %v4269_v56 = vld [vmem:[%s5943_s1 + $0xe0] sm:$0xff]  ;;  %v322_v57 = vor.u32 %v320_v45, %v319_v44  ;;  %v327_v59 = vrot.slane %v325_v50, 7  ;;  %v918_v25 = vor.u32 %v917_v13, %v913_v12  ;;  %v404_v28 = vrot.slane %v402_v63, 7  ;;  %v4260_v50 = vld [vmem:[%s5943_s1 + $0x98] sm:$0xff] }
  0x2f   : > { %242 = vst [vmem:[#allocation2 + $0x80] sm:$0x1] %v4428_v2 }
  0x30   : > { %243 = vst [vmem:[#allocation2 + $0x84] sm:$0xf] %v4428_v2  ;;  %1732 = vmatpush.bf16.msrb.mxu2 %v4263_v53  ;;  %v4287_v53 = vld [vmem:[%s5943_s1 + $0x170] sm:$0xff]  ;;  %1830 = vmatpush.bf16.msrb.mxu0 %v4279_v48  ;;  %v330_v4 = vor.u32 %v328_v60, %v327_v59  ;;  %v332_v5 = vrot.slane %v327_v59, 4  ;;  %v633_v10 = vsel %vm4513_vm5, %v322_v57, %v632_v1 }
  0x31   : > { %244 = vst [vmem:[#allocation2 + $0x88] sm:$0xf] %v4428_v2  ;;  %1781 = vmatpush.bf16.msrb.mxu3 %v4271_v54  ;;  %v4261_v54 = vld [vmem:[%s5943_s1 + $0xa0] sm:$0xff]  ;;  %1879 = vmatpush.bf16.msrb.mxu1 %v4287_v53 }
  0x32   : > { %245 = vst [vmem:[#allocation2 + $0x8c] sm:$0x1] %v4428_v2  ;;  %v331_v15 = vsel %vm4501_vm4, %v323_v58, %v330_v4  ;;  %v637_v19 = vsel %vm4632_vm8, %v332_v5, %v636_v7  ;;  %v268_v58 = vld [vmem:[%s4488_s6 + $0x10] sm:$0xf]  ;;  %v4276_v5 = vld [vmem:[%s5943_s1 + $0x118] sm:$0xff] }
  0x33   : > { %246 = vst [vmem:[#allocation2 + $0x90] sm:$0xf] %v4428_v2  ;;  %v4267_v4 = vld [vmem:[%s5943_s1 + $0xd0] sm:$0xff]  ;;  %v337_v13 = vshll.u32 %v268_v58, 16 }
  0x34   : > { %247 = vst [vmem:[#allocation2 + $0x94] sm:$0xf] %v4428_v2  ;;  %1831 = vmatpush.bf16.msrb.mxu0 %v4278_v61  ;;  %v4259_v61 = vld [vmem:[%s5943_s1 + $0x90] sm:$0xff] }
  0x35   : > { %248 = vst [vmem:[#allocation2 + $0x98] sm:$0x1] %v4428_v2  ;;  %1782 = vmatpush.bf16.msrb.mxu3 %v4270_v47  ;;  %1880 = vmatpush.bf16.msrb.mxu1 %v4286_v62  ;;  %v671_v47 = vld [vmem:[#allocation2 + $0x5c] sm:$0x1]  ;;  %v269_v7 = vld [vmem:[%s4488_s6 + $0x14] sm:$0xf] }
  0x36   : > { %249 = vst [vmem:[#allocation2 + $0x9c] sm:$0xf] %v4428_v2  ;;  %v342_v16 = vshrl.u32 %v269_v7, 16 }
  0x37   : > { %250 = vst [vmem:[#allocation2 + $0xa0] sm:$0xf] %v4428_v2 }
  0x38   : > { %251 = vst [vmem:[#allocation2 + $0xa4] sm:$0x1] %v4428_v2 }
  0x39   : > { %252 = vst [vmem:[#allocation2 + $0xa8] sm:$0xf] %v4428_v2  ;;  %1783 = vmatpush.bf16.msrb.mxu3 %v4269_v56  ;;  %1881 = vmatpush.bf16.msrb.mxu1 %v4285_v55 }
  0x3a   : > { %253 = vst [vmem:[#allocation2 + $0xac] sm:$0xf] %v4428_v2 }
  0x3b   : > { %254 = vst [vmem:[#allocation2 + $0xb0] sm:$0x1] %v4428_v2 }
  0x3c   : > { %255 = vst [vmem:[#allocation2 + $0xb4] sm:$0xf] %v4428_v2 }
  0x3d   : > { %256 = vst [vmem:[#allocation2 + $0xb8] sm:$0xf] %v4428_v2 }
  0x3e   : > { %257 = vst [vmem:[#allocation2 + $0xbc] sm:$0x1] %v4428_v2 }
  0x3f   : > { %258 = vst [vmem:[#allocation2 + $0xc0] sm:$0xf] %v4428_v2 }
  0x40   : > { %259 = vst [vmem:[#allocation2 + $0xc4] sm:$0xf] %v4428_v2 }
  0x41   : > { %260 = vst [vmem:[#allocation2 + $0xc8] sm:$0x1] %v4428_v2 }
  0x42   : > { %261 = vst [vmem:[#allocation2 + $0xcc] sm:$0xf] %v4428_v2 }
  0x43   : > { %262 = vst [vmem:[#allocation2 + $0xd0] sm:$0xf] %v4428_v2 }
  0x44   : > { %263 = vst [vmem:[#allocation2 + $0xd4] sm:$0x1] %v4428_v2  ;;  %v4262_v2 = vld [vmem:[%s5943_s1 + $0xa8] sm:$0xff] }
  0x45   : > { %652 = vst [vmem:[#allocation2 + $0x38] sm:$0x1] %v651_v24  ;;  %1733 = vmatpush.bf16.msrb.mxu2 %v4262_v2  ;;  %v412_v24 = vrot.slane %v410_v21, 7 }
  0x46   : > { %655 = vst [vmem:[#allocation2 + $0x3c] sm:$0xf] %v654_v29  ;;  %v405_v29 = vshll.u32 %v276_v20, 16 }
  0x47   : > { %656 = vst [vmem:[#allocation2 + $0x40] sm:$0xf] %v382_v36  ;;  %v417_v43 = vrot.slane %v412_v24, 4 }
  0x48   : > { %659 = vst [vmem:[#allocation2 + $0x44] sm:$0x1] %v658_v41  ;;  %v407_v40 = vor.u32 %v405_v29, %v404_v28  ;;  %v408_v41 = vrot.slane %v404_v28, 4 }
  0x49   : > { %625 = vst [vmem:[#allocation2 + $0xc] sm:$0xf] %v624_v46  ;;  %1734 = vmatpush.bf16.msrb.mxu2 %v4261_v54  ;;  %v415_v46 = vor.u32 %v413_v32, %v412_v24  ;;  %v672_v62 = vsel %vm4632_vm8, %v417_v43, %v671_v47 }
  0x4a   : > { %626 = vst [vmem:[#allocation2 + $0x10] sm:$0xf] %v314_v51  ;;  %v4268_v51 = vld [vmem:[%s5943_s1 + $0xd8] sm:$0xff]  ;;  %v668_v57 = vsel %vm4513_vm5, %v407_v40, %v667_v42 }
  0x4b   : > { %631 = vst [vmem:[#allocation2 + $0x14] sm:$0x1] %v630_v52  ;;  %v4277_v52 = vld [vmem:[%s5943_s1 + $0x120] sm:$0xff]  ;;  %v416_v56 = vsel %vm4501_vm4, %v408_v41, %v415_v46  ;;  %1784 = vmatpush.bf16.msrb.mxu3 %v4268_v51  ;;  %v4275_v51 = vld [vmem:[%s5943_s1 + $0x110] sm:$0xff] }
  0x4c   : > { %v751_v8 = vld [vmem:[#allocation2 + $0x38] sm:$0x1]  ;;  %662 = vst [vmem:[#allocation2 + $0x48] sm:$0xf] %v661_v0  ;;  %1832 = vmatpush.bf16.msrb.mxu0 %v4277_v52  ;;  %v969_v52 = vrot.slane %v4577_v35, 1 }
  0x4d   : > { %v851_v11 = vunpack.c.l.b16 %v751_v8  ;;  %663 = vst [vmem:[#allocation2 + $0x4c] sm:$0xf] %v399_v3  ;;  %1735 = vmatpush.bf16.msrb.mxu2 %v4260_v50  ;;  %v334_v8 = vshrl.u32 %v268_v58, 16  ;;  %v4266_v50 = vld [vmem:[%s5943_s1 + $0xc8] sm:$0xff] }
  0x4e   : > { %v4699_v17 = vld [vmem:[#allocation2 + $0x3c] sm:$0xff]  ;;  %666 = vst [vmem:[#allocation2 + $0x50] sm:$0x1] %v665_v6 }
  0x4f   : > { %v4704_v22 = vpack.c.b16 %v851_v11, %v851_v11  ;;  %v754_v23 = vld [vmem:[#allocation2 + $0x44] sm:$0x1]  ;;  %634 = vst [vmem:[#allocation2 + $0x18] sm:$0xf] %v633_v10  ;;  %1666 = vmatmul.bf16.gmra.mxu2 %v4699_v17  ;;  %v927_v49 = vshll.u32 %v4699_v17, 16  ;;  %v925_v59 = vshrl.u32 %v4699_v17, 16  ;;  %1785 = vmatpush.bf16.msrb.mxu3 %v4267_v4 }
  0x50   : > { %635 = vst [vmem:[#allocation2 + $0x1c] sm:$0xf] %v331_v15  ;;  %v852_v30 = vunpack.c.l.b16 %v754_v23  ;;  %v4284_v6 = vld [vmem:[%s5943_s1 + $0x158] sm:$0xff]  ;;  %v336_v15 = vrot.slane %v334_v8, 7  ;;  %1833 = vmatpush.bf16.msrb.mxu0 %v4276_v5  ;;  %v639_v23 = vld [vmem:[#allocation2 + $0x24] sm:$0xf] }
  0x51   : > { %v920_v26 = vshll.u32 %v4704_v22, 16  ;;  %v4708_v27 = vld [vmem:[#allocation2 + $0xc] sm:$0xff]  ;;  %638 = vst [vmem:[#allocation2 + $0x20] sm:$0x1] %v637_v19  ;;  %v929_v10 = vrot.slane %v927_v49, 1  ;;  %1736 = vmatpush.bf16.msrb.mxu2 %v4259_v61  ;;  %v345_v19 = vshll.u32 %v269_v7, 16  ;;  %1882 = vmatpush.bf16.msrb.mxu1 %v4284_v6 }
  0x52   : > { %v742_v31 = vld [vmem:[#allocation2 + $0x14] sm:$0x1]  ;;  %1646 = vmatmul.bf16.gmra.mxu0 %v4708_v27  ;;  %v877_v37 = vshrl.u32 %v4708_v27, 16  ;;  %v879_v39 = vshll.u32 %v4708_v27, 16  ;;  %v4719_v48 = vpack.c.b16 %v852_v30, %v852_v30  ;;  %669 = vst [vmem:[#allocation2 + $0x54] sm:$0xf] %v668_v57  ;;  %v339_v24 = vor.u32 %v337_v13, %v336_v15 }
  0x53   : > { %v922_v34 = vrot.slane %v920_v26, 1  ;;  %v848_v36 = vunpack.c.l.b16 %v742_v31  ;;  %670 = vst [vmem:[#allocation2 + $0x58] sm:$0xf] %v416_v56  ;;  %v344_v26 = vrot.slane %v342_v16, 7  ;;  %v930_v28 = vor.u32 %v929_v10, %v925_v59  ;;  %v643_v30 = vld [vmem:[#allocation2 + $0x2c] sm:$0x1]  ;;  %1786 = vmatpush.bf16.msrb.mxu3 %v4266_v50 }
  0x54   : > { %v881_v2 = vrot.slane %v879_v39, 1  ;;  %v932_v11 = vshll.u32 %v4719_v48, 16  ;;  %673 = vst [vmem:[#allocation2 + $0x5c] sm:$0x1] %v672_v62  ;;  %v4766_v63 = vld [vmem:[#allocation2 + $0x48] sm:$0xff]  ;;  %v4283_v56 = vld [vmem:[%s5943_s1 + $0x150] sm:$0xff]  ;;  %1834 = vmatpush.bf16.msrb.mxu0 %v4275_v51 }
  0x55   : > { %v4714_v44 = vsel %vm863_vm6, %v918_v25, %v922_v34  ;;  %v4716_v45 = vpack.c.b16 %v848_v36, %v848_v36  ;;  %v340_v25 = vrot.slane %v336_v15, 4  ;;  %v757_v31 = vld [vmem:[#allocation2 + $0x50] sm:$0x1]  ;;  %v347_v32 = vor.u32 %v345_v19, %v344_v26  ;;  %v4258_v49 = vld [vmem:[%s5943_s1 + $0x88] sm:$0xff]  ;;  %v4257_v57 = vld [vmem:[%s5943_s1 + $0x80] sm:$0xff]  ;;  %1883 = vmatpush.bf16.msrb.mxu1 %v4283_v56 }
  0x56   : > { %1710 = vmatmul.bf16.vlgmr.msra.gmra.mxu3 %v4714_v44  ;;  %v882_v53 = vor.u32 %v881_v2, %v877_v37  ;;  %v934_v29 = vrot.slane %v932_v11, 1  ;;  %v640_v34 = vsel %vm4513_vm5, %v339_v24, %v639_v23  ;;  %v349_v36 = vrot.slane %v344_v26, 4  ;;  %1737 = vmatpush.bf16.msrb.mxu2 %v4258_v49  ;;  %v4274_v59 = vld [vmem:[%s5943_s1 + $0x108] sm:$0xff]  ;;  %v4273_v7 = vld [vmem:[%s5943_s1 + $0x100] sm:$0xff]  ;;  %v4295_v50 = vld [vmem:[%s5943_s1 + $0x1b0] sm:$0xff] }
  0x57   : > { %v884_v54 = vshll.u32 %v4716_v45, 16  ;;  %v4746_v1 = vld [vmem:[#allocation2 + $0x18] sm:$0xff]  ;;  %641 = vst [vmem:[#allocation2 + $0x24] sm:$0xf] %v640_v34  ;;  %v348_v41 = vsel %vm4501_vm4, %v340_v25, %v347_v32  ;;  %v853_v2 = vunpack.c.l.b16 %v757_v31  ;;  %v939_v55 = vshll.u32 %v4766_v63, 16  ;;  %v4282_v61 = vld [vmem:[%s5943_s1 + $0x148] sm:$0xff] }
  0x58   : > { %v745_v60 = vld [vmem:[#allocation2 + $0x20] sm:$0x1]  ;;  %v891_v21 = vshll.u32 %v4746_v1, 16  ;;  %v889_v37 = vshrl.u32 %v4746_v1, 16  ;;  %v644_v42 = vsel %vm4632_vm8, %v349_v36, %v643_v30  ;;  %v4778_v43 = vsel %vm863_vm6, %v930_v28, %v934_v29  ;;  %642 = vst [vmem:[#allocation2 + $0x28] sm:$0xf] %v348_v41  ;;  %1835 = vmatpush.bf16.msrb.mxu0 %v4274_v59 }
  0x59   : > { %v886_v0 = vrot.slane %v884_v54, 1  ;;  %v849_v3 = vunpack.c.l.b16 %v745_v60  ;;  %645 = vst [vmem:[#allocation2 + $0x2c] sm:$0x1] %v644_v42  ;;  %v4793_v54 = vpack.c.b16 %v853_v2, %v853_v2  ;;  %v937_v62 = vshrl.u32 %v4766_v63, 16  ;;  %1884 = vmatpush.bf16.msrb.mxu1 %v4282_v61  ;;  %v4281_v28 = vld [vmem:[%s5943_s1 + $0x140] sm:$0xff]  ;;  %v4296_v29 = vld [vmem:[%s5943_s1 + $0x1b8] sm:$0xff] }
  0x5a   : > { %v893_v39 = vrot.slane %v891_v21, 1  ;;  %1738 = vmatpush.bf16.msrb.mxu2 %v4257_v57  ;;  %v4824_v8 = vld [vmem:[#allocation2 + $0x54] sm:$0xff]  ;;  %v973_v49 = vrot.slane %v4716_v45, 1  ;;  %v4294_v56 = vld [vmem:[%s5943_s1 + $0x1a8] sm:$0xff]  ;;  %v4293_v61 = vld [vmem:[%s5943_s1 + $0x1a0] sm:$0xff] }
  0x5b   : > { %v4760_v12 = vsel %vm863_vm6, %v882_v53, %v886_v0  ;;  %v4763_v20 = vpack.c.b16 %v849_v3, %v849_v3  ;;  %v970_v53 = vrot.slane %v4585_v38, 1  ;;  %v4265_v38 = vld [vmem:[%s5943_s1 + $0xc0] sm:$0xff]  ;;  %v941_v0 = vrot.slane %v939_v55, 1  ;;  %v760_v15 = vld [vmem:[#allocation2 + $0x5c] sm:$0x1]  ;;  %v4303_v51 = vld [vmem:[%s5943_s1 + $0x1f0] sm:$0xff] }
  0x5c   : > { %1695 = vmatmul.bf16.gmra.mxu1 %v4760_v12  ;;  %v894_v46 = vor.u32 %v893_v39, %v889_v37  ;;  %v944_v3 = vshll.u32 %v4793_v54, 16  ;;  %1787 = vmatpush.bf16.msrb.mxu3 %v4265_v38  ;;  %v854_v24 = vunpack.c.l.b16 %v760_v15  ;;  %v4304_v30 = vld [vmem:[%s5943_s1 + $0x1f8] sm:$0xff]  ;;  %v951_v34 = vshll.u32 %v4824_v8, 16  ;;  %v4302_v57 = vld [vmem:[%s5943_s1 + $0x1e8] sm:$0xff] }
  0x5d   : > { %v896_v40 = vshll.u32 %v4763_v20, 16  ;;  %v971_v58 = vsel %vm968_vm9, %v969_v52, %v970_v53  ;;  %v942_v11 = vor.u32 %v941_v0, %v937_v62  ;;  %1836 = vmatpush.bf16.msrb.mxu0 %v4273_v7  ;;  %v4312_v31 = vld [vmem:[%s5943_s1 + $0x238] sm:$0xff]  ;;  %1885 = vmatpush.bf16.msrb.mxu1 %v4281_v28  ;;  %v949_v39 = vshrl.u32 %v4824_v8, 16  ;;  %v4311_v52 = vld [vmem:[%s5943_s1 + $0x230] sm:$0xff]  ;;  %v4318_v38 = vld [vmem:[%s5943_s1 + $0x28] sm:$0xff] }
  0x5e   : > { %v946_v13 = vrot.slane %v944_v3, 1  ;;  %v4848_v32 = vpack.c.b16 %v854_v24, %v854_v24  ;;  %v4320_v36 = vld [vmem:[%s5943_s1 + $0x38] sm:$0xff]  ;;  %1927 = vmatpush.bf16.msra.mxu2 %v4296_v29  ;;  %v975_v53 = vrot.slane %v4746_v1, 1  ;;  %v976_v55 = vrot.slane %v4763_v20, 1  ;;  %v4301_v62 = vld [vmem:[%s5943_s1 + $0x1e0] sm:$0xff] }
  0x5f   : > { %1671 = vmatmul.bf16.gmra.mxu2 %v4766_v63  ;;  %v898_v47 = vrot.slane %v896_v40, 1  ;;  %v4812_v60 = vld [vmem:[#allocation2 + $0x24] sm:$0xff]  ;;  %v953_v40 = vrot.slane %v951_v34, 1  ;;  %v4300_v15 = vld [vmem:[%s5943_s1 + $0x1d8] sm:$0xff]  ;;  %v985_v28 = vrot.slane %v4719_v48, 1 }
  0x60   : > { %v748_v4 = vld [vmem:[#allocation2 + $0x2c] sm:$0x1]  ;;  %v903_v6 = vshll.u32 %v4812_v60, 16  ;;  %v901_v16 = vshrl.u32 %v4812_v60, 16  ;;  %v4832_v23 = vsel %vm863_vm6, %v942_v11, %v946_v13  ;;  %1976 = vmatpush.bf16.msra.mxu3 %v4304_v30  ;;  %v956_v41 = vshll.u32 %v4848_v32, 16  ;;  %v4309_v0 = vld [vmem:[%s5943_s1 + $0x220] sm:$0xff] }
  0x61   : > { %v4804_v35 = vsel %vm863_vm6, %v894_v46, %v898_v47  ;;  %v850_v5 = vunpack.c.l.b16 %v748_v4  ;;  %2025 = vmatpush.bf16.msra.mxu0 %v4312_v31  ;;  %2938 = vmatpush.bf16.msra.mxu1 %v4320_v36  ;;  %v954_v42 = vor.u32 %v953_v40, %v949_v39  ;;  %v972_v47 = vrot.slane %v4708_v27, 1  ;;  %v4317_v3 = vld [vmem:[%s5943_s1 + $0x20] sm:$0xff]  ;;  %v4292_v13 = vld [vmem:[%s5943_s1 + $0x198] sm:$0xff]  ;;  %v4291_v30 = vld [vmem:[%s5943_s1 + $0x190] sm:$0xff] }
  0x62   : > { %1651 = vmatmul.bf16.gmra.mxu0 %v4746_v1  ;;  %v905_v19 = vrot.slane %v903_v6, 1  ;;  %v958_v2 = vrot.slane %v956_v41, 1  ;;  %1928 = vmatpush.bf16.msra.mxu2 %v4295_v50  ;;  %v978_v20 = vrot.slane %v4812_v60, 1  ;;  %v982_v11 = vrot.slane %v4704_v22, 1  ;;  %v4308_v22 = vld [vmem:[%s5943_s1 + $0x218] sm:$0xff]  ;;  %v4299_v31 = vld [vmem:[%s5943_s1 + $0x1d0] sm:$0xff] }
  0x63   : > { %v4826_v10 = vpack.c.b16 %v850_v5, %v850_v5  ;;  %v974_v45 = vsel %vm968_vm9, %v972_v47, %v973_v49  ;;  %v4925_v5 = vld [vmem:[%s5944_s2] ss:$0 sm:$0xff]  ;;  %v279_v39 = vld [vmem:[%s4488_s6 + $0x3c] sm:$0xf]  ;;  %v278_v41 = vld [vmem:[%s4488_s6 + $0x38] sm:$0xf] }
  0x64   : > { %v906_v25 = vor.u32 %v905_v19, %v901_v16  ;;  %v4861_v46 = vsel %vm863_vm6, %v954_v42, %v958_v2  ;;  %1977 = vmatpush.bf16.msra.mxu3 %v4303_v51  ;;  %v427_v42 = vshrl.u32 %v279_v39, 16  ;;  %v419_v2 = vshrl.u32 %v278_v41, 16  ;;  %v4315_v47 = vld [vmem:[%s5943_s1 + $0x10] sm:$0xff] }
  0x65   : > { %v908_v21 = vshll.u32 %v4826_v10, 16  ;;  %2026 = vmatpush.bf16.msra.mxu0 %v4311_v52  ;;  %v979_v59 = vrot.slane %v4826_v10, 1  ;;  %v981_v10 = vrot.slane %v4565_v33, 1  ;;  %v422_v52 = vshll.u32 %v278_v41, 16 }
  0x66   : > { %1715 = vmatmul.bf16.gmra.mxu3 %v4778_v43  ;;  %1929 = vmatpush.bf16.msra.mxu2 %v4294_v56  ;;  %v429_v49 = vrot.slane %v427_v42, 7  ;;  %v421_v51 = vrot.slane %v419_v2, 7 }
  0x67   : > { %v910_v26 = vrot.slane %v908_v21, 1  ;;  %v4918_v4 = vsel %vm968_vm9, %v978_v20, %v979_v59  ;;  %v4941_v21 = vsel %vm968_vm9, %v981_v10, %v982_v11 }
  0x68   : > { %1978 = vmatpush.bf16.msra.mxu3 %v4302_v57  ;;  %v424_v56 = vor.u32 %v422_v52, %v421_v51  ;;  %v425_v57 = vrot.slane %v421_v51, 4 }
  0x69   : > { %v4855_v37 = vsel %vm863_vm6, %v906_v25, %v910_v26  ;;  %v4316_v25 = vld [vmem:[%s5943_s1 + $0x18] sm:$0xff]  ;;  %v984_v26 = vrot.slane %v4699_v17, 1 }
  0x6a   : > { %1930 = vmatpush.bf16.msra.mxu2 %v4293_v61  ;;  %v4290_v61 = vld [vmem:[%s5943_s1 + $0x188] sm:$0xff] }
  0x6b   : > { %v4964_v34 = vsel %vm968_vm9, %v984_v26, %v985_v28 }
  0x6c   : > { %1700 = vmatmul.bf16.gmra.mxu1 %v4804_v35  ;;  %1979 = vmatpush.bf16.msra.mxu3 %v4301_v62  ;;  %v4298_v62 = vld [vmem:[%s5943_s1 + $0x1c8] sm:$0xff] }
  0x6e   : > { %1931 = vmatpush.bf16.msra.mxu2 %v4292_v13 }
  0x6f   : > { %1676 = vmatmul.bf16.gmra.mxu2 %v4824_v8 }
  0x70   : > { %1980 = vmatpush.bf16.msra.mxu3 %v4300_v15 }
  0x72   : > { %1656 = vmatmul.bf16.gmra.mxu0 %v4812_v60  ;;  %1932 = vmatpush.bf16.msra.mxu2 %v4291_v30 }
  0x74   : > { %1981 = vmatpush.bf16.msra.mxu3 %v4299_v31 }
  0x76   : > { %1720 = vmatmul.bf16.gmra.mxu3 %v4832_v23  ;;  %1933 = vmatpush.bf16.msra.mxu2 %v4290_v61 }
  0x78   : > { %1982 = vmatpush.bf16.msra.mxu3 %v4298_v62 }
  0x7c   : > { %1705 = vmatmul.bf16.gmra.mxu1 %v4855_v37 }
  0x7f   : > { %1739 = vmatmul.bf16.vlgmr.msrb.gmra.mxu2 %v971_v58  ;;  %v4310_v58 = vld [vmem:[%s5943_s1 + $0x228] sm:$0xff] }
  0x80   : > { %2027 = vmatpush.bf16.msra.mxu0 %v4310_v58 }
  0x82   : > { %1837 = vmatmul.bf16.vlgmr.msrb.gmra.mxu0 %v4760_v12  ;;  %v4319_v12 = vld [vmem:[%s5943_s1 + $0x30] sm:$0xff] }
  0x83   : > { %2939 = vmatpush.bf16.msra.mxu1 %v4319_v12  ;;  %v430_v12 = vshll.u32 %v279_v39, 16 }
  0x84   : > { %2028 = vmatpush.bf16.msra.mxu0 %v4309_v0  ;;  %v674_v0 = vld [vmem:[#allocation2 + $0x60] sm:$0xf] }
  0x85   : > { %v432_v58 = vor.u32 %v430_v12, %v429_v49  ;;  %v4289_v12 = vld [vmem:[%s5943_s1 + $0x180] sm:$0xff] }
  0x86   : > { %1725 = vmatmul.bf16.gmra.mxu3 %v4861_v46  ;;  %1934 = vmatpush.bf16.msra.mxu2 %v4289_v12  ;;  %v280_v12 = vld [vmem:[%s4488_s6 + $0x40] sm:$0xf] }
  0x87   : > { %2940 = vmatpush.bf16.msra.mxu1 %v4318_v38  ;;  %v678_v38 = vld [vmem:[#allocation2 + $0x68] sm:$0x1] }
  0x88   : > { %2029 = vmatpush.bf16.msra.mxu0 %v4308_v22 }
  0x8b   : > { %2941 = vmatpush.bf16.msra.mxu1 %v4317_v3  ;;  %v433_v3 = vsel %vm4501_vm4, %v425_v57, %v432_v58 }
  0x8c   : > { %1886 = vmatmul.bf16.vlgmr.msrb.gmra.mxu1 %v974_v45  ;;  %677 = vst [vmem:[#allocation2 + $0x64] sm:$0xf] %v433_v3 }
  0x8f   : > { %1744 = vmatmul.bf16.gmra.mxu2 %v974_v45  ;;  %2942 = vmatpush.bf16.msra.mxu1 %v4316_v25  ;;  %v987_v45 = vrot.slane %v4766_v63, 1 }
  0x92   : > { %1842 = vmatmul.bf16.gmra.mxu0 %v4804_v35 }
  0x93   : > { %2943 = vmatpush.bf16.msra.mxu1 %v4315_v47  ;;  %v990_v47 = vrot.slane %v4824_v8, 1 }
  0x96   : > { %1788 = vmatmul.bf16.vlgmr.msrb.gmra.mxu3 %v4708_v27  ;;  %v4897_v27 = vsel %vm968_vm9, %v975_v53, %v976_v55  ;;  %v434_v53 = vrot.slane %v429_v49, 4  ;;  %v988_v55 = vrot.slane %v4793_v54, 1  ;;  %v991_v49 = vrot.slane %v4848_v32, 1 }
  0x98   : > { %v679_v54 = vsel %vm4632_vm8, %v434_v53, %v678_v38  ;;  %v4999_v11 = vsel %vm968_vm9, %v987_v45, %v988_v55  ;;  %v4297_v45 = vld [vmem:[%s5943_s1 + $0x1c0] sm:$0xff] }
  0x99   : > { %680 = vst [vmem:[#allocation2 + $0x68] sm:$0x1] %v679_v54  ;;  %1983 = vmatpush.bf16.msra.mxu3 %v4297_v45 }
  0x9c   : > { %1891 = vmatmul.bf16.gmra.mxu1 %v4897_v27 }
  0x9f   : > { %1749 = vmatmul.bf16.gmra.mxu2 %v4897_v27 }
  0xa0   : > { %v763_v25 = vld [vmem:[#allocation2 + $0x68] sm:$0x1] }
  0xa1   : > { %v1008_v30 = vunpack.c.l.b16 %v763_v25  ;;  %v4313_v25 = vld [vmem:[%s5943_s1] sm:$0xff] }
  0xa2   : > { %1847 = vmatmul.bf16.gmra.mxu0 %v4855_v37 }
  0xa3   : > { %v1009_v42 = vpack.c.b16 %v1008_v30, %v1008_v30 }
  0xa5   : > { %v1018_v32 = vshll.u32 %v1009_v42, 16  ;;  %v1024_v30 = vrot.slane %v1009_v42, 1 }
  0xa6   : > { %1793 = vmatmul.bf16.gmra.mxu3 %v4746_v1 }
  0xa8   : > { %v1642_v6 = vpop.f32.mrf.mxu0 }
  0xa9   : > { %v1643_v7 = vadd.f32 %v4925_v5, %v1642_v6 }
  0xab   : > { %v1691_v16 = vpop.f32.mrf.mxu1 }
  0xac   : > { %1896 = vmatmul.bf16.gmra.mxu1 %v4918_v4  ;;  %v4938_v19 = vadd.f32 %v1691_v16, %v1643_v7  ;;  %v4306_v16 = vld [vmem:[%s5943_s1 + $0x208] sm:$0xff] }
  0xae   : > { %v1662_v24 = vpop.f32.mrf.mxu2 }
  0xaf   : > { %1754 = vmatmul.bf16.gmra.mxu2 %v4918_v4  ;;  %v1663_v20 = vadd.f32 %v4925_v5, %v1662_v24 }
  0xb0   : > { %v4955_v29 = vpop.f32.mrf.mxu0 }
  0xb2   : > { %1852 = vmatmul.bf16.gmra.mxu0 %v4714_v44 }
  0xb3   : > { %v4972_v48 = vpop.f32.mrf.mxu1 }
  0xb6   : > { %1798 = vmatmul.bf16.gmra.mxu3 %v4812_v60  ;;  %v4966_v36 = vpop.f32.mrf.mxu2 }
  0xbc   : > { %1901 = vmatmul.bf16.gmra.mxu1 %v4941_v21 }
  0xbf   : > { %1759 = vmatmul.bf16.gmra.mxu2 %v4941_v21 }
  0xc2   : > { %1857 = vmatmul.bf16.gmra.mxu0 %v4778_v43 }
  0xc6   : > { %1803 = vmatmul.bf16.gmra.mxu3 %v4565_v33  ;;  %v4307_v33 = vld [vmem:[%s5943_s1 + $0x210] sm:$0xff] }
  0xc7   : > { %2030 = vmatpush.bf16.msra.mxu0 %v4307_v33 }
  0xcb   : > { %2031 = vmatpush.bf16.msra.mxu0 %v4306_v16 }
  0xcc   : > { %1906 = vmatmul.bf16.gmra.mxu1 %v4964_v34 }
  0xcf   : > { %v1647_v40 = vpop.f32.mrf.mxu0  ;;  %1764 = vmatmul.bf16.gmra.mxu2 %v4964_v34 }
  0xd0   : > { %v1648_v59 = vadd.f32 %v4925_v5, %v1647_v40  ;;  %v4314_v40 = vld [vmem:[%s5943_s1 + $0x8] sm:$0xff] }
  0xd1   : > { %2944 = vmatpush.bf16.msra.mxu1 %v4314_v40 }
  0xd2   : > { %1862 = vmatmul.bf16.gmra.mxu0 %v4832_v23  ;;  %v1667_v50 = vpop.f32.mrf.mxu2 }
  0xd3   : > { %v1668_v51 = vadd.f32 %v4925_v5, %v1667_v50  ;;  %v5035_v50 = vsel %vm968_vm9, %v990_v47, %v991_v49  ;;  %v4336_v47 = vld [vmem:[%s5943_s1 + $0xb8] sm:$0xff] }
  0xd4   : > { %3036 = vmatpush.bf16.msrb.mxu3 %v4336_v47 }
  0xd5   : > { %2945 = vmatpush.bf16.msra.mxu1 %v4313_v25  ;;  %v681_v25 = vld [vmem:[#allocation2 + $0x6c] sm:$0xf] }
  0xd6   : > { %1808 = vmatmul.bf16.gmra.mxu3 %v4699_v17  ;;  %v675_v17 = vsel %vm4513_vm5, %v424_v56, %v674_v0  ;;  %v1020_v0 = vrot.slane %v1018_v32, 1 }
  0xd7   : > { %v1649_v6 = vpop.f32.mrf.mxu0  ;;  %676 = vst [vmem:[#allocation2 + $0x60] sm:$0xf] %v675_v17 }
  0xd8   : > { %v1650_v24 = vadd.f32 %v4925_v5, %v1649_v6 }
  0xd9   : > { %v1711_v7 = vpop.f32.mrf.mxu3  ;;  %v1696_v10 = vpop.f32.mrf.mxu1 }
  0xda   : > { %v5001_v13 = vadd.f32 %v1711_v7, %v1663_v20  ;;  %v5003_v15 = vadd.f32 %v1696_v10, %v1648_v59  ;;  %v1669_v22 = vpop.f32.mrf.mxu2  ;;  %v4305_v59 = vld [vmem:[%s5943_s1 + $0x200] sm:$0xff] }
  0xdb   : > { %2032 = vmatpush.bf16.msra.mxu0 %v4305_v59  ;;  %v1670_v54 = vadd.f32 %v4925_v5, %v1669_v22  ;;  %v439_v59 = vshll.u32 %v280_v12, 16 }
  0xdc   : > { %1911 = vmatmul.bf16.gmra.mxu1 %v4999_v11 }
  0xde   : > { %v5011_v28 = vld [vmem:[#allocation2 + $0x60] sm:$0xff] }
  0xdf   : > { %v1652_v26 = vpop.f32.mrf.mxu0  ;;  %1769 = vmatmul.bf16.gmra.mxu2 %v4999_v11  ;;  %v1013_v2 = vshll.u32 %v5011_v28, 16  ;;  %v1011_v55 = vshrl.u32 %v5011_v28, 16 }
  0xe0   : > { %v1653_v52 = vadd.f32 %v4925_v5, %v1652_v26  ;;  %v1023_v26 = vrot.slane %v5011_v28, 1 }
  0xe1   : > { %v5013_v31 = vpop.f32.mrf.mxu3  ;;  %v1698_v33 = vpop.f32.mrf.mxu1  ;;  %v1015_v56 = vrot.slane %v1013_v2, 1  ;;  %v4328_v2 = vld [vmem:[%s5943_s1 + $0x78] sm:$0xff] }
  0xe2   : > { %v5015_v39 = vadd.f32 %v1698_v33, %v1650_v24  ;;  %1867 = vmatmul.bf16.gmra.mxu0 %v4861_v46  ;;  %v1672_v41 = vpop.f32.mrf.mxu2  ;;  %2987 = vmatpush.bf16.msrb.mxu2 %v4328_v2  ;;  %v5070_v42 = vsel %vm968_vm9, %v1023_v26, %v1024_v30 }
  0xe3   : > { %v1016_v62 = vor.u32 %v1015_v56, %v1011_v55  ;;  %v1673_v33 = vadd.f32 %v4925_v5, %v1672_v41  ;;  %v281_v41 = vld [vmem:[%s4488_s6 + $0x44] sm:$0xf]  ;;  %v436_v55 = vshrl.u32 %v280_v12, 16  ;;  %v4327_v12 = vld [vmem:[%s5943_s1 + $0x70] sm:$0xff] }
  0xe4   : > { %v444_v56 = vshrl.u32 %v281_v41, 16 }
  0xe5   : > { %v5049_v6 = vsel %vm863_vm6, %v1016_v62, %v1020_v0  ;;  %v447_v0 = vshll.u32 %v281_v41, 16 }
  0xe6   : > { %1813 = vmatmul.bf16.gmra.mxu3 %v4766_v63  ;;  %v5082_v62 = vrot.slane %v444_v56, 7  ;;  %2988 = vmatpush.bf16.msrb.mxu2 %v4327_v12  ;;  %v282_v56 = vld [vmem:[%s4488_s6 + $0x48] sm:$0xf] }
  0xe7   : > { %v1654_v53 = vpop.f32.mrf.mxu0 }
  0xe8   : > { %v1655_v3 = vadd.f32 %v4925_v5, %v1654_v53 }
  0xe9   : > { %v1716_v57 = vpop.f32.mrf.mxu3  ;;  %v1701_v58 = vpop.f32.mrf.mxu1 }
  0xea   : > { %v5037_v38 = vadd.f32 %v1716_v57, %v1668_v51  ;;  %v5039_v20 = vadd.f32 %v1701_v58, %v1653_v52  ;;  %v1674_v61 = vpop.f32.mrf.mxu2  ;;  %v4344_v57 = vld [vmem:[%s5943_s1 + $0xf8] sm:$0xff]  ;;  %v438_v58 = vrot.slane %v436_v55, 7 }
  0xeb   : > { %3085 = vmatpush.bf16.msrb.mxu0 %v4344_v57  ;;  %v283_v57 = vld [vmem:[%s4488_s6 + $0x4c] sm:$0xf] }
  0xec   : > { %1916 = vmatmul.bf16.gmra.mxu1 %v5035_v50 }
  0xef   : > { %v1657_v17 = vpop.f32.mrf.mxu0  ;;  %1774 = vmatmul.bf16.gmra.mxu2 %v5035_v50 }
  0xf0   : > { %v1658_v40 = vadd.f32 %v4925_v5, %v1657_v17  ;;  %v441_v17 = vor.u32 %v439_v59, %v438_v58  ;;  %v461_v59 = vshrl.u32 %v283_v57, 16 }
  0xf1   : > { %v1718_v7 = vpop.f32.mrf.mxu3  ;;  %v1703_v10 = vpop.f32.mrf.mxu1 }
  0xf2   : > { %v5051_v16 = vadd.f32 %v1718_v7, %v1670_v54  ;;  %v5053_v24 = vadd.f32 %v1703_v10, %v1655_v3  ;;  %1872 = vmatmul.bf16.gmra.mxu0 %v5049_v6  ;;  %v1677_v22 = vpop.f32.mrf.mxu2  ;;  %v1675_v54 = vadd.f32 %v4925_v5, %v1674_v61  ;;  %v442_v7 = vrot.slane %v438_v58, 4 }
  0xf3   : > { %v449_v10 = vor.u32 %v447_v0, %v5082_v62  ;;  %v682_v30 = vsel %vm4513_vm5, %v441_v17, %v681_v25  ;;  %v456_v17 = vshll.u32 %v282_v56, 16 }
  0xf4   : > { %683 = vst [vmem:[#allocation2 + $0x6c] sm:$0xf] %v682_v30 }
  0xf5   : > { %v450_v61 = vsel %vm4501_vm4, %v442_v7, %v449_v10  ;;  %v5121_v7 = vrot.slane %v461_v59, 7  ;;  %v464_v10 = vshll.u32 %v283_v57, 16  ;;  %v4326_v57 = vld [vmem:[%s5943_s1 + $0x68] sm:$0xff] }
  0xf6   : > { %1818 = vmatmul.bf16.gmra.mxu3 %v4824_v8  ;;  %684 = vst [vmem:[#allocation2 + $0x70] sm:$0xf] %v450_v61  ;;  %v688_v61 = vld [vmem:[#allocation2 + $0x78] sm:$0xf]  ;;  %2989 = vmatpush.bf16.msrb.mxu2 %v4326_v57 }
  0xf7   : > { %v1659_v49 = vpop.f32.mrf.mxu0 }
  0xf8   : > { %v1660_v3 = vadd.f32 %v4925_v5, %v1659_v49 }
  0xf9   : > { %v1721_v51 = vpop.f32.mrf.mxu3  ;;  %v1706_v52 = vpop.f32.mrf.mxu1 }
  0xfa   : > { %v5074_v45 = vadd.f32 %v1721_v51, %v1673_v33  ;;  %v5076_v53 = vadd.f32 %v1706_v52, %v1658_v40  ;;  %v1679_v32 = vpop.f32.mrf.mxu2  ;;  %v4352_v51 = vld [vmem:[%s5943_s1 + $0x138] sm:$0xff]  ;;  %v1678_v52 = vadd.f32 %v4925_v5, %v1677_v22  ;;  %v453_v22 = vshrl.u32 %v282_v56, 16 }
  0xfb   : > { %3134 = vmatpush.bf16.msrb.mxu1 %v4352_v51  ;;  %v1680_v25 = vadd.f32 %v4925_v5, %v1679_v32 }
  0xfc   : > { %1921 = vmatmul.bf16.gmra.mxu1 %v5070_v42 }
  0xff   : > { %v5087_v26 = vpop.f32.mrf.mxu0  ;;  %1935 = vmatmul.bf16.vlgmr.msra.gmra.mxu2 %v4746_v1 }
 0x101   : > { %v1723_v33 = vpop.f32.mrf.mxu3  ;;  %v1708_v40 = vpop.f32.mrf.mxu1 }
 0x102   : > { %v5094_v2 = vadd.f32 %v1723_v33, %v1675_v54  ;;  %v5096_v47 = vadd.f32 %v1708_v40, %v1660_v3  ;;  %2033 = vmatmul.bf16.vlgmr.msra.gmra.mxu0 %v4897_v27  ;;  %v1740_v49 = vpop.f32.mrf.mxu2  ;;  %v4335_v27 = vld [vmem:[%s5943_s1 + $0xb0] sm:$0xff]  ;;  %v455_v3 = vrot.slane %v453_v22, 7  ;;  %v466_v40 = vor.u32 %v464_v10, %v5121_v7 }
 0x103   : > { %v1741_v1 = vadd.f32 %v1740_v49, %v4938_v19  ;;  %3037 = vmatpush.bf16.msrb.mxu3 %v4335_v27  ;;  %v4343_v54 = vld [vmem:[%s5943_s1 + $0xf0] sm:$0xff]  ;;  %v1645_v22 = vadd.f32 %v4925_v5, %v4955_v29 }
 0x104   : > { %3086 = vmatpush.bf16.msrb.mxu0 %v4343_v54  ;;  %v458_v30 = vor.u32 %v456_v17, %v455_v3  ;;  %v459_v33 = vrot.slane %v455_v3, 4  ;;  %v284_v3 = vld [vmem:[%s4488_s6 + $0x50] sm:$0xf]  ;;  %v285_v17 = vld [vmem:[%s4488_s6 + $0x54] sm:$0xf] }
 0x106   : > { %1823 = vmatmul.bf16.gmra.mxu3 %v5011_v28  ;;  %v689_v51 = vsel %vm4513_vm5, %v458_v30, %v688_v61  ;;  %v467_v27 = vsel %vm4501_vm4, %v459_v33, %v466_v40  ;;  %v478_v30 = vshrl.u32 %v285_v17, 16  ;;  %v1694_v33 = vadd.f32 %v4972_v48, %v1645_v22  ;;  %v695_v22 = vld [vmem:[#allocation2 + $0x84] sm:$0xf] }
 0x107   : > { %v5111_v41 = vpop.f32.mrf.mxu0  ;;  %690 = vst [vmem:[#allocation2 + $0x78] sm:$0xf] %v689_v51  ;;  %v4342_v51 = vld [vmem:[%s5943_s1 + $0xe8] sm:$0xff] }
 0x108   : > { %691 = vst [vmem:[#allocation2 + $0x7c] sm:$0xf] %v467_v27  ;;  %v473_v27 = vshll.u32 %v284_v3, 16  ;;  %3087 = vmatpush.bf16.msrb.mxu0 %v4342_v51 }
 0x109   : > { %v1726_v19 = vpop.f32.mrf.mxu3  ;;  %v1887_v55 = vpop.f32.mrf.mxu1 }
 0x10a   : > { %v5115_v58 = vadd.f32 %v1726_v19, %v1678_v52  ;;  %v1742_v0 = vpop.f32.mrf.mxu2 }
 0x10c   : > { %2946 = vmatmul.bf16.vlgmr.msra.gmra.mxu1 %v5011_v28 }
 0x10f   : > { %v5125_v49 = vpop.f32.mrf.mxu0  ;;  %1940 = vmatmul.bf16.gmra.mxu2 %v4812_v60  ;;  %v4351_v60 = vld [vmem:[%s5943_s1 + $0x130] sm:$0xff] }
 0x110   : > { %3135 = vmatpush.bf16.msrb.mxu1 %v4351_v60  ;;  %v1743_v60 = vadd.f32 %v1742_v0, %v1694_v33 }
 0x111   : > { %v1728_v52 = vpop.f32.mrf.mxu3  ;;  %v1889_v12 = vpop.f32.mrf.mxu1 }
 0x112   : > { %v5132_v32 = vadd.f32 %v1728_v52, %v1680_v25  ;;  %2038 = vmatmul.bf16.gmra.mxu0 %v4918_v4  ;;  %v1745_v19 = vpop.f32.mrf.mxu2  ;;  %v4334_v4 = vld [vmem:[%s5943_s1 + $0xa8] sm:$0xff]  ;;  %v470_v25 = vshrl.u32 %v284_v3, 16 }
 0x113   : > { %v5136_v56 = vadd.f32 %v1745_v19, %v5003_v15  ;;  %v5150_v15 = vld [vmem:[#allocation2 + $0x6c] sm:$0xff]  ;;  %3038 = vmatpush.bf16.msrb.mxu3 %v4334_v4  ;;  %v5167_v19 = vrot.slane %v478_v30, 7 }
 0x114   : > { %v472_v52 = vrot.slane %v470_v25, 7 }
 0x116   : > { %1984 = vmatmul.bf16.vlgmr.msra.gmra.mxu3 %v4804_v35  ;;  %v475_v48 = vor.u32 %v473_v27, %v472_v52  ;;  %v476_v57 = vrot.slane %v472_v52, 4 }
 0x117   : > { %v5152_v59 = vpop.f32.mrf.mxu0 }
 0x119   : > { %v1789_v54 = vpop.f32.mrf.mxu3  ;;  %v5154_v35 = vpop.f32.mrf.mxu1 }
 0x11a   : > { %v1790_v10 = vadd.f32 %v1789_v54, %v1741_v1  ;;  %v1747_v40 = vpop.f32.mrf.mxu2  ;;  %v481_v1 = vshll.u32 %v285_v17, 16  ;;  %v4412_v54 = vld [vmem:[#allocation2 + $0x30] sm:$0xff] }
 0x11b   : > { %v5162_v29 = vadd.f32 %v1747_v40, %v5015_v39  ;;  %v4350_v40 = vld [vmem:[%s5943_s1 + $0x128] sm:$0xff] }
 0x11c   : > { %v1839_v61 = vadd.f32 %v5087_v26, %v1790_v10  ;;  %2951 = vmatmul.bf16.gmra.mxu1 %v5150_v15  ;;  %v483_v26 = vor.u32 %v481_v1, %v5167_v19  ;;  %v696_v10 = vsel %vm4513_vm5, %v475_v48, %v695_v22  ;;  %v287_v1 = vld [vmem:[%s4488_s6 + $0x5c] sm:$0xf] }
 0x11d   : > { %697 = vst [vmem:[#allocation2 + $0x84] sm:$0xf] %v696_v10  ;;  %3136 = vmatpush.bf16.msrb.mxu1 %v4350_v40  ;;  %v702_v40 = vld [vmem:[#allocation2 + $0x90] sm:$0xf] }
 0x11e   : > { %v5169_v4 = vadd.f32 %v1887_v55, %v1839_v61  ;;  %v484_v0 = vsel %vm4501_vm4, %v476_v57, %v483_v26  ;;  %v4325_v61 = vld [vmem:[%s5943_s1 + $0x60] sm:$0xff]  ;;  %v495_v57 = vshrl.u32 %v287_v1, 16 }
 0x11f   : > { %v5172_v39 = vpop.f32.mrf.mxu0  ;;  %1945 = vmatmul.bf16.gmra.mxu2 %v4412_v54  ;;  %698 = vst [vmem:[#allocation2 + $0x88] sm:$0xf] %v484_v0  ;;  %v4341_v54 = vld [vmem:[%s5943_s1 + $0xe0] sm:$0xff] }
 0x120   : > { %2990 = vmatpush.bf16.msrb.mxu2 %v4325_v61  ;;  %v5210_v0 = vrot.slane %v495_v57, 7  ;;  %3088 = vmatpush.bf16.msrb.mxu0 %v4341_v54  ;;  %v4413_v61 = vld [vmem:[#allocation2 + $0x3c] sm:$0xff] }
 0x121   : > { %v1791_v3 = vpop.f32.mrf.mxu3  ;;  %v1894_v25 = vpop.f32.mrf.mxu1 }
 0x122   : > { %v1792_v17 = vadd.f32 %v1791_v3, %v1743_v60  ;;  %2043 = vmatmul.bf16.gmra.mxu0 %v4941_v21  ;;  %v1750_v55 = vpop.f32.mrf.mxu2  ;;  %v4333_v21 = vld [vmem:[%s5943_s1 + $0xa0] sm:$0xff] }
 0x123   : > { %v1751_v33 = vadd.f32 %v1750_v55, %v5039_v20  ;;  %3039 = vmatpush.bf16.msrb.mxu3 %v4333_v21 }
 0x124   : > { %v1841_v30 = vadd.f32 %v5111_v41, %v1792_v17  ;;  %v5193_v41 = vld [vmem:[#allocation2 + $0x78] sm:$0xff]  ;;  %v498_v17 = vshll.u32 %v287_v1, 16 }
 0x126   : > { %1989 = vmatmul.bf16.gmra.mxu3 %v4855_v37  ;;  %v5191_v51 = vadd.f32 %v1889_v12, %v1841_v30  ;;  %v286_v37 = vld [vmem:[%s4488_s6 + $0x58] sm:$0xf] }
 0x127   : > { %v5195_v20 = vpop.f32.mrf.mxu0  ;;  %v487_v48 = vshrl.u32 %v286_v37, 16  ;;  %v490_v3 = vshll.u32 %v286_v37, 16 }
 0x129   : > { %v1794_v52 = vpop.f32.mrf.mxu3  ;;  %v5197_v27 = vpop.f32.mrf.mxu1  ;;  %v489_v10 = vrot.slane %v487_v48, 7 }
 0x12a   : > { %v1795_v60 = vadd.f32 %v1794_v52, %v5136_v56  ;;  %v1752_v26 = vpop.f32.mrf.mxu2 }
 0x12b   : > { %v5205_v12 = vadd.f32 %v1752_v26, %v5053_v24  ;;  %v492_v56 = vor.u32 %v490_v3, %v489_v10  ;;  %v493_v55 = vrot.slane %v489_v10, 4  ;;  %v4349_v26 = vld [vmem:[%s5943_s1 + $0x120] sm:$0xff] }
 0x12c   : > { %v1844_v22 = vadd.f32 %v5125_v49, %v1795_v60  ;;  %2956 = vmatmul.bf16.gmra.mxu1 %v5193_v41  ;;  %v500_v49 = vor.u32 %v498_v17, %v5210_v0  ;;  %v289_v3 = vld [vmem:[%s4488_s6 + $0x64] sm:$0xf] }
 0x12d   : > { %v703_v21 = vsel %vm4513_vm5, %v492_v56, %v702_v40  ;;  %3137 = vmatpush.bf16.msrb.mxu1 %v4349_v26  ;;  %v709_v26 = vld [vmem:[#allocation2 + $0x9c] sm:$0xf] }
 0x12e   : > { %v5213_v30 = vadd.f32 %v5154_v35, %v1844_v22  ;;  %v501_v1 = vsel %vm4501_vm4, %v493_v55, %v500_v49  ;;  %704 = vst [vmem:[#allocation2 + $0x90] sm:$0xf] %v703_v21  ;;  %v512_v55 = vshrl.u32 %v289_v3, 16 }
 0x12f   : > { %v5216_v24 = vpop.f32.mrf.mxu0  ;;  %1950 = vmatmul.bf16.gmra.mxu2 %v4413_v61  ;;  %705 = vst [vmem:[#allocation2 + $0x94] sm:$0xf] %v501_v1  ;;  %v4340_v61 = vld [vmem:[%s5943_s1 + $0xd8] sm:$0xff] }
 0x130   : > { %v5254_v1 = vrot.slane %v512_v55, 7  ;;  %3089 = vmatpush.bf16.msrb.mxu0 %v4340_v61  ;;  %v1665_v55 = vadd.f32 %v4925_v5, %v4966_v36 }
 0x131   : > { %v1796_v52 = vpop.f32.mrf.mxu3  ;;  %v1899_v37 = vpop.f32.mrf.mxu1 }
 0x132   : > { %v1797_v60 = vadd.f32 %v1796_v52, %v5162_v29  ;;  %2048 = vmatmul.bf16.gmra.mxu0 %v4964_v34  ;;  %v1755_v35 = vpop.f32.mrf.mxu2  ;;  %v4324_v29 = vld [vmem:[%s5943_s1 + $0x58] sm:$0xff]  ;;  %v1714_v61 = vadd.f32 %v5013_v31, %v1665_v55 }
 0x133   : > { %v1756_v57 = vadd.f32 %v1755_v35, %v5076_v53  ;;  %v4332_v34 = vld [vmem:[%s5943_s1 + $0x98] sm:$0xff]  ;;  %2991 = vmatpush.bf16.msrb.mxu2 %v4324_v29 }
 0x134   : > { %v1846_v48 = vadd.f32 %v5152_v59, %v1797_v60  ;;  %v5238_v59 = vld [vmem:[#allocation2 + $0x84] sm:$0xff]  ;;  %3040 = vmatpush.bf16.msrb.mxu3 %v4332_v34  ;;  %v515_v60 = vshll.u32 %v289_v3, 16 }
 0x136   : > { %1994 = vmatmul.bf16.gmra.mxu3 %v4714_v44  ;;  %v5236_v22 = vadd.f32 %v1894_v25, %v1846_v48  ;;  %v288_v44 = vld [vmem:[%s4488_s6 + $0x60] sm:$0xf] }
 0x137   : > { %v5240_v53 = vpop.f32.mrf.mxu0  ;;  %v504_v56 = vshrl.u32 %v288_v44, 16  ;;  %v507_v52 = vshll.u32 %v288_v44, 16 }
 0x139   : > { %v1799_v54 = vpop.f32.mrf.mxu3  ;;  %v5242_v10 = vpop.f32.mrf.mxu1  ;;  %v506_v21 = vrot.slane %v504_v56, 7  ;;  %v4348_v56 = vld [vmem:[%s5943_s1 + $0x118] sm:$0xff] }
 0x13a   : > { %v1800_v17 = vadd.f32 %v1799_v54, %v1751_v33  ;;  %v1757_v49 = vpop.f32.mrf.mxu2  ;;  %3138 = vmatpush.bf16.msrb.mxu1 %v4348_v56 }
 0x13b   : > { %v5249_v25 = vadd.f32 %v1757_v49, %v5096_v47  ;;  %v509_v33 = vor.u32 %v507_v52, %v506_v21  ;;  %v510_v35 = vrot.slane %v506_v21, 4 }
 0x13c   : > { %v1849_v40 = vadd.f32 %v5172_v39, %v1800_v17  ;;  %2961 = vmatmul.bf16.gmra.mxu1 %v5238_v59  ;;  %v517_v39 = vor.u32 %v515_v60, %v5254_v1 }
 0x13d   : > { %v710_v29 = vsel %vm4513_vm5, %v509_v33, %v709_v26 }
 0x13e   : > { %v5257_v48 = vadd.f32 %v5197_v27, %v1849_v40  ;;  %v518_v44 = vsel %vm4501_vm4, %v510_v35, %v517_v39  ;;  %711 = vst [vmem:[#allocation2 + $0x9c] sm:$0xf] %v710_v29  ;;  %v291_v40 = vld [vmem:[%s4488_s6 + $0x6c] sm:$0xf]  ;;  %v4339_v39 = vld [vmem:[%s5943_s1 + $0xd0] sm:$0xff] }
 0x13f   : > { %v5260_v47 = vpop.f32.mrf.mxu0  ;;  %1955 = vmatmul.bf16.gmra.mxu2 %v4766_v63  ;;  %712 = vst [vmem:[#allocation2 + $0xa0] sm:$0xf] %v518_v44  ;;  %v529_v60 = vshrl.u32 %v291_v40, 16  ;;  %v532_v44 = vshll.u32 %v291_v40, 16  ;;  %3090 = vmatpush.bf16.msrb.mxu0 %v4339_v39  ;;  %v685_v40 = vld [vmem:[#allocation2 + $0x74] sm:$0x1] }
 0x141   : > { %v1801_v34 = vpop.f32.mrf.mxu3  ;;  %v5265_v54 = vpop.f32.mrf.mxu1 }
 0x142   : > { %v1802_v27 = vadd.f32 %v1801_v34, %v5205_v12  ;;  %2053 = vmatmul.bf16.gmra.mxu0 %v4999_v11  ;;  %v1760_v3 = vpop.f32.mrf.mxu2  ;;  %v4323_v11 = vld [vmem:[%s5943_s1 + $0x50] sm:$0xff]  ;;  %v5305_v34 = vrot.slane %v529_v60, 7 }
 0x143   : > { %v5273_v63 = vadd.f32 %v1760_v3, %v5001_v13  ;;  %v5289_v12 = vld [vmem:[#allocation2 + $0x90] sm:$0xff]  ;;  %2992 = vmatpush.bf16.msrb.mxu2 %v4323_v11  ;;  %v716_v3 = vld [vmem:[#allocation2 + $0xa8] sm:$0xf] }
 0x144   : > { %v1851_v17 = vadd.f32 %v5195_v20, %v1802_v27  ;;  %v4331_v20 = vld [vmem:[%s5943_s1 + $0x90] sm:$0xff] }
 0x145   : > { %3041 = vmatpush.bf16.msrb.mxu3 %v4331_v20 }
 0x146   : > { %1999 = vmatmul.bf16.gmra.mxu3 %v4778_v43  ;;  %v5287_v13 = vadd.f32 %v1899_v37, %v1851_v17  ;;  %v290_v43 = vld [vmem:[%s4488_s6 + $0x68] sm:$0xf] }
 0x147   : > { %v5291_v49 = vpop.f32.mrf.mxu0  ;;  %v521_v52 = vshrl.u32 %v290_v43, 16  ;;  %v524_v29 = vshll.u32 %v290_v43, 16 }
 0x149   : > { %v1804_v5 = vpop.f32.mrf.mxu3  ;;  %v5293_v36 = vpop.f32.mrf.mxu1  ;;  %v523_v26 = vrot.slane %v521_v52, 7 }
 0x14a   : > { %v1805_v21 = vadd.f32 %v1804_v5, %v1756_v57  ;;  %v1762_v33 = vpop.f32.mrf.mxu2  ;;  %v451_v5 = vrot.slane %v5082_v62, 4 }
 0x14b   : > { %v5300_v35 = vadd.f32 %v1762_v33, %v1714_v61  ;;  %v526_v31 = vor.u32 %v524_v29, %v523_v26  ;;  %v527_v57 = vrot.slane %v523_v26, 4  ;;  %v292_v33 = vld [vmem:[%s4488_s6 + $0x70] sm:$0xf] }
 0x14c   : > { %v1854_v37 = vadd.f32 %v5216_v24, %v1805_v21  ;;  %2966 = vmatmul.bf16.gmra.mxu1 %v5289_v12  ;;  %v534_v24 = vor.u32 %v532_v44, %v5305_v34  ;;  %v4347_v21 = vld [vmem:[%s5943_s1 + $0x110] sm:$0xff]  ;;  %v538_v26 = vshrl.u32 %v292_v33, 16 }
 0x14d   : > { %v717_v56 = vsel %vm4513_vm5, %v526_v31, %v716_v3  ;;  %3139 = vmatpush.bf16.msrb.mxu1 %v4347_v21  ;;  %v541_v3 = vshll.u32 %v292_v33, 16 }
 0x14e   : > { %v5308_v27 = vadd.f32 %v5242_v10, %v1854_v37  ;;  %v535_v20 = vsel %vm4501_vm4, %v527_v57, %v534_v24  ;;  %718 = vst [vmem:[#allocation2 + $0xa8] sm:$0xf] %v717_v56  ;;  %v293_v37 = vld [vmem:[%s4488_s6 + $0x74] sm:$0xf]  ;;  %v4338_v57 = vld [vmem:[%s5943_s1 + $0xc8] sm:$0xff]  ;;  %v540_v24 = vrot.slane %v538_v26, 7 }
 0x14f   : > { %v5311_v17 = vpop.f32.mrf.mxu0  ;;  %1960 = vmatmul.bf16.gmra.mxu2 %v4824_v8  ;;  %719 = vst [vmem:[#allocation2 + $0xac] sm:$0xf] %v535_v20  ;;  %v546_v29 = vshrl.u32 %v293_v37, 16  ;;  %3091 = vmatpush.bf16.msrb.mxu0 %v4338_v57 }
 0x150   : > { %v544_v20 = vrot.slane %v540_v24, 4 }
 0x151   : > { %v1806_v55 = vpop.f32.mrf.mxu3  ;;  %v5316_v11 = vpop.f32.mrf.mxu1  ;;  %v5353_v56 = vrot.slane %v546_v29, 7 }
 0x152   : > { %v1807_v10 = vadd.f32 %v1806_v55, %v5249_v25  ;;  %2058 = vmatmul.bf16.gmra.mxu0 %v5035_v50  ;;  %v1765_v43 = vpop.f32.mrf.mxu2  ;;  %v686_v25 = vsel %vm4632_vm8, %v451_v5, %v685_v40  ;;  %v4322_v50 = vld [vmem:[%s5943_s1 + $0x48] sm:$0xff]  ;;  %v549_v55 = vshll.u32 %v293_v37, 16  ;;  %v723_v5 = vld [vmem:[#allocation2 + $0xb4] sm:$0xf]  ;;  %v4329_v37 = vld [vmem:[%s5943_s1 + $0x80] sm:$0xff] }
 0x153   : > { %v1766_v61 = vadd.f32 %v1765_v43, %v5037_v38  ;;  %687 = vst [vmem:[#allocation2 + $0x74] sm:$0x1] %v686_v25  ;;  %v4330_v38 = vld [vmem:[%s5943_s1 + $0x88] sm:$0xff]  ;;  %2993 = vmatpush.bf16.msrb.mxu2 %v4322_v50 }
 0x154   : > { %v1856_v8 = vadd.f32 %v5240_v53, %v1807_v10  ;;  %v5340_v53 = vld [vmem:[#allocation2 + $0x9c] sm:$0xff]  ;;  %3042 = vmatpush.bf16.msrb.mxu3 %v4330_v38 }
 0x156   : > { %2004 = vmatmul.bf16.gmra.mxu3 %v4832_v23  ;;  %v5338_v62 = vadd.f32 %v5265_v54, %v1856_v8 }
 0x157   : > { %v5342_v52 = vpop.f32.mrf.mxu0 }
 0x158   : > { %3043 = vmatpush.bf16.msrb.mxu3 %v4329_v37 }
 0x159   : > { %v1809_v60 = vpop.f32.mrf.mxu3  ;;  %v1912_v23 = vpop.f32.mrf.mxu1 }
 0x15a   : > { %v1810_v39 = vadd.f32 %v1809_v60, %v5273_v63  ;;  %v1767_v44 = vpop.f32.mrf.mxu2  ;;  %v543_v63 = vor.u32 %v541_v3, %v540_v24  ;;  %v766_v50 = vld [vmem:[#allocation2 + $0x74] sm:$0x1]  ;;  %v4346_v60 = vld [vmem:[%s5943_s1 + $0x108] sm:$0xff] }
 0x15b   : > { %v1768_v54 = vadd.f32 %v1767_v44, %v5051_v16  ;;  %3140 = vmatpush.bf16.msrb.mxu1 %v4346_v60  ;;  %v1034_v33 = vunpack.c.l.b16 %v766_v50 }
 0x15c   : > { %v1859_v31 = vadd.f32 %v5260_v47, %v1810_v39  ;;  %2971 = vmatmul.bf16.gmra.mxu1 %v5340_v53  ;;  %v551_v47 = vor.u32 %v549_v55, %v5353_v56  ;;  %v724_v16 = vsel %vm4513_vm5, %v543_v63, %v723_v5  ;;  %v4337_v55 = vld [vmem:[%s5943_s1 + $0xc0] sm:$0xff] }
 0x15d   : > { %725 = vst [vmem:[#allocation2 + $0xb4] sm:$0xf] %v724_v16  ;;  %v1035_v44 = vpack.c.b16 %v1034_v33, %v1034_v33  ;;  %3092 = vmatpush.bf16.msrb.mxu0 %v4337_v55 }
 0x15e   : > { %v5356_v10 = vadd.f32 %v5293_v36, %v1859_v31  ;;  %v552_v21 = vsel %vm4501_vm4, %v544_v20, %v551_v47 }
 0x15f   : > { %v5359_v43 = vpop.f32.mrf.mxu0  ;;  %1965 = vmatmul.bf16.gmra.mxu2 %v5011_v28  ;;  %726 = vst [vmem:[#allocation2 + $0xb8] sm:$0xf] %v552_v21  ;;  %v1050_v3 = vrot.slane %v1035_v44, 1  ;;  %v4360_v21 = vld [vmem:[%s5943_s1 + $0x178] sm:$0xff] }
 0x161   : > { %v1811_v40 = vpop.f32.mrf.mxu3  ;;  %v1914_v8 = vpop.f32.mrf.mxu1 }
 0x162   : > { %v1812_v25 = vadd.f32 %v1811_v40, %v5300_v35  ;;  %2063 = vmatmul.bf16.gmra.mxu0 %v5070_v42  ;;  %v1770_v36 = vpop.f32.mrf.mxu2  ;;  %v4321_v35 = vld [vmem:[%s5943_s1 + $0x40] sm:$0xff] }
 0x163   : > { %v1771_v28 = vadd.f32 %v1770_v36, %v5074_v45  ;;  %v5383_v45 = vld [vmem:[#allocation2 + $0xa8] sm:$0xff]  ;;  %2994 = vmatpush.bf16.msrb.mxu2 %v4321_v35  ;;  %v692_v36 = vld [vmem:[#allocation2 + $0x80] sm:$0x1] }
 0x164   : > { %v1861_v38 = vadd.f32 %v5291_v49, %v1812_v25  ;;  %v468_v25 = vrot.slane %v5121_v7, 4  ;;  %v1037_v7 = vshrl.u32 %v5150_v15, 16 }
 0x166   : > { %2009 = vmatmul.bf16.gmra.mxu3 %v4861_v46  ;;  %v5381_v49 = vadd.f32 %v5316_v11, %v1861_v38  ;;  %v1049_v11 = vrot.slane %v5150_v15, 1  ;;  %v5419_v50 = vld [vmem:[#allocation2 + $0xb4] sm:$0xff]  ;;  %v693_v60 = vsel %vm4632_vm8, %v468_v25, %v692_v36 }
 0x167   : > { %v5385_v39 = vpop.f32.mrf.mxu0  ;;  %3183 = vmatpush.bf16.msra.mxu2 %v4360_v21  ;;  %694 = vst [vmem:[#allocation2 + $0x80] sm:$0x1] %v693_v60 }
 0x169   : > { %v1814_v46 = vpop.f32.mrf.mxu3  ;;  %v1917_v26 = vpop.f32.mrf.mxu1 }
 0x16a   : > { %v1815_v29 = vadd.f32 %v1814_v46, %v1766_v61  ;;  %v1772_v31 = vpop.f32.mrf.mxu2  ;;  %v1044_v46 = vshll.u32 %v1035_v44, 16 }
 0x16b   : > { %v1773_v24 = vadd.f32 %v1772_v31, %v5094_v2 }
 0x16c   : > { %v1864_v57 = vadd.f32 %v5311_v17, %v1815_v29  ;;  %2976 = vmatmul.bf16.gmra.mxu1 %v5383_v45  ;;  %v5400_v17 = vsel %vm968_vm9, %v1049_v11, %v1050_v3  ;;  %v4376_v11 = vld [vmem:[%s5943_s1 + $0x1f8] sm:$0xff] }
 0x16d   : > { %3281 = vmatpush.bf16.msra.mxu0 %v4376_v11  ;;  %v2205_v11 = vshrl.u32 %v5193_v41, 16 }
 0x16e   : > { %v5394_v63 = vadd.f32 %v1912_v23, %v1864_v57  ;;  %v4345_v23 = vld [vmem:[%s5943_s1 + $0x100] sm:$0xff] }
 0x16f   : > { %v5396_v20 = vpop.f32.mrf.mxu0  ;;  %1970 = vmatmul.bf16.gmra.mxu2 %v5150_v15  ;;  %3141 = vmatpush.bf16.msrb.mxu1 %v4345_v23  ;;  %v485_v23 = vrot.slane %v5167_v19, 4 }
 0x171   : > { %v1816_v61 = vpop.f32.mrf.mxu3  ;;  %v1919_v47 = vpop.f32.mrf.mxu1 }
 0x172   : > { %v1817_v2 = vadd.f32 %v1816_v61, %v1768_v54  ;;  %2068 = vmatmul.bf16.gmra.mxu0 %v5400_v17  ;;  %v1775_v5 = vpop.f32.mrf.mxu2  ;;  %v4368_v54 = vld [vmem:[%s5943_s1 + $0x1b8] sm:$0xff]  ;;  %v1046_v61 = vrot.slane %v1044_v46, 1 }
 0x173   : > { %v1776_v40 = vadd.f32 %v1775_v5, %v5115_v58  ;;  %v1039_v58 = vshll.u32 %v5150_v15, 16  ;;  %3232 = vmatpush.bf16.msra.mxu3 %v4368_v54  ;;  %v699_v54 = vld [vmem:[#allocation2 + $0x8c] sm:$0x1] }
 0x174   : > { %v1866_v16 = vadd.f32 %v5342_v52, %v1817_v2  ;;  %v700_v19 = vsel %vm4632_vm8, %v485_v23, %v699_v54  ;;  %v502_v23 = vrot.slane %v5210_v0, 4 }
 0x175   : > { %701 = vst [vmem:[#allocation2 + $0x8c] sm:$0x1] %v700_v19 }
 0x176   : > { %2014 = vmatmul.bf16.gmra.mxu3 %v5049_v6  ;;  %v5416_v52 = vadd.f32 %v1914_v8, %v1866_v16  ;;  %v1041_v8 = vrot.slane %v1039_v58, 1 }
 0x177   : > { %v5421_v38 = vpop.f32.mrf.mxu0 }
 0x178   : > { %v1042_v55 = vor.u32 %v1041_v8, %v1037_v7  ;;  %v2207_v7 = vshll.u32 %v5193_v41, 16 }
 0x179   : > { %v1819_v33 = vpop.f32.mrf.mxu3  ;;  %v1922_v35 = vpop.f32.mrf.mxu1 }
 0x17a   : > { %v1820_v37 = vadd.f32 %v1819_v33, %v1771_v28  ;;  %v1777_v29 = vpop.f32.mrf.mxu2  ;;  %v1047_v5 = vsel %vm863_vm6, %v1042_v55, %v1046_v61 }
 0x17b   : > { %v1778_v57 = vadd.f32 %v1777_v29, %v5132_v32 }
 0x17c   : > { %v1869_v31 = vadd.f32 %v5359_v43, %v1820_v37  ;;  %2981 = vmatmul.bf16.gmra.mxu1 %v5419_v50 }
 0x17e   : > { %v5432_v3 = vadd.f32 %v1917_v26, %v1869_v31  ;;  %v769_v26 = vld [vmem:[#allocation2 + $0x80] sm:$0x1] }
 0x17f   : > { %v5434_v28 = vpop.f32.mrf.mxu0  ;;  %2995 = vmatmul.bf16.vlgmr.msrb.gmra.mxu2 %v5049_v6  ;;  %v4384_v6 = vld [vmem:[%s5943_s1 + $0x238] sm:$0xff]  ;;  %v2192_v58 = vunpack.c.l.b16 %v769_v26  ;;  %v772_v26 = vld [vmem:[#allocation2 + $0x8c] sm:$0x1] }
 0x180   : > { %3330 = vmatpush.bf16.msra.mxu1 %v4384_v6  ;;  %v706_v6 = vld [vmem:[#allocation2 + $0x98] sm:$0x1] }
 0x181   : > { %v1821_v44 = vpop.f32.mrf.mxu3  ;;  %v1924_v2 = vpop.f32.mrf.mxu1  ;;  %v5459_v37 = vpack.c.b16 %v2192_v58, %v2192_v58 }
 0x182   : > { %v1822_v43 = vadd.f32 %v1821_v44, %v1773_v24  ;;  %3093 = vmatmul.bf16.vlgmr.msrb.gmra.mxu0 %v5150_v15  ;;  %v1936_v32 = vpop.f32.mrf.mxu2  ;;  %v4359_v15 = vld [vmem:[%s5943_s1 + $0x170] sm:$0xff] }
 0x183   : > { %3184 = vmatpush.bf16.msra.mxu2 %v4359_v15  ;;  %v2212_v55 = vshll.u32 %v5459_v37, 16  ;;  %v4383_v15 = vld [vmem:[%s5943_s1 + $0x230] sm:$0xff] }
 0x184   : > { %v1871_v16 = vadd.f32 %v5385_v39, %v1822_v43  ;;  %v4367_v39 = vld [vmem:[%s5943_s1 + $0x1b0] sm:$0xff]  ;;  %3331 = vmatpush.bf16.msra.mxu1 %v4383_v15 }
 0x185   : > { %3233 = vmatpush.bf16.msra.mxu3 %v4367_v39  ;;  %v2193_v39 = vunpack.c.l.b16 %v772_v26 }
 0x186   : > { %2019 = vmatmul.bf16.gmra.mxu3 %v1047_v5  ;;  %v5441_v21 = vadd.f32 %v1919_v47, %v1871_v16  ;;  %v1937_v16 = vadd.f32 %v1936_v32, %v5169_v4  ;;  %v707_v4 = vsel %vm4632_vm8, %v502_v23, %v706_v6 }
 0x187   : > { %v5443_v25 = vpop.f32.mrf.mxu0  ;;  %708 = vst [vmem:[#allocation2 + $0x98] sm:$0x1] %v707_v4 }
 0x189   : > { %v1824_v24 = vpop.f32.mrf.mxu3  ;;  %v5456_v47 = vpop.f32.mrf.mxu1 }
 0x18a   : > { %v1825_v36 = vadd.f32 %v1824_v24, %v1776_v40  ;;  %v1938_v60 = vpop.f32.mrf.mxu2  ;;  %v4375_v40 = vld [vmem:[%s5943_s1 + $0x1f0] sm:$0xff] }
 0x18b   : > { %3282 = vmatpush.bf16.msra.mxu0 %v4375_v40 }
 0x18c   : > { %v1874_v33 = vadd.f32 %v5396_v20, %v1825_v36  ;;  %3142 = vmatmul.bf16.vlgmr.msrb.gmra.mxu1 %v1047_v5  ;;  %v2209_v20 = vrot.slane %v2207_v7, 1  ;;  %v5506_v36 = vpack.c.b16 %v2193_v39, %v2193_v39  ;;  %v1939_v7 = vadd.f32 %v1938_v60, %v5191_v51 }
 0x18e   : > { %v5462_v8 = vadd.f32 %v1922_v35, %v1874_v33  ;;  %v2210_v43 = vor.u32 %v2209_v20, %v2205_v11  ;;  %v2219_v33 = vshll.u32 %v5238_v59, 16  ;;  %v2217_v20 = vshrl.u32 %v5238_v59, 16  ;;  %v775_v15 = vld [vmem:[#allocation2 + $0x98] sm:$0x1] }
 0x18f   : > { %v5464_v46 = vpop.f32.mrf.mxu0  ;;  %3000 = vmatmul.bf16.gmra.mxu2 %v1047_v5  ;;  %v2214_v5 = vrot.slane %v2212_v55, 1 }
 0x190   : > { %v2221_v55 = vrot.slane %v2219_v33, 1  ;;  %v2194_v33 = vunpack.c.l.b16 %v775_v15 }
 0x191   : > { %v1826_v29 = vpop.f32.mrf.mxu3  ;;  %v5469_v31 = vpop.f32.mrf.mxu1  ;;  %v5497_v32 = vsel %vm863_vm6, %v2210_v43, %v2214_v5 }
 0x192   : > { %v1827_v61 = vadd.f32 %v1826_v29, %v1778_v57  ;;  %3098 = vmatmul.bf16.gmra.mxu0 %v5193_v41  ;;  %v1941_v35 = vpop.f32.mrf.mxu2  ;;  %v4374_v29 = vld [vmem:[%s5943_s1 + $0x1e8] sm:$0xff]  ;;  %v2222_v5 = vor.u32 %v2221_v55, %v2217_v20  ;;  %v5547_v20 = vpack.c.b16 %v2194_v33, %v2194_v33  ;;  %v2231_v55 = vshll.u32 %v5289_v12, 16 }
 0x193   : > { %3283 = vmatpush.bf16.msra.mxu0 %v4374_v29  ;;  %v1942_v43 = vadd.f32 %v1941_v35, %v5213_v30  ;;  %v4357_v30 = vld [vmem:[%s5943_s1 + $0x160] sm:$0xff]  ;;  %v536_v33 = vrot.slane %v5305_v34, 4 }
 0x194   : > { %v1876_v44 = vadd.f32 %v5421_v38, %v1827_v61  ;;  %v4358_v38 = vld [vmem:[%s5943_s1 + $0x168] sm:$0xff]  ;;  %v2224_v61 = vshll.u32 %v5506_v36, 16  ;;  %v4365_v35 = vld [vmem:[%s5943_s1 + $0x1a0] sm:$0xff] }
 0x195   : > { %3185 = vmatpush.bf16.msra.mxu2 %v4358_v38  ;;  %v519_v38 = vrot.slane %v5254_v1, 4 }
 0x196   : > { %3044 = vmatmul.bf16.vlgmr.msrb.gmra.mxu3 %v5070_v42  ;;  %v5478_v54 = vadd.f32 %v1924_v2, %v1876_v44  ;;  %v4366_v42 = vld [vmem:[%s5943_s1 + $0x1a8] sm:$0xff] }
 0x197   : > { %v5481_v57 = vpop.f32.mrf.mxu0  ;;  %3234 = vmatpush.bf16.msra.mxu3 %v4366_v42  ;;  %v713_v42 = vld [vmem:[#allocation2 + $0xa4] sm:$0x1] }
 0x198   : > { %v714_v1 = vsel %vm4632_vm8, %v519_v38, %v713_v42 }
 0x199   : > { %v1985_v0 = vpop.f32.mrf.mxu3  ;;  %v5494_v2 = vpop.f32.mrf.mxu1  ;;  %715 = vst [vmem:[#allocation2 + $0xa4] sm:$0x1] %v714_v1  ;;  %3186 = vmatpush.bf16.msra.mxu2 %v4357_v30 }
 0x19a   : > { %v1986_v19 = vadd.f32 %v1985_v0, %v1937_v16  ;;  %v1943_v24 = vpop.f32.mrf.mxu2  ;;  %v2226_v16 = vrot.slane %v2224_v61, 1 }
 0x19b   : > { %3235 = vmatpush.bf16.msra.mxu3 %v4365_v35 }
 0x19c   : > { %v2035_v58 = vadd.f32 %v5434_v28, %v1986_v19  ;;  %3147 = vmatmul.bf16.gmra.mxu1 %v5497_v32 }
 0x19e   : > { %2074 = vst [vmem:[%s5502_s14] sm:$0xff] %v2035_v58  ;;  %v2112_v26 = vmul.f32 %v2035_v58, %v2035_v58 }
 0x19f   : > { %v5511_v40 = vpop.f32.mrf.mxu0  ;;  %3005 = vmatmul.bf16.gmra.mxu2 %v5497_v32 }
 0x1a1   : > { %v1987_v11 = vpop.f32.mrf.mxu3  ;;  %v5517_v28 = vpop.f32.mrf.mxu1 }
 0x1a2   : > { %v1988_v44 = vadd.f32 %v1987_v11, %v1939_v7  ;;  %3103 = vmatmul.bf16.gmra.mxu0 %v5238_v59  ;;  %v1946_v51 = vpop.f32.mrf.mxu2 }
 0x1a3   : > { %v1947_v1 = vadd.f32 %v1946_v51, %v5257_v48 }
 0x1a4   : > { %v2037_v60 = vadd.f32 %v5443_v25, %v1988_v44  ;;  %v4382_v25 = vld [vmem:[%s5943_s1 + $0x228] sm:$0xff] }
 0x1a5   : > { %3332 = vmatpush.bf16.msra.mxu1 %v4382_v25 }
 0x1a6   : > { %2075 = vst [vmem:[%s5502_s14 + $0x8] sm:$0xff] %v2037_v60  ;;  %v2090_v23 = vadd.f32 %v2037_v60, %v2035_v58  ;;  %v2113_v6 = vmul.f32 %v2037_v60, %v2037_v60  ;;  %3049 = vmatmul.bf16.gmra.mxu3 %v5400_v17  ;;  %v5543_v58 = vsel %vm863_vm6, %v2222_v5, %v2226_v16  ;;  %v2282_v5 = vrot.slane %v5193_v41, 1 }
 0x1a7   : > { %v5527_v0 = vpop.f32.mrf.mxu0  ;;  %v1944_v60 = vadd.f32 %v1943_v24, %v5236_v22  ;;  %v2233_v22 = vrot.slane %v2231_v55, 1  ;;  %v2236_v41 = vshll.u32 %v5547_v20, 16 }
 0x1a8   : > { %v2128_v4 = vadd.f32 %v2113_v6, %v2112_v26 }
 0x1a9   : > { %v1990_v39 = vpop.f32.mrf.mxu3  ;;  %v5540_v19 = vpop.f32.mrf.mxu1  ;;  %v2238_v25 = vrot.slane %v2236_v41, 1 }
 0x1aa   : > { %v1991_v7 = vadd.f32 %v1990_v39, %v1942_v43  ;;  %v1948_v29 = vpop.f32.mrf.mxu2  ;;  %v2283_v43 = vrot.slane %v5459_v37, 1  ;;  %v778_v39 = vld [vmem:[#allocation2 + $0xa4] sm:$0x1] }
 0x1ac   : > { %v2040_v11 = vadd.f32 %v5464_v46, %v1991_v7  ;;  %3152 = vmatmul.bf16.gmra.mxu1 %v5543_v58  ;;  %v4373_v46 = vld [vmem:[%s5943_s1 + $0x1e0] sm:$0xff]  ;;  %v5565_v37 = vsel %vm968_vm9, %v2282_v5, %v2283_v43  ;;  %v720_v7 = vld [vmem:[#allocation2 + $0xb0] sm:$0x1]  ;;  %v2195_v5 = vunpack.c.l.b16 %v778_v39 }
 0x1ad   : > { %3284 = vmatpush.bf16.msra.mxu0 %v4373_v46  ;;  %v721_v48 = vsel %vm4632_vm8, %v536_v33, %v720_v7 }
 0x1ae   : > { %2076 = vst [vmem:[%s5502_s14 + $0x10] sm:$0xff] %v2040_v11  ;;  %v2091_v61 = vadd.f32 %v2090_v23, %v2040_v11  ;;  %v2114_v44 = vmul.f32 %v2040_v11, %v2040_v11  ;;  %v2229_v23 = vshrl.u32 %v5289_v12, 16 }
 0x1af   : > { %v5554_v26 = vpop.f32.mrf.mxu0  ;;  %3010 = vmatmul.bf16.gmra.mxu2 %v5543_v58  ;;  %722 = vst [vmem:[#allocation2 + $0xb0] sm:$0x1] %v721_v48 }
 0x1b0   : > { %v2129_v16 = vadd.f32 %v2128_v4, %v2114_v44  ;;  %v2234_v4 = vor.u32 %v2233_v22, %v2229_v23  ;;  %v4364_v44 = vld [vmem:[%s5943_s1 + $0x198] sm:$0xff]  ;;  %v2243_v23 = vshll.u32 %v5340_v53, 16 }
 0x1b1   : > { %v1992_v6 = vpop.f32.mrf.mxu3  ;;  %v5560_v15 = vpop.f32.mrf.mxu1  ;;  %3236 = vmatpush.bf16.msra.mxu3 %v4364_v44 }
 0x1b2   : > { %v1993_v24 = vadd.f32 %v1992_v6, %v1944_v60  ;;  %3108 = vmatmul.bf16.gmra.mxu0 %v5289_v12  ;;  %v1951_v38 = vpop.f32.mrf.mxu2  ;;  %v5589_v60 = vsel %vm863_vm6, %v2234_v4, %v2238_v25  ;;  %v5593_v6 = vpack.c.b16 %v2195_v5, %v2195_v5  ;;  %v2286_v4 = vrot.slane %v5506_v36, 1 }
 0x1b3   : > { %v1952_v48 = vadd.f32 %v1951_v38, %v5308_v27  ;;  %v553_v5 = vrot.slane %v5353_v56, 4 }
 0x1b4   : > { %v2042_v42 = vadd.f32 %v5481_v57, %v1993_v24  ;;  %v4381_v57 = vld [vmem:[%s5943_s1 + $0x220] sm:$0xff]  ;;  %v1949_v24 = vadd.f32 %v1948_v29, %v5287_v13  ;;  %v2245_v13 = vrot.slane %v2243_v23, 1  ;;  %v2292_v14 = vrot.slane %v5593_v6, 1 }
 0x1b5   : > { %3333 = vmatpush.bf16.msra.mxu1 %v4381_v57 }
 0x1b6   : > { %2077 = vst [vmem:[%s5502_s14 + $0x18] sm:$0xff] %v2042_v42  ;;  %v2092_v30 = vadd.f32 %v2091_v61, %v2042_v42  ;;  %v2115_v35 = vmul.f32 %v2042_v42, %v2042_v42  ;;  %3054 = vmatmul.bf16.gmra.mxu3 %v5565_v37  ;;  %v4356_v61 = vld [vmem:[%s5943_s1 + $0x158] sm:$0xff]  ;;  %v2285_v42 = vrot.slane %v5238_v59, 1  ;;  %v2248_v59 = vshll.u32 %v5593_v6, 16 }
 0x1b7   : > { %v5573_v55 = vpop.f32.mrf.mxu0  ;;  %3187 = vmatpush.bf16.msra.mxu2 %v4356_v61 }
 0x1b8   : > { %v2130_v11 = vadd.f32 %v2129_v16, %v2115_v35  ;;  %v5611_v36 = vsel %vm968_vm9, %v2285_v42, %v2286_v4  ;;  %v2250_v57 = vrot.slane %v2248_v59, 1 }
 0x1b9   : > { %v1995_v34 = vpop.f32.mrf.mxu3  ;;  %v5586_v51 = vpop.f32.mrf.mxu1 }
 0x1ba   : > { %v1996_v43 = vadd.f32 %v1995_v34, %v1947_v1  ;;  %v1953_v16 = vpop.f32.mrf.mxu2  ;;  %v781_v34 = vld [vmem:[#allocation2 + $0xb0] sm:$0x1] }
 0x1bb   : > { %v2196_v42 = vunpack.c.l.b16 %v781_v34 }
 0x1bc   : > { %v2045_v46 = vadd.f32 %v5511_v40, %v1996_v43  ;;  %3157 = vmatmul.bf16.gmra.mxu1 %v5589_v60  ;;  %v4372_v40 = vld [vmem:[%s5943_s1 + $0x1d8] sm:$0xff] }
 0x1bd   : > { %3285 = vmatpush.bf16.msra.mxu0 %v4372_v40  ;;  %v727_v43 = vld [vmem:[#allocation2 + $0xbc] sm:$0x1] }
 0x1be   : > { %2078 = vst [vmem:[%s5502_s14 + $0x20] sm:$0xff] %v2045_v46  ;;  %v2093_v22 = vadd.f32 %v2092_v30, %v2045_v46  ;;  %v2116_v41 = vmul.f32 %v2045_v46, %v2045_v46  ;;  %v2241_v30 = vshrl.u32 %v5340_v53, 16  ;;  %v728_v27 = vsel %vm4632_vm8, %v553_v5, %v727_v43 }
 0x1bf   : > { %v5600_v35 = vpop.f32.mrf.mxu0  ;;  %3015 = vmatmul.bf16.gmra.mxu2 %v5589_v60  ;;  %729 = vst [vmem:[#allocation2 + $0xbc] sm:$0x1] %v728_v27 }
 0x1c0   : > { %v2131_v25 = vadd.f32 %v2130_v11, %v2116_v41  ;;  %v2246_v11 = vor.u32 %v2245_v13, %v2241_v30  ;;  %v4363_v41 = vld [vmem:[%s5943_s1 + $0x190] sm:$0xff]  ;;  %v2255_v30 = vshll.u32 %v5383_v45, 16 }
 0x1c1   : > { %v1997_v1 = vpop.f32.mrf.mxu3  ;;  %v5606_v39 = vpop.f32.mrf.mxu1  ;;  %3237 = vmatpush.bf16.msra.mxu3 %v4363_v41 }
 0x1c2   : > { %v1998_v29 = vadd.f32 %v1997_v1, %v1949_v24  ;;  %3113 = vmatmul.bf16.gmra.mxu0 %v5340_v53  ;;  %v1956_v33 = vpop.f32.mrf.mxu2  ;;  %v5635_v24 = vsel %vm863_vm6, %v2246_v11, %v2250_v57  ;;  %v5641_v1 = vpack.c.b16 %v2196_v42, %v2196_v42  ;;  %v2289_v11 = vrot.slane %v5547_v20, 1 }
 0x1c3   : > { %v2257_v5 = vrot.slane %v2255_v30, 1 }
 0x1c4   : > { %v2047_v7 = vadd.f32 %v5527_v0, %v1998_v29  ;;  %v4380_v0 = vld [vmem:[%s5943_s1 + $0x218] sm:$0xff]  ;;  %v1954_v29 = vadd.f32 %v1953_v16, %v5338_v62 }
 0x1c5   : > { %3334 = vmatpush.bf16.msra.mxu1 %v4380_v0  ;;  %v295_v62 = vld [vmem:[%s4488_s6 + $0x7c] sm:$0xf]  ;;  %v294_v16 = vld [vmem:[%s4488_s6 + $0x78] sm:$0xf] }
 0x1c6   : > { %2079 = vst [vmem:[%s5502_s14 + $0x28] sm:$0xff] %v2047_v7  ;;  %v2094_v61 = vadd.f32 %v2093_v22, %v2047_v7  ;;  %v2117_v44 = vmul.f32 %v2047_v7, %v2047_v7  ;;  %3059 = vmatmul.bf16.gmra.mxu3 %v5611_v36  ;;  %v4355_v22 = vld [vmem:[%s5943_s1 + $0x150] sm:$0xff]  ;;  %v2288_v7 = vrot.slane %v5289_v12, 1  ;;  %v2260_v12 = vshll.u32 %v5641_v1, 16 }
 0x1c7   : > { %v5619_v23 = vpop.f32.mrf.mxu0  ;;  %3188 = vmatpush.bf16.msra.mxu2 %v4355_v22  ;;  %v563_v43 = vshrl.u32 %v295_v62, 16  ;;  %v555_v41 = vshrl.u32 %v294_v16, 16 }
 0x1c8   : > { %v2132_v46 = vadd.f32 %v2131_v25, %v2117_v44 }
 0x1c9   : > { %v2000_v56 = vpop.f32.mrf.mxu3  ;;  %v5632_v38 = vpop.f32.mrf.mxu1  ;;  %v565_v27 = vrot.slane %v563_v43, 7 }
 0x1ca   : > { %5953 = vst [vmem:[#allocation3_spill] sm:$0xff] %v5632_v38  ;;  %v2001_v4 = vadd.f32 %v2000_v56, %v1952_v48  ;;  %v5637_v25 = vpop.f32.mrf.mxu2  ;;  %v1957_v56 = vadd.f32 %v1956_v33, %v5356_v10  ;;  %v4379_v10 = vld [vmem:[%s5943_s1 + $0x210] sm:$0xff]  ;;  %v4362_v33 = vld [vmem:[%s5943_s1 + $0x188] sm:$0xff] }
 0x1cb   : > { %3335 = vmatpush.bf16.msra.mxu1 %v4379_v10  ;;  %3238 = vmatpush.bf16.msra.mxu3 %v4362_v33 }
 0x1cc   : > { %v2050_v40 = vadd.f32 %v5554_v26, %v2001_v4  ;;  %3162 = vmatmul.bf16.gmra.mxu1 %v5635_v24  ;;  %v4371_v26 = vld [vmem:[%s5943_s1 + $0x1d0] sm:$0xff]  ;;  %v2262_v4 = vrot.slane %v2260_v12, 1 }
 0x1cd   : > { %3286 = vmatpush.bf16.msra.mxu0 %v4371_v26  ;;  %v570_v26 = vrot.slane %v565_v27, 4 }
 0x1ce   : > { %2080 = vst [vmem:[%s5502_s14 + $0x30] sm:$0xff] %v2050_v40  ;;  %v2095_v13 = vadd.f32 %v2094_v61, %v2050_v40  ;;  %v2118_v59 = vmul.f32 %v2050_v40, %v2050_v40  ;;  %v2253_v61 = vshrl.u32 %v5383_v45, 16 }
 0x1cf   : > { %v5648_v44 = vpop.f32.mrf.mxu0  ;;  %3020 = vmatmul.bf16.gmra.mxu2 %v5635_v24 }
 0x1d0   : > { %v2133_v57 = vadd.f32 %v2132_v46, %v2118_v59  ;;  %v5661_v46 = vsel %vm968_vm9, %v2288_v7, %v2289_v11  ;;  %v2258_v42 = vor.u32 %v2257_v5, %v2253_v61  ;;  %v784_v59 = vld [vmem:[#allocation2 + $0xbc] sm:$0x1]  ;;  %v558_v7 = vshll.u32 %v294_v16, 16  ;;  %v730_v16 = vld [vmem:[#allocation2 + $0xc0] sm:$0xf] }
 0x1d1   : > { %v2002_v48 = vpop.f32.mrf.mxu3  ;;  %v5654_v34 = vpop.f32.mrf.mxu1  ;;  %v566_v11 = vshll.u32 %v295_v62, 16  ;;  %v2197_v62 = vunpack.c.l.b16 %v784_v59  ;;  %v1959_v59 = vadd.f32 %v5637_v25, %v5381_v49 }
 0x1d2   : > { %5954 = vst [vmem:[#allocation4_spill] sm:$0xff] %v5654_v34  ;;  %v2003_v20 = vadd.f32 %v2002_v48, %v1954_v29  ;;  %3118 = vmatmul.bf16.gmra.mxu0 %v5383_v45  ;;  %v5664_v0 = vpop.f32.mrf.mxu2  ;;  %v557_v29 = vrot.slane %v555_v41, 7  ;;  %v734_v48 = vld [vmem:[#allocation2 + $0xc8] sm:$0x1] }
 0x1d3   : > { %v735_v43 = vsel %vm4632_vm8, %v570_v26, %v734_v48  ;;  %v5694_v9 = vpack.c.b16 %v2197_v62, %v2197_v62  ;;  %v2265_v48 = vshrl.u32 %v5419_v50, 16 }
 0x1d4   : > { %v2052_v22 = vadd.f32 %v5573_v55, %v2003_v20  ;;  %v4354_v55 = vld [vmem:[%s5943_s1 + $0x148] sm:$0xff]  ;;  %v561_v61 = vrot.slane %v557_v29, 4  ;;  %v568_v20 = vor.u32 %v566_v11, %v565_v27  ;;  %736 = vst [vmem:[#allocation2 + $0xc8] sm:$0x1] %v735_v43 }
 0x1d5   : > { %3189 = vmatpush.bf16.msra.mxu2 %v4354_v55  ;;  %v4378_v43 = vld [vmem:[%s5943_s1 + $0x208] sm:$0xff] }
 0x1d6   : > { %2081 = vst [vmem:[%s5502_s14 + $0x38] sm:$0xff] %v2052_v22  ;;  %v2096_v40 = vadd.f32 %v2095_v13, %v2052_v22  ;;  %v2119_v30 = vmul.f32 %v2052_v22, %v2052_v22  ;;  %3064 = vmatmul.bf16.gmra.mxu3 %v5661_v46  ;;  %v560_v13 = vor.u32 %v558_v7, %v557_v29  ;;  %v2291_v29 = vrot.slane %v5340_v53, 1 }
 0x1d7   : > { %v5670_v38 = vpop.f32.mrf.mxu0  ;;  %v2272_v53 = vshll.u32 %v5694_v9, 16  ;;  %3336 = vmatpush.bf16.msra.mxu1 %v4378_v43 }
 0x1d8   : > { %v2134_v34 = vadd.f32 %v2133_v57, %v2119_v30  ;;  %v5684_v57 = vsel %vm863_vm6, %v2258_v42, %v2262_v4  ;;  %v731_v41 = vsel %vm4513_vm5, %v560_v13, %v730_v16  ;;  %v569_v42 = vsel %vm4501_vm4, %v561_v61, %v568_v20 }
 0x1d9   : > { %v2005_v5 = vpop.f32.mrf.mxu3  ;;  %v5681_v12 = vpop.f32.mrf.mxu1  ;;  %732 = vst [vmem:[#allocation2 + $0xc0] sm:$0xf] %v731_v41  ;;  %v5713_v6 = vsel %vm968_vm9, %v2291_v29, %v2292_v14  ;;  %v2274_v33 = vrot.slane %v2272_v53, 1 }
 0x1da   : > { %v2006_v22 = vadd.f32 %v2005_v5, %v1957_v56  ;;  %v1963_v30 = vpop.f32.mrf.mxu2  ;;  %733 = vst [vmem:[#allocation2 + $0xc4] sm:$0xf] %v569_v42  ;;  %v2267_v56 = vshll.u32 %v5419_v50, 16  ;;  %v1962_v5 = vadd.f32 %v5664_v0, %v5394_v63 }
 0x1db   : > { %v787_v62 = vld [vmem:[#allocation2 + $0xc8] sm:$0x1] }
 0x1dc   : > { %v2055_v27 = vadd.f32 %v5600_v35, %v2006_v22  ;;  %3167 = vmatmul.bf16.gmra.mxu1 %v5684_v57  ;;  %v4370_v35 = vld [vmem:[%s5943_s1 + $0x1c8] sm:$0xff]  ;;  %v2269_v49 = vrot.slane %v2267_v56, 1  ;;  %v4361_v22 = vld [vmem:[%s5943_s1 + $0x180] sm:$0xff] }
 0x1dd   : > { %3287 = vmatpush.bf16.msra.mxu0 %v4370_v35  ;;  %3239 = vmatpush.bf16.msra.mxu3 %v4361_v22  ;;  %v1964_v35 = vadd.f32 %v1963_v30, %v5416_v52 }
 0x1de   : > { %2082 = vst [vmem:[%s5502_s14 + $0x40] sm:$0xff] %v2055_v27  ;;  %v2097_v4 = vadd.f32 %v2096_v40, %v2055_v27  ;;  %v2120_v18 = vmul.f32 %v2055_v27, %v2055_v27  ;;  %v2270_v55 = vor.u32 %v2269_v49, %v2265_v48  ;;  %v2313_v27 = vunpack.c.l.b16 %v787_v62  ;;  %v4377_v62 = vld [vmem:[%s5943_s1 + $0x200] sm:$0xff] }
 0x1df   : > { %v5702_v11 = vpop.f32.mrf.mxu0  ;;  %3025 = vmatmul.bf16.gmra.mxu2 %v5684_v57  ;;  %v2295_v48 = vrot.slane %v5641_v1, 1  ;;  %3337 = vmatpush.bf16.msra.mxu1 %v4377_v62 }
 0x1e0   : > { %v2135_v7 = vadd.f32 %v2134_v34, %v2120_v18  ;;  %v5735_v63 = vsel %vm863_vm6, %v2270_v55, %v2274_v33 }
 0x1e1   : > { %v2007_v26 = vpop.f32.mrf.mxu3  ;;  %v5708_v40 = vpop.f32.mrf.mxu1  ;;  %v5737_v0 = vld [vmem:[#allocation2 + $0xc0] sm:$0xff] }
 0x1e2   : > { %v2008_v25 = vadd.f32 %v2007_v26, %v1959_v59  ;;  %3123 = vmatmul.bf16.gmra.mxu0 %v5419_v50  ;;  %v1966_v34 = vpop.f32.mrf.mxu2  ;;  %v5741_v59 = vpack.c.b16 %v2313_v27, %v2313_v27  ;;  %v2318_v29 = vshll.u32 %v5737_v0, 16  ;;  %v2294_v26 = vrot.slane %v5383_v45, 1 }
 0x1e3   : > { %v2316_v55 = vshrl.u32 %v5737_v0, 16 }
 0x1e4   : > { %v2057_v10 = vadd.f32 %v5619_v23, %v2008_v25  ;;  %v4353_v23 = vld [vmem:[%s5943_s1 + $0x140] sm:$0xff]  ;;  %v2320_v52 = vrot.slane %v2318_v29, 1  ;;  %v2323_v45 = vshll.u32 %v5741_v59, 16  ;;  %v5759_v1 = vsel %vm968_vm9, %v2294_v26, %v2295_v48 }
 0x1e5   : > { %3190 = vmatpush.bf16.msra.mxu2 %v4353_v23  ;;  %v1967_v23 = vadd.f32 %v1966_v34, %v5432_v3  ;;  %v2297_v26 = vrot.slane %v5419_v50, 1  ;;  %v2298_v48 = vrot.slane %v5694_v9, 1 }
 0x1e6   : > { %2083 = vst [vmem:[%s5502_s14 + $0x48] sm:$0xff] %v2057_v10  ;;  %v2098_v13 = vadd.f32 %v2097_v4, %v2057_v10  ;;  %v2121_v61 = vmul.f32 %v2057_v10, %v2057_v10  ;;  %3069 = vmatmul.bf16.gmra.mxu3 %v5713_v6 }
 0x1e7   : > { %v5721_v16 = vpop.f32.mrf.mxu0 }
 0x1e8   : > { %v2136_v20 = vadd.f32 %v2135_v7, %v2121_v61  ;;  %v2321_v61 = vor.u32 %v2320_v52, %v2316_v55 }
 0x1e9   : > { %v2010_v41 = vpop.f32.mrf.mxu3  ;;  %v5732_v42 = vpop.f32.mrf.mxu1 }
 0x1ea   : > { %v2011_v56 = vadd.f32 %v2010_v41, %v1962_v5  ;;  %v1968_v4 = vpop.f32.mrf.mxu2  ;;  %v2325_v5 = vrot.slane %v2323_v45, 1  ;;  %v5791_v45 = vsel %vm968_vm9, %v2297_v26, %v2298_v48 }
 0x1ec   : > { %v2060_v18 = vadd.f32 %v5648_v44, %v2011_v56  ;;  %3172 = vmatmul.bf16.gmra.mxu1 %v5735_v63  ;;  %v4369_v44 = vld [vmem:[%s5943_s1 + $0x1c0] sm:$0xff] }
 0x1ed   : > { %3288 = vmatpush.bf16.msra.mxu0 %v4369_v44 }
 0x1ee   : > { %2084 = vst [vmem:[%s5502_s14 + $0x50] sm:$0xff] %v2060_v18  ;;  %v2099_v14 = vadd.f32 %v2098_v13, %v2060_v18  ;;  %v2122_v7 = vmul.f32 %v2060_v18, %v2060_v18 }
 0x1ef   : > { %v5748_v53 = vpop.f32.mrf.mxu0  ;;  %3030 = vmatmul.bf16.gmra.mxu2 %v5735_v63 }
 0x1f0   : > { %v2137_v49 = vadd.f32 %v2136_v20, %v2122_v7 }
 0x1f1   : > { %v2012_v25 = vpop.f32.mrf.mxu3  ;;  %v5754_v10 = vpop.f32.mrf.mxu1 }
 0x1f2   : > { %v2013_v30 = vadd.f32 %v2012_v25, %v1964_v35  ;;  %3128 = vmatmul.bf16.gmra.mxu0 %v5737_v0  ;;  %v1971_v33 = vpop.f32.mrf.mxu2  ;;  %v1969_v35 = vadd.f32 %v1968_v4, %v5441_v21 }
 0x1f4   : > { %v2062_v13 = vadd.f32 %v5670_v38, %v2013_v30  ;;  %v5772_v38 = vsel %vm863_vm6, %v2321_v61, %v2325_v5  ;;  %v1972_v30 = vadd.f32 %v1971_v33, %v5462_v8 }
 0x1f6   : > { %2085 = vst [vmem:[%s5502_s14 + $0x58] sm:$0xff] %v2062_v13  ;;  %v2100_v20 = vadd.f32 %v2099_v14, %v2062_v13  ;;  %v2123_v43 = vmul.f32 %v2062_v13, %v2062_v13  ;;  %3074 = vmatmul.bf16.gmra.mxu3 %v5759_v1  ;;  %v5779_v14 = vld [vmem:[%s5944_s2] ss:$0 sm:$0xff] }
 0x1f7   : > { %v2071_v41 = vpop.f32.mrf.mxu0  ;;  %v2948_v55 = vadd.f32 %v5779_v14, %v5456_v47  ;;  %v2950_v62 = vadd.f32 %v5779_v14, %v5469_v31  ;;  %v2953_v31 = vadd.f32 %v5779_v14, %v5494_v2  ;;  %v2955_v2 = vadd.f32 %v5779_v14, %v5517_v28 }
 0x1f8   : > { %v2138_v22 = vadd.f32 %v2137_v49, %v2123_v43 }
 0x1f9   : > { %v2015_v27 = vpop.f32.mrf.mxu3  ;;  %v5769_v56 = vpop.f32.mrf.mxu1 }
 0x1fa   : > { %v2016_v18 = vadd.f32 %v2015_v27, %v1967_v23  ;;  %v1973_v29 = vpop.f32.mrf.mxu2 }
 0x1fb   : > { %v1974_v8 = vadd.f32 %v1973_v29, %v5478_v54  ;;  %v4414_v54 = vld [vmem:[#allocation2 + $0x78] sm:$0xff] }
 0x1fc   : > { %v2065_v7 = vadd.f32 %v5702_v11, %v2016_v18  ;;  %3177 = vmatmul.bf16.gmra.mxu1 %v5772_v38 }
 0x1fe   : > { %2086 = vst [vmem:[%s5502_s14 + $0x60] sm:$0xff] %v2065_v7  ;;  %v2101_v3 = vadd.f32 %v2100_v20, %v2065_v7  ;;  %v2124_v34 = vmul.f32 %v2065_v7, %v2065_v7 }
 0x1ff   : > { %v3094_v44 = vpop.f32.mrf.mxu0  ;;  %3191 = vmatmul.bf16.vlgmr.msra.gmra.mxu2 %v5400_v17 }
 0x200   : > { %v2139_v49 = vadd.f32 %v2138_v22, %v2124_v34 }
 0x201   : > { %v2017_v11 = vpop.f32.mrf.mxu3  ;;  %v5786_v25 = vpop.f32.mrf.mxu1 }
 0x202   : > { %v2018_v52 = vadd.f32 %v2017_v11, %v1969_v35  ;;  %3289 = vmatmul.bf16.vlgmr.msra.gmra.mxu0 %v5497_v32  ;;  %v2996_v21 = vpop.f32.mrf.mxu2 }
 0x203   : > { %v2997_v9 = vadd.f32 %v2996_v21, %v2948_v55 }
 0x204   : > { %v2067_v50 = vadd.f32 %v5721_v16, %v2018_v52 }
 0x206   : > { %2087 = vst [vmem:[%s5502_s14 + $0x68] sm:$0xff] %v2067_v50  ;;  %v2102_v4 = vadd.f32 %v2101_v3, %v2067_v50  ;;  %v2125_v17 = vmul.f32 %v2067_v50, %v2067_v50  ;;  %3079 = vmatmul.bf16.gmra.mxu3 %v5791_v45 }
 0x207   : > { %v3096_v47 = vpop.f32.mrf.mxu0 }
 0x208   : > { %v2140_v13 = vadd.f32 %v2139_v49, %v2125_v17 }
 0x209   : > { %v2020_v61 = vpop.f32.mrf.mxu3  ;;  %v3143_v5 = vpop.f32.mrf.mxu1 }
 0x20a   : > { %v2021_v32 = vadd.f32 %v2020_v61, %v1972_v30  ;;  %v2998_v20 = vpop.f32.mrf.mxu2  ;;  %v2958_v30 = vadd.f32 %v5779_v14, %v5540_v19 }
 0x20b   : > { %v2999_v43 = vadd.f32 %v2998_v20, %v2950_v62 }
 0x20c   : > { %v2070_v16 = vadd.f32 %v5748_v53, %v2021_v32  ;;  %3338 = vmatmul.bf16.vlgmr.msra.gmra.mxu1 %v5565_v37 }
 0x20e   : > { %2088 = vst [vmem:[%s5502_s14 + $0x70] sm:$0xff] %v2070_v16  ;;  %v2103_v23 = vadd.f32 %v2102_v4, %v2070_v16  ;;  %v2126_v22 = vmul.f32 %v2070_v16, %v2070_v16 }
 0x20f   : > { %v3099_v27 = vpop.f32.mrf.mxu0  ;;  %3196 = vmatmul.bf16.gmra.mxu2 %v5565_v37 }
 0x210   : > { %v2141_v33 = vadd.f32 %v2140_v13, %v2126_v22 }
 0x211   : > { %v2022_v18 = vpop.f32.mrf.mxu3  ;;  %v3145_v7 = vpop.f32.mrf.mxu1 }
 0x212   : > { %v2023_v3 = vadd.f32 %v2022_v18, %v1974_v8  ;;  %3294 = vmatmul.bf16.gmra.mxu0 %v5543_v58  ;;  %v3001_v53 = vpop.f32.mrf.mxu2 }
 0x213   : > { %v3002_v35 = vadd.f32 %v3001_v53, %v2953_v31 }
 0x214   : > { %v2072_v34 = vadd.f32 %v2071_v41, %v2023_v3 }
 0x216   : > { %2089 = vst [vmem:[%s5502_s14 + $0x78] sm:$0xff] %v2072_v34  ;;  %v5809_v26 = vadd.f32 %v2103_v23, %v2072_v34  ;;  %v2127_v48 = vmul.f32 %v2072_v34, %v2072_v34  ;;  %3240 = vmatmul.bf16.vlgmr.msra.gmra.mxu3 %v4414_v54 }
 0x217   : > { %v3101_v37 = vpop.f32.mrf.mxu0 }
 0x218   : > { %v5811_v29 = vadd.f32 %v2141_v33, %v2127_v48  ;;  %v2963_v33 = vadd.f32 %v5779_v14, %v5586_v51 }
 0x219   : > { %v3045_v49 = vpop.f32.mrf.mxu3  ;;  %v3148_v11 = vpop.f32.mrf.mxu1 }
 0x21a   : > { %v3046_v55 = vadd.f32 %v3045_v49, %v2997_v9  ;;  %v3003_v52 = vpop.f32.mrf.mxu2 }
 0x21b   : > { %v3004_v41 = vadd.f32 %v3003_v52, %v2955_v2 }
 0x21c   : > { %v3095_v58 = vadd.f32 %v3094_v44, %v3046_v55  ;;  %3343 = vmatmul.bf16.gmra.mxu1 %v5611_v36  ;;  %v4415_v44 = vld [vmem:[#allocation2 + $0x84] sm:$0xff]  ;;  %v5955_v55 = vld [vmem:[#allocation3_spill] sm:$0xff] }
 0x21d   : > { %v2968_v52 = vadd.f32 %v5779_v14, %v5955_v55 }
 0x21e   : > { %v5816_v21 = vadd.f32 %v3143_v5, %v3095_v58 }
 0x21f   : > { %v3104_v50 = vpop.f32.mrf.mxu0  ;;  %3201 = vmatmul.bf16.gmra.mxu2 %v5611_v36  ;;  %v2960_v36 = vadd.f32 %v5779_v14, %v5560_v15 }
 0x221   : > { %v3047_v4 = vpop.f32.mrf.mxu3  ;;  %v3150_v17 = vpop.f32.mrf.mxu1 }
 0x222   : > { %v3048_v13 = vadd.f32 %v3047_v4, %v2999_v43  ;;  %3299 = vmatmul.bf16.gmra.mxu0 %v5589_v60  ;;  %v3006_v28 = vpop.f32.mrf.mxu2 }
 0x223   : > { %v3007_v61 = vadd.f32 %v3006_v28, %v2958_v30 }
 0x224   : > { %v3097_v9 = vadd.f32 %v3096_v47, %v3048_v13 }
 0x226   : > { %3245 = vmatmul.bf16.gmra.mxu3 %v4415_v44  ;;  %v5822_v62 = vadd.f32 %v3145_v7, %v3097_v9  ;;  %v5956_v9 = vld [vmem:[#allocation4_spill] sm:$0xff] }
 0x227   : > { %v3106_v5 = vpop.f32.mrf.mxu0 }
 0x229   : > { %v3050_v32 = vpop.f32.mrf.mxu3  ;;  %v3153_v20 = vpop.f32.mrf.mxu1 }
 0x22a   : > { %v3051_v16 = vadd.f32 %v3050_v32, %v3002_v35  ;;  %v3008_v23 = vpop.f32.mrf.mxu2 }
 0x22b   : > { %v3009_v19 = vadd.f32 %v3008_v23, %v2960_v36  ;;  %v2973_v23 = vadd.f32 %v5779_v14, %v5681_v12 }
 0x22c   : > { %v3100_v22 = vadd.f32 %v3099_v27, %v3051_v16  ;;  %3348 = vmatmul.bf16.gmra.mxu1 %v5661_v46  ;;  %v4416_v27 = vld [vmem:[#allocation2 + $0x90] sm:$0xff] }
 0x22e   : > { %v5827_v60 = vadd.f32 %v3148_v11, %v3100_v22 }
 0x22f   : > { %v3109_v47 = vpop.f32.mrf.mxu0  ;;  %3206 = vmatmul.bf16.gmra.mxu2 %v5661_v46  ;;  %v2965_v46 = vadd.f32 %v5779_v14, %v5606_v39 }
 0x231   : > { %v3052_v43 = vpop.f32.mrf.mxu3  ;;  %v3155_v8 = vpop.f32.mrf.mxu1 }
 0x232   : > { %v3053_v18 = vadd.f32 %v3052_v43, %v3004_v41  ;;  %3304 = vmatmul.bf16.gmra.mxu0 %v5635_v24  ;;  %v3011_v15 = vpop.f32.mrf.mxu2 }
 0x233   : > { %v3012_v31 = vadd.f32 %v3011_v15, %v2963_v33 }
 0x234   : > { %v3102_v7 = vadd.f32 %v3101_v37, %v3053_v18 }
 0x236   : > { %3250 = vmatmul.bf16.gmra.mxu3 %v4416_v27  ;;  %v5833_v3 = vadd.f32 %v3150_v17, %v3102_v7 }
 0x237   : > { %v3111_v53 = vpop.f32.mrf.mxu0 }
 0x239   : > { %v3055_v34 = vpop.f32.mrf.mxu3  ;;  %v3158_v35 = vpop.f32.mrf.mxu1 }
 0x23a   : > { %v3056_v48 = vadd.f32 %v3055_v34, %v3007_v61  ;;  %v3013_v54 = vpop.f32.mrf.mxu2 }
 0x23b   : > { %v3014_v51 = vadd.f32 %v3013_v54, %v2965_v46  ;;  %v5863_v46 = vld [vmem:[#allocation2 + $0xcc] sm:$0xff] }
 0x23c   : > { %v3105_v49 = vadd.f32 %v3104_v50, %v3056_v48  ;;  %3353 = vmatmul.bf16.gmra.mxu1 %v5713_v6  ;;  %v4417_v50 = vld [vmem:[#allocation2 + $0x9c] sm:$0xff] }
 0x23e   : > { %v5838_v24 = vadd.f32 %v3153_v20, %v3105_v49 }
 0x23f   : > { %v3114_v37 = vpop.f32.mrf.mxu0  ;;  %3211 = vmatmul.bf16.gmra.mxu2 %v5713_v6  ;;  %v2970_v6 = vadd.f32 %v5779_v14, %v5956_v9  ;;  %v2980_v9 = vadd.f32 %v5779_v14, %v5754_v10 }
 0x241   : > { %v3057_v11 = vpop.f32.mrf.mxu3  ;;  %v3160_v2 = vpop.f32.mrf.mxu1 }
 0x242   : > { %v3058_v58 = vadd.f32 %v3057_v11, %v3009_v19  ;;  %3309 = vmatmul.bf16.gmra.mxu0 %v5684_v57  ;;  %v3016_v39 = vpop.f32.mrf.mxu2 }
 0x243   : > { %v3017_v4 = vadd.f32 %v3016_v39, %v2968_v52  ;;  %v2344_v52 = vshll.u32 %v5863_v46, 16  ;;  %v4419_v39 = vld [vmem:[#allocation2 + $0xb4] sm:$0xff] }
 0x244   : > { %v3107_v41 = vadd.f32 %v3106_v5, %v3058_v58  ;;  %v2328_v58 = vrot.slane %v5737_v0, 1 }
 0x246   : > { %3255 = vmatmul.bf16.gmra.mxu3 %v4417_v50  ;;  %v5844_v17 = vadd.f32 %v3155_v8, %v3107_v41  ;;  %v2346_v50 = vrot.slane %v2344_v52, 1 }
 0x247   : > { %v3116_v30 = vpop.f32.mrf.mxu0 }
 0x249   : > { %v3060_v13 = vpop.f32.mrf.mxu3  ;;  %v3163_v28 = vpop.f32.mrf.mxu1 }
 0x24a   : > { %v3061_v61 = vadd.f32 %v3060_v13, %v3012_v31  ;;  %v3018_v44 = vpop.f32.mrf.mxu2 }
 0x24b   : > { %v3019_v20 = vadd.f32 %v3018_v44, %v2970_v6 }
 0x24c   : > { %v3110_v32 = vadd.f32 %v3109_v47, %v3061_v61  ;;  %3358 = vmatmul.bf16.gmra.mxu1 %v5759_v1  ;;  %v4418_v47 = vld [vmem:[#allocation2 + $0xa8] sm:$0xff] }
 0x24e   : > { %v5849_v57 = vadd.f32 %v3158_v35, %v3110_v32 }
 0x24f   : > { %v3119_v5 = vpop.f32.mrf.mxu0  ;;  %3216 = vmatmul.bf16.gmra.mxu2 %v5759_v1  ;;  %v2975_v1 = vadd.f32 %v5779_v14, %v5708_v40  ;;  %v2978_v40 = vadd.f32 %v5779_v14, %v5732_v42  ;;  %v2342_v42 = vshrl.u32 %v5863_v46, 16 }
 0x251   : > { %v3062_v36 = vpop.f32.mrf.mxu3  ;;  %v3165_v16 = vpop.f32.mrf.mxu1  ;;  %v2347_v32 = vor.u32 %v2346_v50, %v2342_v42 }
 0x252   : > { %v3063_v22 = vadd.f32 %v3062_v36, %v3014_v51  ;;  %3314 = vmatmul.bf16.gmra.mxu0 %v5735_v63  ;;  %v3021_v19 = vpop.f32.mrf.mxu2  ;;  %v790_v63 = vld [vmem:[#allocation2 + $0xd4] sm:$0x1] }
 0x253   : > { %v3022_v8 = vadd.f32 %v3021_v19, %v2973_v23  ;;  %v2339_v48 = vunpack.c.l.b16 %v790_v63 }
 0x254   : > { %v3112_v43 = vadd.f32 %v3111_v53, %v3063_v22 }
 0x255   : > { %v2340_v55 = vpack.c.b16 %v2339_v48, %v2339_v48 }
 0x256   : > { %3260 = vmatmul.bf16.gmra.mxu3 %v4418_v47  ;;  %v5855_v33 = vadd.f32 %v3160_v2, %v3112_v43  ;;  %v2983_v43 = vadd.f32 %v5779_v14, %v5769_v56  ;;  %v2985_v56 = vadd.f32 %v5779_v14, %v5786_v25 }
 0x257   : > { %v3121_v18 = vpop.f32.mrf.mxu0  ;;  %v2349_v13 = vshll.u32 %v2340_v55, 16 }
 0x259   : > { %v3065_v15 = vpop.f32.mrf.mxu3  ;;  %v3168_v7 = vpop.f32.mrf.mxu1 }
 0x25a   : > { %v3066_v31 = vadd.f32 %v3065_v15, %v3017_v4  ;;  %v3023_v27 = vpop.f32.mrf.mxu2  ;;  %v2354_v15 = vrot.slane %v5863_v46, 1 }
 0x25b   : > { %v3024_v12 = vadd.f32 %v3023_v27, %v2975_v1  ;;  %v2355_v1 = vrot.slane %v2340_v55, 1 }
 0x25c   : > { %v3115_v34 = vadd.f32 %v3114_v37, %v3066_v31  ;;  %3363 = vmatmul.bf16.gmra.mxu1 %v5791_v45 }
 0x25d   : > { %v2356_v63 = vsel %vm968_vm9, %v2354_v15, %v2355_v1 }
 0x25e   : > { %v5860_v35 = vadd.f32 %v3163_v28, %v3115_v34 }
 0x25f   : > { %v3124_v53 = vpop.f32.mrf.mxu0  ;;  %3221 = vmatmul.bf16.gmra.mxu2 %v5791_v45  ;;  %v2329_v45 = vrot.slane %v5741_v59, 1 }
 0x261   : > { %v3067_v54 = vpop.f32.mrf.mxu3  ;;  %v3170_v49 = vpop.f32.mrf.mxu1 }
 0x262   : > { %v3068_v51 = vadd.f32 %v3067_v54, %v3019_v20  ;;  %3319 = vmatmul.bf16.gmra.mxu0 %v5772_v38  ;;  %v3026_v37 = vpop.f32.mrf.mxu2  ;;  %v2351_v20 = vrot.slane %v2349_v13, 1 }
 0x263   : > { %v3027_v2 = vadd.f32 %v3026_v37, %v2978_v40 }
 0x264   : > { %v3117_v11 = vadd.f32 %v3116_v30, %v3068_v51  ;;  %v2330_v30 = vsel %vm968_vm9, %v2328_v58, %v2329_v45  ;;  %v2352_v23 = vsel %vm863_vm6, %v2347_v32, %v2351_v20 }
 0x266   : > { %3265 = vmatmul.bf16.gmra.mxu3 %v4419_v39  ;;  %v5871_v41 = vadd.f32 %v3165_v16, %v3117_v11 }
 0x267   : > { %v3126_v4 = vpop.f32.mrf.mxu0 }
 0x269   : > { %v3070_v38 = vpop.f32.mrf.mxu3  ;;  %v3173_v28 = vpop.f32.mrf.mxu1 }
 0x26a   : > { %v3071_v6 = vadd.f32 %v3070_v38, %v3022_v8  ;;  %v3028_v61 = vpop.f32.mrf.mxu2 }
 0x26b   : > { %v3029_v59 = vadd.f32 %v3028_v61, %v2980_v9 }
 0x26c   : > { %v3120_v44 = vadd.f32 %v3119_v5, %v3071_v6  ;;  %3368 = vmatmul.bf16.gmra.mxu1 %v2330_v30 }
 0x26e   : > { %v5877_v36 = vadd.f32 %v3168_v7, %v3120_v44 }
 0x26f   : > { %v3129_v16 = vpop.f32.mrf.mxu0  ;;  %3226 = vmatmul.bf16.gmra.mxu2 %v2330_v30 }
 0x271   : > { %v3072_v22 = vpop.f32.mrf.mxu3  ;;  %v3175_v19 = vpop.f32.mrf.mxu1 }
 0x272   : > { %v3073_v47 = vadd.f32 %v3072_v22, %v3024_v12  ;;  %3324 = vmatmul.bf16.gmra.mxu0 %v2352_v23  ;;  %v3031_v10 = vpop.f32.mrf.mxu2 }
 0x273   : > { %v3032_v5 = vadd.f32 %v3031_v10, %v2983_v43 }
 0x274   : > { %v3122_v8 = vadd.f32 %v3121_v18, %v3073_v47 }
 0x276   : > { %3270 = vmatmul.bf16.gmra.mxu3 %v5737_v0  ;;  %v5884_v7 = vadd.f32 %v3170_v49, %v3122_v8 }
 0x277   : > { %v3131_v31 = vpop.f32.mrf.mxu0 }
 0x279   : > { %v3075_v27 = vpop.f32.mrf.mxu3  ;;  %v3178_v34 = vpop.f32.mrf.mxu1 }
 0x27a   : > { %v3076_v12 = vadd.f32 %v3075_v27, %v3027_v2  ;;  %v3033_v48 = vpop.f32.mrf.mxu2 }
 0x27b   : > { %v3034_v18 = vadd.f32 %v3033_v48, %v2985_v56 }
 0x27c   : > { %v3125_v54 = vadd.f32 %v3124_v53, %v3076_v12  ;;  %3373 = vmatmul.bf16.gmra.mxu1 %v2356_v63 }
 0x27e   : > { %v5889_v40 = vadd.f32 %v3173_v28, %v3125_v54 }
 0x27f   : > { %v3290_v51 = vpop.f32.mrf.mxu0 }
 0x281   : > { %v3077_v37 = vpop.f32.mrf.mxu3  ;;  %v3180_v0 = vpop.f32.mrf.mxu1 }
 0x282   : > { %v3078_v49 = vadd.f32 %v3077_v37, %v3029_v59  ;;  %v3192_v11 = vpop.f32.mrf.mxu2 }
 0x284   : > { %v3127_v55 = vadd.f32 %v3126_v4, %v3078_v49  ;;  %v3193_v4 = vadd.f32 %v3192_v11, %v5816_v21 }
 0x286   : > { %3275 = vmatmul.bf16.gmra.mxu3 %v5863_v46  ;;  %v5892_v52 = vadd.f32 %v3175_v19, %v3127_v55 }
 0x287   : > { %v3292_v58 = vpop.f32.mrf.mxu0 }
 0x289   : > { %v3080_v45 = vpop.f32.mrf.mxu3  ;;  %v3339_v14 = vpop.f32.mrf.mxu1 }
 0x28a   : > { %v3081_v25 = vadd.f32 %v3080_v45, %v3032_v5  ;;  %v3194_v2 = vpop.f32.mrf.mxu2 }
 0x28c   : > { %v3130_v53 = vadd.f32 %v3129_v16, %v3081_v25  ;;  %v3195_v16 = vadd.f32 %v3194_v2, %v5822_v62 }
 0x28e   : > { %v5894_v39 = vadd.f32 %v3178_v34, %v3130_v53 }
 0x28f   : > { %v3295_v42 = vpop.f32.mrf.mxu0 }
 0x291   : > { %v3082_v50 = vpop.f32.mrf.mxu3  ;;  %v3341_v13 = vpop.f32.mrf.mxu1 }
 0x292   : > { %v3083_v38 = vadd.f32 %v3082_v50, %v3034_v18  ;;  %v3197_v28 = vpop.f32.mrf.mxu2 }
 0x293   : > { %v3198_v8 = vadd.f32 %v3197_v28, %v5827_v60 }
 0x294   : > { %v3132_v30 = vadd.f32 %v3131_v31, %v3083_v38 }
 0x296   : > { %v5897_v46 = vadd.f32 %v3180_v0, %v3132_v30 }
 0x297   : > { %v3297_v44 = vpop.f32.mrf.mxu0 }
 0x299   : > { %v3241_v9 = vpop.f32.mrf.mxu3  ;;  %v3344_v6 = vpop.f32.mrf.mxu1 }
 0x29a   : > { %v3242_v61 = vadd.f32 %v3241_v9, %v3193_v4  ;;  %v3199_v59 = vpop.f32.mrf.mxu2 }
 0x29b   : > { %v3200_v48 = vadd.f32 %v3199_v59, %v5833_v3 }
 0x29c   : > { %v3291_v32 = vadd.f32 %v3290_v51, %v3242_v61 }
 0x29e   : > { %v3340_v20 = vadd.f32 %v3339_v14, %v3291_v32 }
 0x29f   : > { %v3300_v10 = vpop.f32.mrf.mxu0 }
 0x2a0   : > { %4203 = vst [vmem:[%s5502_s14 + $0x80] sm:$0xff] %v3340_v20  ;;  %v3418_v5 = vmul.f32 %v3340_v20, %v3340_v20 }
 0x2a1   : > { %v3243_v23 = vpop.f32.mrf.mxu3  ;;  %v3346_v22 = vpop.f32.mrf.mxu1 }
 0x2a2   : > { %v3244_v19 = vadd.f32 %v3243_v23, %v3195_v16  ;;  %v3202_v43 = vpop.f32.mrf.mxu2 }
 0x2a3   : > { %v3203_v45 = vadd.f32 %v3202_v43, %v5838_v24 }
 0x2a4   : > { %v3293_v47 = vadd.f32 %v3292_v58, %v3244_v19 }
 0x2a6   : > { %v3342_v21 = vadd.f32 %v3341_v13, %v3293_v47 }
 0x2a7   : > { %v3302_v54 = vpop.f32.mrf.mxu0 }
 0x2a8   : > { %4204 = vst [vmem:[%s5502_s14 + $0x88] sm:$0xff] %v3342_v21  ;;  %v3396_v15 = vadd.f32 %v3342_v21, %v3340_v20  ;;  %v3419_v1 = vmul.f32 %v3342_v21, %v3342_v21 }
 0x2a9   : > { %v3246_v31 = vpop.f32.mrf.mxu3  ;;  %v3349_v27 = vpop.f32.mrf.mxu1 }
 0x2aa   : > { %v3434_v34 = vadd.f32 %v3419_v1, %v3418_v5  ;;  %v3247_v63 = vadd.f32 %v3246_v31, %v3198_v8  ;;  %v3204_v62 = vpop.f32.mrf.mxu2 }
 0x2ab   : > { %v3205_v30 = vadd.f32 %v3204_v62, %v5844_v17 }
 0x2ac   : > { %v3296_v56 = vadd.f32 %v3295_v42, %v3247_v63 }
 0x2ae   : > { %v3345_v12 = vadd.f32 %v3344_v6, %v3296_v56 }
 0x2af   : > { %v3305_v53 = vpop.f32.mrf.mxu0 }
 0x2b0   : > { %4205 = vst [vmem:[%s5502_s14 + $0x90] sm:$0xff] %v3345_v12  ;;  %v3397_v18 = vadd.f32 %v3396_v15, %v3345_v12  ;;  %v3420_v51 = vmul.f32 %v3345_v12, %v3345_v12 }
 0x2b1   : > { %v3248_v37 = vpop.f32.mrf.mxu3  ;;  %v3351_v60 = vpop.f32.mrf.mxu1 }
 0x2b2   : > { %v3435_v0 = vadd.f32 %v3434_v34, %v3420_v51  ;;  %v3249_v49 = vadd.f32 %v3248_v37, %v3200_v48  ;;  %v3207_v11 = vpop.f32.mrf.mxu2 }
 0x2b3   : > { %v3208_v23 = vadd.f32 %v3207_v11, %v5849_v57 }
 0x2b4   : > { %v3298_v55 = vadd.f32 %v3297_v44, %v3249_v49 }
 0x2b6   : > { %v3347_v58 = vadd.f32 %v3346_v22, %v3298_v55 }
 0x2b7   : > { %v3307_v44 = vpop.f32.mrf.mxu0 }
 0x2b8   : > { %4206 = vst [vmem:[%s5502_s14 + $0x98] sm:$0xff] %v3347_v58  ;;  %v3398_v14 = vadd.f32 %v3397_v18, %v3347_v58  ;;  %v3421_v25 = vmul.f32 %v3347_v58, %v3347_v58 }
 0x2b9   : > { %v3251_v2 = vpop.f32.mrf.mxu3  ;;  %v3354_v50 = vpop.f32.mrf.mxu1 }
 0x2ba   : > { %v3436_v3 = vadd.f32 %v3435_v0, %v3421_v25  ;;  %v3252_v42 = vadd.f32 %v3251_v2, %v3203_v45  ;;  %v3209_v13 = vpop.f32.mrf.mxu2 }
 0x2bb   : > { %v3210_v5 = vadd.f32 %v3209_v13, %v5855_v33 }
 0x2bc   : > { %v3301_v38 = vadd.f32 %v3300_v10, %v3252_v42 }
 0x2be   : > { %v3350_v28 = vadd.f32 %v3349_v27, %v3301_v38 }
 0x2bf   : > { %v3310_v21 = vpop.f32.mrf.mxu0 }
 0x2c0   : > { %4207 = vst [vmem:[%s5502_s14 + $0xa0] sm:$0xff] %v3350_v28  ;;  %v3399_v4 = vadd.f32 %v3398_v14, %v3350_v28  ;;  %v3422_v9 = vmul.f32 %v3350_v28, %v3350_v28 }
 0x2c1   : > { %v3253_v6 = vpop.f32.mrf.mxu3  ;;  %v3356_v32 = vpop.f32.mrf.mxu1 }
 0x2c2   : > { %v3437_v61 = vadd.f32 %v3436_v3, %v3422_v9  ;;  %v3254_v24 = vadd.f32 %v3253_v6, %v3205_v30  ;;  %v3212_v20 = vpop.f32.mrf.mxu2 }
 0x2c3   : > { %v3213_v12 = vadd.f32 %v3212_v20, %v5860_v35 }
 0x2c4   : > { %v3303_v59 = vadd.f32 %v3302_v54, %v3254_v24 }
 0x2c6   : > { %v3352_v16 = vadd.f32 %v3351_v60, %v3303_v59 }
 0x2c7   : > { %v3312_v48 = vpop.f32.mrf.mxu0 }
 0x2c8   : > { %4208 = vst [vmem:[%s5502_s14 + $0xa8] sm:$0xff] %v3352_v16  ;;  %v3400_v22 = vadd.f32 %v3399_v4, %v3352_v16  ;;  %v3423_v19 = vmul.f32 %v3352_v16, %v3352_v16 }
 0x2c9   : > { %v3256_v43 = vpop.f32.mrf.mxu3  ;;  %v3359_v15 = vpop.f32.mrf.mxu1 }
 0x2ca   : > { %v3438_v47 = vadd.f32 %v3437_v61, %v3423_v19  ;;  %v3257_v17 = vadd.f32 %v3256_v43, %v3208_v23  ;;  %v3214_v1 = vpop.f32.mrf.mxu2 }
 0x2cb   : > { %v3215_v55 = vadd.f32 %v3214_v1, %v5871_v41 }
 0x2cc   : > { %v3306_v10 = vadd.f32 %v3305_v53, %v3257_v17 }
 0x2ce   : > { %v3355_v8 = vadd.f32 %v3354_v50, %v3306_v10 }
 0x2cf   : > { %v3315_v25 = vpop.f32.mrf.mxu0 }
 0x2d0   : > { %4209 = vst [vmem:[%s5502_s14 + $0xb0] sm:$0xff] %v3355_v8  ;;  %v3401_v31 = vadd.f32 %v3400_v22, %v3355_v8  ;;  %v3424_v27 = vmul.f32 %v3355_v8, %v3355_v8 }
 0x2d1   : > { %v3258_v34 = vpop.f32.mrf.mxu3  ;;  %v3361_v51 = vpop.f32.mrf.mxu1 }
 0x2d2   : > { %v3439_v63 = vadd.f32 %v3438_v47, %v3424_v27  ;;  %v3259_v57 = vadd.f32 %v3258_v34, %v3210_v5  ;;  %v3217_v33 = vpop.f32.mrf.mxu2 }
 0x2d3   : > { %v3218_v13 = vadd.f32 %v3217_v33, %v5877_v36 }
 0x2d4   : > { %v3308_v62 = vadd.f32 %v3307_v44, %v3259_v57 }
 0x2d6   : > { %v3357_v56 = vadd.f32 %v3356_v32, %v3308_v62 }
 0x2d7   : > { %v3317_v9 = vpop.f32.mrf.mxu0 }
 0x2d8   : > { %4210 = vst [vmem:[%s5502_s14 + $0xb8] sm:$0xff] %v3357_v56  ;;  %v3402_v54 = vadd.f32 %v3401_v31, %v3357_v56  ;;  %v3425_v18 = vmul.f32 %v3357_v56, %v3357_v56 }
 0x2d9   : > { %v3261_v37 = vpop.f32.mrf.mxu3  ;;  %v3364_v53 = vpop.f32.mrf.mxu1 }
 0x2da   : > { %v3440_v60 = vadd.f32 %v3439_v63, %v3425_v18  ;;  %v3262_v0 = vadd.f32 %v3261_v37, %v3213_v12  ;;  %v3219_v3 = vpop.f32.mrf.mxu2 }
 0x2db   : > { %v3220_v59 = vadd.f32 %v3219_v3, %v5884_v7 }
 0x2dc   : > { %v3311_v49 = vadd.f32 %v3310_v21, %v3262_v0 }
 0x2de   : > { %v3360_v11 = vadd.f32 %v3359_v15, %v3311_v49 }
 0x2df   : > { %v3320_v19 = vpop.f32.mrf.mxu0 }
 0x2e0   : > { %4211 = vst [vmem:[%s5502_s14 + $0xc0] sm:$0xff] %v3360_v11  ;;  %v3403_v58 = vadd.f32 %v3402_v54, %v3360_v11  ;;  %v3426_v45 = vmul.f32 %v3360_v11, %v3360_v11 }
 0x2e1   : > { %v3263_v14 = vpop.f32.mrf.mxu3  ;;  %v3366_v61 = vpop.f32.mrf.mxu1 }
 0x2e2   : > { %v3441_v35 = vadd.f32 %v3440_v60, %v3426_v45  ;;  %v3264_v2 = vadd.f32 %v3263_v14, %v3215_v55  ;;  %v3222_v24 = vpop.f32.mrf.mxu2 }
 0x2e3   : > { %v3223_v17 = vadd.f32 %v3222_v24, %v5889_v40 }
 0x2e4   : > { %v3313_v42 = vadd.f32 %v3312_v48, %v3264_v2 }
 0x2e6   : > { %v3362_v50 = vadd.f32 %v3361_v51, %v3313_v42 }
 0x2e7   : > { %v3322_v34 = vpop.f32.mrf.mxu0 }
 0x2e8   : > { %4212 = vst [vmem:[%s5502_s14 + $0xc8] sm:$0xff] %v3362_v50  ;;  %v3404_v38 = vadd.f32 %v3403_v58, %v3362_v50  ;;  %v3427_v28 = vmul.f32 %v3362_v50, %v3362_v50 }
 0x2e9   : > { %v3266_v30 = vpop.f32.mrf.mxu3  ;;  %v3369_v47 = vpop.f32.mrf.mxu1 }
 0x2ea   : > { %v3442_v4 = vadd.f32 %v3441_v35, %v3427_v28  ;;  %v3267_v41 = vadd.f32 %v3266_v30, %v3218_v13  ;;  %v3224_v10 = vpop.f32.mrf.mxu2 }
 0x2eb   : > { %v3225_v27 = vadd.f32 %v3224_v10, %v5892_v52 }
 0x2ec   : > { %v3316_v6 = vadd.f32 %v3315_v25, %v3267_v41  ;;  %v2105_v25 = vrot.slane %v5809_v26, 4 }
 0x2ee   : > { %v3365_v44 = vadd.f32 %v3364_v53, %v3316_v6  ;;  %v2143_v53 = vrot.slane %v5811_v29, 4  ;;  %v2106_v13 = vadd.f32 %v2105_v25, %v5809_v26 }
 0x2ef   : > { %v3325_v60 = vpop.f32.mrf.mxu0 }
 0x2f0   : > { %4213 = vst [vmem:[%s5502_s14 + $0xd0] sm:$0xff] %v3365_v44  ;;  %v3405_v32 = vadd.f32 %v3404_v38, %v3365_v44  ;;  %v3428_v20 = vmul.f32 %v3365_v44, %v3365_v44  ;;  %v2144_v30 = vadd.f32 %v2143_v53, %v5811_v29 }
 0x2f1   : > { %v3268_v16 = vpop.f32.mrf.mxu3  ;;  %v3371_v62 = vpop.f32.mrf.mxu1 }
 0x2f2   : > { %v3443_v23 = vadd.f32 %v3442_v4, %v3428_v20  ;;  %v3269_v36 = vadd.f32 %v3268_v16, %v3220_v59  ;;  %v3227_v12 = vpop.f32.mrf.mxu2  ;;  %v2145_v6 = vrot.slane %v2144_v30, 2 }
 0x2f3   : > { %v3228_v51 = vadd.f32 %v3227_v12, %v5894_v39 }
 0x2f4   : > { %v3318_v22 = vadd.f32 %v3317_v9, %v3269_v36  ;;  %v2146_v20 = vadd.f32 %v2145_v6, %v2144_v30 }
 0x2f6   : > { %v3367_v43 = vadd.f32 %v3366_v61, %v3318_v22 }
 0x2f7   : > { %v3327_v50 = vpop.f32.mrf.mxu0 }
 0x2f8   : > { %4214 = vst [vmem:[%s5502_s14 + $0xd8] sm:$0xff] %v3367_v43  ;;  %v3406_v21 = vadd.f32 %v3405_v32, %v3367_v43  ;;  %v3429_v8 = vmul.f32 %v3367_v43, %v3367_v43 }
 0x2f9   : > { %v3271_v5 = vpop.f32.mrf.mxu3  ;;  %v3374_v11 = vpop.f32.mrf.mxu1 }
 0x2fa   : > { %v3444_v15 = vadd.f32 %v3443_v23, %v3429_v8  ;;  %v3272_v7 = vadd.f32 %v3271_v5, %v3223_v17  ;;  %v3229_v55 = vpop.f32.mrf.mxu2 }
 0x2fb   : > { %v3230_v14 = vadd.f32 %v3229_v55, %v5897_v46  ;;  %v2107_v46 = vrot.slane %v2106_v13, 2 }
 0x2fc   : > { %v3321_v1 = vadd.f32 %v3320_v19, %v3272_v7  ;;  %v2147_v19 = vrot.slane %v2146_v20, 1 }
 0x2fd   : > { %v2108_v44 = vadd.f32 %v2107_v46, %v2106_v13 }
 0x2fe   : > { %v3370_v31 = vadd.f32 %v3369_v47, %v3321_v1 }
 0x2ff   : > { %v2109_v26 = vrot.slane %v2108_v44, 1 }
 0x300   : > { %4215 = vst [vmem:[%s5502_s14 + $0xe0] sm:$0xff] %v3370_v31  ;;  %v3407_v63 = vadd.f32 %v3406_v21, %v3370_v31  ;;  %v3430_v57 = vmul.f32 %v3370_v31, %v3370_v31  ;;  %v2148_v21 = vadd.f32 %v2147_v19, %v2146_v20 }
 0x301   : > { %v3273_v56 = vpop.f32.mrf.mxu3  ;;  %v3376_v28 = vpop.f32.mrf.mxu1  ;;  %v2110_v47 = vadd.f32 %v2109_v26, %v2108_v44 }
 0x302   : > { %v3445_v40 = vadd.f32 %v3444_v15, %v3430_v57  ;;  %v3274_v48 = vadd.f32 %v3273_v56, %v3225_v27 }
 0x304   : > { %v3323_v54 = vadd.f32 %v3322_v34, %v3274_v48 }
 0x306   : > { %v3372_v18 = vadd.f32 %v3371_v62, %v3323_v54 }
 0x308   : > { %4216 = vst [vmem:[%s5502_s14 + $0xe8] sm:$0xff] %v3372_v18  ;;  %v3408_v37 = vadd.f32 %v3407_v63, %v3372_v18  ;;  %v3431_v33 = vmul.f32 %v3372_v18, %v3372_v18 }
 0x309   : > { %v3276_v0 = vpop.f32.mrf.mxu3 }
 0x30a   : > { %v3446_v52 = vadd.f32 %v3445_v40, %v3431_v33  ;;  %v3277_v49 = vadd.f32 %v3276_v0, %v3228_v51 }
 0x30c   : > { %v3326_v58 = vadd.f32 %v3325_v60, %v3277_v49 }
 0x30e   : > { %v3375_v45 = vadd.f32 %v3374_v11, %v3326_v58 }
 0x310   : > { %4217 = vst [vmem:[%s5502_s14 + $0xf0] sm:$0xff] %v3375_v45  ;;  %v3409_v35 = vadd.f32 %v3408_v37, %v3375_v45  ;;  %v3432_v2 = vmul.f32 %v3375_v45, %v3375_v45 }
 0x311   : > { %v3278_v39 = vpop.f32.mrf.mxu3 }
 0x312   : > { %v3447_v3 = vadd.f32 %v3446_v52, %v3432_v2  ;;  %v3279_v42 = vadd.f32 %v3278_v39, %v3230_v14 }
 0x314   : > { %v3328_v38 = vadd.f32 %v3327_v50, %v3279_v42 }
 0x316   : > { %v3377_v4 = vadd.f32 %v3376_v28, %v3328_v38 }
 0x318   : > { %4218 = vst [vmem:[%s5502_s14 + $0xf8] sm:$0xff] %v3377_v4  ;;  %v3410_v41 = vadd.f32 %v3409_v35, %v3377_v4  ;;  %v3433_v9 = vmul.f32 %v3377_v4, %v3377_v4  ;;  %s3554_s14 = sshll.u32 %s5958_s16, 1 }
 0x319   : > { %s208_s20 = scalar_lea.vmem %s5946_s4, %s3554_s14 }
 0x31a   : > { %v3411_v61 = vrot.slane %v3410_v41, 4  ;;  %v3448_v24 = vadd.f32 %v3447_v3, %v3433_v9 }
 0x31c   : > { %v3412_v59 = vadd.f32 %v3411_v61, %v3410_v41  ;;  %v3449_v32 = vrot.slane %v3448_v24, 4 }
 0x31e   : > { %v3413_v16 = vrot.slane %v3412_v59, 2  ;;  %v3450_v23 = vadd.f32 %v3449_v32, %v3448_v24 }
 0x320   : > { %v3414_v36 = vadd.f32 %v3413_v16, %v3412_v59  ;;  %v3451_v22 = vrot.slane %v3450_v23, 2 }
 0x322   : > { %v3415_v29 = vrot.slane %v3414_v36, 1  ;;  %v3452_v43 = vadd.f32 %v3451_v22, %v3450_v23 }
 0x324   : > { %v3416_v17 = vadd.f32 %v3415_v29, %v3414_v36  ;;  %v3453_v10 = vrot.slane %v3452_v43, 1 }
 0x326   : > { %v3417_v8 = vadd.f32 %v3416_v17, %v2110_v47  ;;  %v3454_v5 = vadd.f32 %v3453_v10, %v3452_v43 }
 0x328   : > { %v3455_v15 = vadd.f32 %v3454_v5, %v2148_v21 }
 0x32a   : > { %v3457_v7 = vsel %vm627_vm7, %v3417_v8, %v3455_v15 }
 0x32b   : > { %3458 = vst [vmem:[%s208_s20] sm:$0x3] %v3457_v7 }
 0x32c PF: > { %s15_s15 = sadd.s32 1, %s4426_s15  }
 0x32d   : > { %p12_p4 = scmp.ge.s32.totalorder %s15_s15, 4  }
 0x32f   :  { %14 = sbr.rel (!%p12_p4) target bundleno = 1 (0x1), region = 76 }

</bundles_post_ra>
